<compile_context>
chip_gen: v7x
topology: tpu7x:2x2x1
jax: 0.10.0
libtpu: 0.0.40
codegen_flags: <defaults>
</compile_context>

<pallas_src>
import functools
import math

import jax
import jax.numpy as jnp
from jax import lax
from jax.experimental import pallas as pl
from jax.experimental.pallas import tpu as pltpu


_MASK_VALUE = -1e30      # finite "-inf" for masked scores (no NaN from inf-inf)


@functools.lru_cache(maxsize=1)
def _vmem_limit_bytes():
    """Per-generation VMEM budget: ~75% of physical (48 MiB v7x, 96 MiB v5e/v6e)."""
    phys = 64 << 20
    try:
        phys = int(pltpu.get_tpu_info().vmem_capacity_bytes)
    except Exception:
        pass
    return int(min(phys * 3 // 4, 112 << 20))


def _compiler_params(dim_semantics):
    return pltpu.CompilerParams(dimension_semantics=dim_semantics,
                                vmem_limit_bytes=_vmem_limit_bytes())


def _pick_tile(dim, max_tile, unit):
    """Largest multiple of `unit` <= max_tile that evenly divides dim; else dim."""
    t = (min(max_tile, dim) // unit) * unit
    while t >= unit:
        if dim % t == 0:
            return t
        t -= unit
    return dim


# ---------------------------------------------------------------------------
# Kernel 1: fused matmul + bias (c_attn and c_proj)
# ---------------------------------------------------------------------------
def _linear_kernel(x_ref, w_ref, b_ref, o_ref):
    acc = jnp.dot(x_ref[...], w_ref[...], preferred_element_type=jnp.float32)
    o_ref[...] = (acc + b_ref[...]).astype(o_ref.dtype)


def _linear(x2d, w, b2d, *, max_block_m=512, max_weight_bytes=8 << 20):
    """y = x2d @ w + b2d.  x2d: (M, K); w: (K, N) in x2d.dtype; b2d: (1, N) f32."""
    M, K = x2d.shape
    _, N = w.shape
    tm = _pick_tile(M, max_block_m, 8)
    # N tiling keeps the (K, tn) weight block under a fixed VMEM budget so big
    # models (e.g. C=4096) stay inside the v7x 64 MiB physical VMEM.
    max_tn = max(128, (max_weight_bytes // max(1, K * w.dtype.itemsize)) // 128 * 128)
    tn = _pick_tile(N, max_tn, 128)
    return pl.pallas_call(
        _linear_kernel,
        out_shape=jax.ShapeDtypeStruct((M, N), x2d.dtype),
        grid_spec=pltpu.PrefetchScalarGridSpec(
            num_scalar_prefetch=0,
            grid=(M // tm, N // tn),
            in_specs=[
                pl.BlockSpec((tm, K), lambda i, j: (i, 0)),   # activations (resident over j)
                pl.BlockSpec((K, tn), lambda i, j: (0, j)),   # weight columns
                pl.BlockSpec((1, tn), lambda i, j: (0, j)),   # bias columns (f32)
            ],
            out_specs=pl.BlockSpec((tm, tn), lambda i, j: (i, j)),
        ),
        compiler_params=_compiler_params(("parallel", "parallel")),
    )(x2d, w, b2d)


# ---------------------------------------------------------------------------
# Kernel 2: flash causal attention, flattened lower-triangular grid,
#           all heads of a head-group per grid step.
# ---------------------------------------------------------------------------
def _flash_attn_kernel(qi_tab, ki_tab, q_ref, k_ref, v_ref, o_ref,
                       m_sc, l_sc, acc_sc, *, heads, head_dim, block):
    t = pl.program_id(2)
    qi = qi_tab[t]                       # q tile index for this triangular step
    ki = ki_tab[t]                       # kv tile index (0 <= ki <= qi)

    @pl.when(ki == 0)
    def _init():
        m_sc[...] = jnp.full(m_sc.shape, _MASK_VALUE, dtype=m_sc.dtype)
        l_sc[...] = jnp.zeros(l_sc.shape, dtype=l_sc.dtype)
        acc_sc[...] = jnp.zeros(acc_sc.shape, dtype=acc_sc.dtype)

    # Lane-dense (block, heads*hd) slabs straight from the (B, T, 3C) qkv
    # tensor.  q arrives pre-scaled by 1/sqrt(hd) (folded into c_attn weights).
    q_all = q_ref[0]
    k_all = k_ref[0]
    v_all = v_ref[0]

    def _update(apply_mask):
        if apply_mask:
            # Diagonal tile only (qi == ki, block_q == block_kv): row >= col.
            row = lax.broadcasted_iota(jnp.int32, (block, block), 0)
            col = lax.broadcasted_iota(jnp.int32, (block, block), 1)
            causal = row >= col
        for h in range(heads):           # static unroll; plain 2-D MXU dots
            hs = slice(h * head_dim, (h + 1) * head_dim)
            # q @ k^T without materialising a transpose of k.
            s = lax.dot_general(q_all[:, hs], k_all[:, hs],
                                dimension_numbers=(((1,), (1,)), ((), ())),
                                preferred_element_type=jnp.float32)
            if apply_mask:
                s = jnp.where(causal, s, _MASK_VALUE)
            # Online softmax; statistics and accumulator stay f32.
            m_prev = m_sc[h]
            m_new = jnp.maximum(m_prev, jnp.max(s, axis=-1, keepdims=True))
            alpha = jnp.exp(m_prev - m_new)
            p = jnp.exp(s - m_new)
            l_sc[h] = alpha * l_sc[h] + jnp.sum(p, axis=-1, keepdims=True)
            acc_sc[h] = alpha * acc_sc[h] + jnp.dot(
                p.astype(v_all.dtype), v_all[:, hs],
                preferred_element_type=jnp.float32)
            m_sc[h] = m_new

    @pl.when(ki == qi)                   # diagonal tile: needs the causal mask
    def _diag_tile():
        _update(apply_mask=True)

    @pl.when(ki < qi)                    # strictly-below-diagonal: mask-free
    def _off_diag_tile():
        _update(apply_mask=False)

    @pl.when(ki == qi)                   # diagonal tile is the last kv step of a q tile
    def _finalize():
        outs = []
        for h in range(heads):
            outs.append(acc_sc[h] * (1.0 / l_sc[h]))     # exact divide, tiny slab
        # Single lane-dense (block, heads*hd) store into the (B, T, C) output.
        o_ref[0] = jnp.concatenate(outs, axis=-1).astype(o_ref.dtype)


def _flash_attention(qkv3, *, n_head, block, head_groups):
    """qkv3: (B, T, 3C) from c_attn (q columns pre-scaled). Returns (B, T, C)."""
    B, T, three_c = qkv3.shape
    C = three_c // 3
    G = head_groups
    Cg = C // G
    heads = n_head // G
    hd = C // n_head
    nq = T // block

    # Flattened lower-triangular step tables: only nq*(nq+1)/2 steps exist.
    qi_list, ki_list = [], []
    for q_i in range(nq):
        for k_i in range(q_i + 1):
            qi_list.append(q_i)
            ki_list.append(k_i)
    qi_tab = jnp.asarray(qi_list, dtype=jnp.int32)
    ki_tab = jnp.asarray(ki_list, dtype=jnp.int32)
    n_steps = len(qi_list)

    kernel = functools.partial(_flash_attn_kernel,
                               heads=heads, head_dim=hd, block=block)

    # Column-block indexing of the (B, T, 3C) qkv slab (block width Cg):
    #   q group g -> column block g; k -> G + g; v -> 2G + g.
    q_spec = pl.BlockSpec((1, block, Cg), lambda b, g, t, qt, kt: (b, qt[t], g))
    k_spec = pl.BlockSpec((1, block, Cg), lambda b, g, t, qt, kt: (b, kt[t], G + g))
    v_spec = pl.BlockSpec((1, block, Cg), lambda b, g, t, qt, kt: (b, kt[t], 2 * G + g))
    o_spec = pl.BlockSpec((1, block, Cg), lambda b, g, t, qt, kt: (b, qt[t], g))

    return pl.pallas_call(
        kernel,
        out_shape=jax.ShapeDtypeStruct((B, T, C), qkv3.dtype),
        grid_spec=pltpu.PrefetchScalarGridSpec(
            num_scalar_prefetch=2,
            grid=(B, G, n_steps),                   # reduction (tri-step) axis last
            in_specs=[q_spec, k_spec, v_spec],
            out_specs=o_spec,
            scratch_shapes=[
                pltpu.VMEM((heads, block, 1), jnp.float32),    # running max   m
                pltpu.VMEM((heads, block, 1), jnp.float32),    # running denom l
                pltpu.VMEM((heads, block, hd), jnp.float32),   # output accumulator
            ],
        ),
        compiler_params=_compiler_params(("parallel", "parallel", "arbitrary")),
    )(qi_tab, ki_tab, qkv3, qkv3, qkv3)


# ---------------------------------------------------------------------------
# Full module forward
# ---------------------------------------------------------------------------
def causal_self_attention(x, w_attn, b_attn, w_proj, b_proj, n_head,
                          *, block_q=None, head_groups=1):
    """nanoGPT CausalSelfAttention.forward.

    x: (B, T, C); w_attn: (3C, C); b_attn: (3C,); w_proj: (C, C); b_proj: (C,).
    Pass bf16 `x` for the bf16 MXU path (softmax stats / accumulation stay f32).
    `head_groups` splits heads across the second grid axis (useful to keep both
    v7x TensorCores busy at B=1).
    """
    B, T, C = x.shape
    assert C % n_head == 0
    hd = C // n_head
    dtype = x.dtype

    G = head_groups
    assert n_head % G == 0 and C % G == 0
    assert (C // G) % 128 == 0, "C // head_groups must be a multiple of 128"

    # block_q == block_kv keeps the triangular-grid causal logic exact.
    block = _pick_tile(T, block_q or 256, 128)

    # nn.Linear computes x @ W.T + b.  Fold the 1/sqrt(hd) softmax scale into
    # the q columns of the c_attn weight/bias (in f32, before the dtype cast).
    scale = 1.0 / math.sqrt(hd)
    col_scale = jnp.concatenate([jnp.full((C,), scale, dtype=jnp.float32),
                                 jnp.ones((2 * C,), dtype=jnp.float32)])
    w_attn_t = (jnp.transpose(w_attn).astype(jnp.float32)
                * col_scale[None, :]).astype(dtype)                  # (C, 3C)
    b_attn_2d = (b_attn.astype(jnp.float32) * col_scale).reshape(1, 3 * C)
    w_proj_t = jnp.transpose(w_proj).astype(dtype)                   # (C, C)
    b_proj_2d = b_proj.reshape(1, C).astype(jnp.float32)

    # --- c_attn: qkv projection (Pallas) ---
    qkv = _linear(x.reshape(B * T, C), w_attn_t, b_attn_2d)          # (B*T, 3C)

    # --- flash causal attention straight off the qkv slab (no head transposes) ---
    y = _flash_attention(qkv.reshape(B, T, 3 * C), n_head=n_head,
                         block=block, head_groups=G)                 # (B, T, C)

    # --- c_proj (Pallas), consumes y without any layout change ---
    out = _linear(y.reshape(B * T, C), w_proj_t, b_proj_2d)          # (B*T, C)
    return out.reshape(B, T, C)


def _reference(x, w_attn, b_attn, w_proj, b_proj, n_head):
    """Pure-JAX replica of the PyTorch forward pass (for validation)."""
    B, T, C = x.shape
    hd = C // n_head
    qkv = jnp.einsum('btc,oc->bto', x, w_attn) + b_attn
    q, k, v = jnp.split(qkv, 3, axis=-1)

    def heads(t):
        return jnp.transpose(t.reshape(B, T, n_head, hd), (0, 2, 1, 3))

    q, k, v = heads(q), heads(k), heads(v)
    att = jnp.einsum('bhtd,bhsd->bhts', q, k) / math.sqrt(hd)
    mask = jnp.tril(jnp.ones((T, T), dtype=bool))
    att = jnp.where(mask, att, -jnp.inf)
    att = jax.nn.softmax(att, axis=-1)
    y = jnp.einsum('bhts,bhsd->bhtd', att, v)
    y = jnp.transpose(y, (0, 2, 1, 3)).reshape(B, T, C)
    return jnp.einsum('btc,oc->bto', y, w_proj) + b_proj


if __name__ == "__main__":
    # Small shapes that still exercise tiling: hd=64, 2 q-tiles x triangular kv.
    B, T, C, n_head = 2, 256, 256, 4

    key = jax.random.PRNGKey(0)
    kx, k1, k2, k3, k4 = jax.random.split(key, 5)
    x = jax.random.normal(kx, (B, T, C), dtype=jnp.float32)
    w_attn = 0.02 * jax.random.normal(k1, (3 * C, C), dtype=jnp.float32)  # c_attn.weight
    b_attn = 0.02 * jax.random.normal(k2, (3 * C,), dtype=jnp.float32)    # c_attn.bias
    w_proj = 0.02 * jax.random.normal(k3, (C, C), dtype=jnp.float32)      # c_proj.weight
    b_proj = 0.02 * jax.random.normal(k4, (C,), dtype=jnp.float32)        # c_proj.bias

    ref = _reference(x, w_attn, b_attn, w_proj, b_proj, n_head)

    # f32 path, 128-wide tiles -> 2x2 triangular grid (3 steps per batch/group).
    out = causal_self_attention(x, w_attn, b_attn, w_proj, b_proj, n_head, block_q=128)
    out = jax.block_until_ready(out)
    assert out.shape == (B, T, C)
    assert jnp.allclose(out, ref, atol=2e-3, rtol=2e-3), "f32 kernel != reference"

    # Default (full-T) tile + 2 head groups (exercises the column grouping path).
    out_g2 = causal_self_attention(x, w_attn, b_attn, w_proj, b_proj, n_head,
                                   head_groups=2)
    out_g2 = jax.block_until_ready(out_g2)
    assert jnp.allclose(out_g2, ref, atol=2e-3, rtol=2e-3), "head-group kernel != reference"

    # bf16 MXU-operand path (softmax statistics / accumulation remain f32 in-kernel).
    out_bf16 = causal_self_attention(x.astype(jnp.bfloat16), w_attn, b_attn,
                                     w_proj, b_proj, n_head, block_q=128)
    out_bf16 = jax.block_until_ready(out_bf16)
    assert jnp.allclose(out_bf16.astype(jnp.float32), ref, atol=3e-2, rtol=3e-2), \
        "bf16 kernel != reference"

    print("KERNEL_OK")
</pallas_src>

<mosaic_0001>
module attributes {stable_mosaic.version = 11 : i64} {
  func.func @_linear_kernel(%arg0: i32, %arg1: i32, %arg2: memref<512x256xf32, #tpu.memory_space<vmem>>, %arg3: memref<256x768xf32, #tpu.memory_space<vmem>>, %arg4: memref<1x768xf32, #tpu.memory_space<vmem>>, %arg5: memref<512x768xf32, #tpu.memory_space<vmem>>) attributes {dimension_semantics = [#tpu.dimension_semantics<parallel>, #tpu.dimension_semantics<parallel>], iteration_bounds = array<i64: 1, 1>, scalar_prefetch = 0 : i64, scratch_operands = 0 : i64, tpu.core_type = #tpu.core_type<tc>, window_params = [{transform_indices = @transform_0, window_bounds = array<i64: 512, 256>}, {transform_indices = @transform_1, window_bounds = array<i64: 256, 768>}, {transform_indices = @transform_2, window_bounds = array<i64: 1, 768>}, {transform_indices = @transform_3, window_bounds = array<i64: 512, 768>}]} {
    %c0 = arith.constant 0 : index
    %c0_0 = arith.constant 0 : index
    %0 = vector.load %arg2[%c0, %c0_0] : memref<512x256xf32, #tpu.memory_space<vmem>>, vector<512x256xf32>
    %c0_1 = arith.constant 0 : index
    %c0_2 = arith.constant 0 : index
    %1 = vector.load %arg3[%c0_1, %c0_2] : memref<256x768xf32, #tpu.memory_space<vmem>>, vector<256x768xf32>
    %cst = arith.constant dense<0.000000e+00> : vector<512x768xf32>
    %2 = tpu.matmul %0, %1, %cst {dimension_numbers = #tpu.dot_dimension_numbers<[1], [0], [0], [1], [0, 0, 1, 1], [], []>} : vector<512x256xf32>, vector<256x768xf32>, vector<512x768xf32> -> vector<512x768xf32>
    %c0_3 = arith.constant 0 : index
    %c0_4 = arith.constant 0 : index
    %3 = vector.load %arg4[%c0_3, %c0_4] : memref<1x768xf32, #tpu.memory_space<vmem>>, vector<1x768xf32>
    %4 = vector.broadcast %3 : vector<1x768xf32> to vector<512x768xf32>
    %5 = arith.addf %2, %4 : vector<512x768xf32>
    %c0_5 = arith.constant 0 : index
    %c0_6 = arith.constant 0 : index
    %6 = vector.load %arg5[%c0_5, %c0_6] : memref<512x768xf32, #tpu.memory_space<vmem>>, vector<512x768xf32>
    tpu.vector_store %arg5[%c0_5, %c0_6], %5 {strides = array<i32>} : memref<512x768xf32, #tpu.memory_space<vmem>>, vector<512x768xf32>,
    return
  }
  func.func @transform_0(%arg0: i32, %arg1: i32) -> (i32, i32) {
    %c0_i32 = arith.constant 0 : i32
    %c0_i32_0 = arith.constant 0 : i32
    return %arg0, %c0_i32 : i32, i32
  }
  func.func @transform_1(%arg0: i32, %arg1: i32) -> (i32, i32) {
    %c0_i32 = arith.constant 0 : i32
    %c0_i32_0 = arith.constant 0 : i32
    return %c0_i32, %arg1 : i32, i32
  }
  func.func @transform_2(%arg0: i32, %arg1: i32) -> (i32, i32) {
    %c0_i32 = arith.constant 0 : i32
    %c0_i32_0 = arith.constant 0 : i32
    return %c0_i32, %arg1 : i32, i32
  }
  func.func @transform_3(%arg0: i32, %arg1: i32) -> (i32, i32) {
    %c0_i32 = arith.constant 0 : i32
    return %arg0, %arg1 : i32, i32
  }
}

</mosaic_0001>

<bundles_post_ra>
// kernel: tpu_custom_call.1
= control target key start
LH: loop header
LB: loop body
LE: loop exit
PB: predicated region body
PF: predicated region fallthrough
CT: control target
= control target key end

     0   :  { %8 = vsyncpa [#allocation3], 0  ;;  %s3354_s0 = inlined_call_operand.hbm [shape: f32[512,256], index: 0, kind: input, shape index: {}]   ;;  %s3355_s1 = inlined_call_operand.hbm [shape: f32[256,768], index: 1, kind: input, shape index: {}]   ;;  %s3356_s2 = inlined_call_operand.hbm [shape: f32[1,768], index: 2, kind: input, shape index: {}]   ;;  %s3357_s3 = inlined_call_operand.hbm [shape: f32[512,768], index: 3, kind: output, shape index: {}]  }
   0x1   :  { %9 = vsyncpa [#allocation6], 0 }
   0x2   :  { %10 = vsyncpa [#allocation4], 0  ;;  %s2547_s12 = smov [#allocation5]   ;;  %s2453_s16 = scalar_lea.hbm %s3355_s1, 24576 }
   0x3   :  { %s28_s13 = sshll.u32 %s2547_s12, 4  ;;  %p2454_p0 = scmp.ne.s32.totalorder %s3355_s1, %s2453_s16  ;;  %s29_s13 = int_to_ptr.vmem [resolvable:$true] %s28_s13 }
   0x4   :  { %p2457_p1 = scmp.lt.u32.totalorder %s2453_s16, %s3355_s1 }
   0x6   :  { %p2459_p2 = pnand %p2457_p1, %p2454_p0 }
   0x8   :  { %2462 = shalt.err (!%p2459_p2)
}
   0x9   :  { %s2463_s21 = scalar_lea.vmem %s29_s13, 24576  ;;  %p2468_p4 = scmp.lt.s32.totalorder %s29_s13, %s29_s13 }
   0xa   :  { %p2464_p3 = scmp.ne.s32.totalorder %s29_s13, %s2463_s21  ;;  %p2469_p5 = scmp.lt.s32.totalorder %s2463_s21, %s2463_s21 }
   0xc   :  { %p2470_p6 = por %p2469_p5, %p2468_p4 }
   0xe   :  { %p2471_p7 = pnand %p2470_p6, %p2464_p3 }
  0x10   :  { %2474 = shalt.err (!%p2471_p7)
}
  0x11   :  { %s2548_s22 = smov 768   ;;  %s2549_s23 = smov 48  }
  0x12   :  { %34 = dma.hbm_to_vmem [thread:$0]  %s3355_s1, 24576, %s29_s13, [#allocation6], %s2548_s22, %s2548_s22, %s2549_s23  }
  0x13   :  { %s2550_s26 = smov [#allocation2]   ;;  %s2475_s30 = scalar_lea.hbm %s3354_s0, 16384 }
  0x14   :  { %s16_s27 = sshll.u32 %s2550_s26, 4  ;;  %p2476_p8 = scmp.ne.s32.totalorder %s3354_s0, %s2475_s30  ;;  %s17_s27 = int_to_ptr.vmem [resolvable:$true] %s16_s27 }
  0x15   :  { %p2479_p9 = scmp.lt.u32.totalorder %s2475_s30, %s3354_s0 }
  0x17   :  { %p2481_p10 = pnand %p2479_p9, %p2476_p8 }
  0x19   :  { %2484 = shalt.err (!%p2481_p10)
}
  0x1a   :  { %s2485_s8 = scalar_lea.vmem %s17_s27, 16384  ;;  %p2490_p12 = scmp.lt.s32.totalorder %s17_s27, %s17_s27 }
  0x1b   :  { %p2486_p11 = scmp.ne.s32.totalorder %s17_s27, %s2485_s8  ;;  %p2491_p13 = scmp.lt.s32.totalorder %s2485_s8, %s2485_s8 }
  0x1d   :  { %p2492_p0 = por %p2491_p13, %p2490_p12 }
  0x1f   :  { %p2493_p1 = pnand %p2492_p0, %p2486_p11 }
  0x21   :  { %2496 = shalt.err (!%p2493_p1)
}
  0x22   :  { %s2551_s1 = smov 256   ;;  %s2552_s9 = smov 16  }
  0x23   :  { %22 = dma.hbm_to_vmem [thread:$0]  %s3354_s0, 16384, %s17_s27, [#allocation3], %s2551_s1, %s2551_s1, %s2552_s9  }
  0x24   :  { %s2553_s12 = smov [#allocation7]   ;;  %s2497_s16 = scalar_lea.hbm %s3356_s2, 96 }
  0x25   :  { %s41_s13 = sshll.u32 %s2553_s12, 4  ;;  %p2498_p2 = scmp.ne.s32.totalorder %s3356_s2, %s2497_s16  ;;  %s42_s13 = int_to_ptr.vmem [resolvable:$true] %s41_s13 }
  0x26   :  { %p2501_p3 = scmp.lt.u32.totalorder %s2497_s16, %s3356_s2 }
  0x28   :  { %p2503_p4 = pnand %p2501_p3, %p2498_p2 }
  0x2a   :  { %2506 = shalt.err (!%p2503_p4)
}
  0x2b   :  { %s2507_s21 = scalar_lea.vmem %s42_s13, 96  ;;  %p2512_p6 = scmp.lt.s32.totalorder %s42_s13, %s42_s13 }
  0x2c   :  { %p2508_p5 = scmp.ne.s32.totalorder %s42_s13, %s2507_s21  ;;  %p2513_p7 = scmp.lt.s32.totalorder %s2507_s21, %s2507_s21 }
  0x2e   :  { %p2514_p8 = por %p2513_p7, %p2512_p6 }
  0x30   :  { %p2515_p9 = pnand %p2514_p8, %p2508_p5 }
  0x32   :  { %2518 = shalt.err (!%p2515_p9)
}
  0x33   :  { %44 = dma.hbm_to_vmem [thread:$0]  %s3356_s2, 96, %s42_s13, [#allocation6]  }
  0x34   :  { %2541 = dma.done.wait [#allocation3], 16384  }
  0x35   :  { %2542 = vsyncadd [#allocation3], 4294950912 }
  0x36   :  { %2543 = dma.done.wait [#allocation6], 24672  }
  0x37   :  { %2544 = vsyncadd [#allocation6], 4294942624  ;;  %v183_v0 = vld [vmem:[#allocation5 + $0x8] sm:$0xff]  ;;  %v189_v1 = vld [vmem:[#allocation5 + $0x38] sm:$0xff]  ;;  %s2554_s2 = smov [#allocation8]  }
  0x38   :  { %v182_v2 = vld [vmem:[#allocation5] sm:$0xff]  ;;  %v2155_v3 = vpack.c.bf16 %v189_v1, %v183_v0  ;;  %v188_v4 = vld [vmem:[#allocation5 + $0x30] sm:$0xff]  ;;  %v195_v5 = vld [vmem:[#allocation5 + $0x68] sm:$0xff]  ;;  %s2142_s25 = sshll.u32 %s2554_s2, 4  ;;  %s2143_s25 = int_to_ptr.vmem [resolvable:$true] %s2142_s25 }
  0x39   :  { %v201_v6 = vld [vmem:[#allocation5 + $0x98] sm:$0xff]  ;;  %v2157_v7 = vpack.c.bf16 %v188_v4, %v182_v2  ;;  %v194_v9 = vld [vmem:[#allocation5 + $0x60] sm:$0xff]  ;;  %v200_v10 = vld [vmem:[#allocation5 + $0x90] sm:$0xff]  ;;  %s2519_s26 = scalar_lea.vmem %s2143_s25, 49152  ;;  %p2524_p11 = scmp.lt.s32.totalorder %s2143_s25, %s2143_s25 }
  0x3a   :  { %v2159_v8 = vpack.c.bf16 %v201_v6, %v195_v5  ;;  %v207_v11 = vld [vmem:[#allocation5 + $0xc8] sm:$0xff]  ;;  %2156 = vmatprep.subr.bf16.mxu0 %v2155_v3  ;;  %2347 = vmatprep.subr.bf16.mxu1 %v2155_v3  ;;  %v213_v12 = vld [vmem:[#allocation5 + $0xf8] sm:$0xff]  ;;  %v2161_v13 = vpack.c.bf16 %v200_v10, %v194_v9  ;;  %v206_v15 = vld [vmem:[#allocation5 + $0xc0] sm:$0xff]  ;;  %p2520_p10 = scmp.ne.s32.totalorder %s2143_s25, %s2519_s26  ;;  %p2525_p12 = scmp.lt.s32.totalorder %s2519_s26, %s2519_s26 }
  0x3b   :  { %2158 = vmatpush1.bf16.msra.mxu0 %v2157_v7  ;;  %2363 = vmatpush1.bf16.msra.mxu1 %v2157_v7  ;;  %v2163_v14 = vpack.c.bf16 %v213_v12, %v207_v11  ;;  %v212_v16 = vld [vmem:[#allocation5 + $0xf0] sm:$0xff]  ;;  %v219_v17 = vld [vmem:[#allocation5 + $0x128] sm:$0xff]  ;;  %v225_v18 = vld [vmem:[#allocation5 + $0x158] sm:$0xff] }
  0x3c   :  { %2160 = vmatprep.subr.bf16.mxu0 %v2159_v8  ;;  %2348 = vmatprep.subr.bf16.mxu1 %v2159_v8  ;;  %v2165_v19 = vpack.c.bf16 %v212_v16, %v206_v15  ;;  %v2167_v20 = vpack.c.bf16 %v225_v18, %v219_v17  ;;  %v218_v21 = vld [vmem:[#allocation5 + $0x120] sm:$0xff]  ;;  %v224_v22 = vld [vmem:[#allocation5 + $0x150] sm:$0xff]  ;;  %v231_v23 = vld [vmem:[#allocation5 + $0x188] sm:$0xff]  ;;  %p2526_p13 = por %p2525_p12, %p2524_p11 }
  0x3d   :  { %v237_v24 = vld [vmem:[#allocation5 + $0x1b8] sm:$0xff]  ;;  %v2169_v25 = vpack.c.bf16 %v224_v22, %v218_v21  ;;  %v230_v27 = vld [vmem:[#allocation5 + $0x180] sm:$0xff]  ;;  %v236_v28 = vld [vmem:[#allocation5 + $0x1b0] sm:$0xff] }
  0x3e   :  { %v2171_v26 = vpack.c.bf16 %v237_v24, %v231_v23  ;;  %v243_v29 = vld [vmem:[#allocation5 + $0x1e8] sm:$0xff]  ;;  %v249_v30 = vld [vmem:[#allocation5 + $0x218] sm:$0xff]  ;;  %v2173_v31 = vpack.c.bf16 %v236_v28, %v230_v27  ;;  %v242_v33 = vld [vmem:[#allocation5 + $0x1e0] sm:$0xff]  ;;  %p2527_p0 = pnand %p2526_p13, %p2520_p10 }
  0x3f   :  { %2162 = vmatpush1.bf16.msra.mxu0 %v2161_v13  ;;  %2364 = vmatpush1.bf16.msra.mxu1 %v2161_v13  ;;  %v2175_v32 = vpack.c.bf16 %v249_v30, %v243_v29  ;;  %v248_v34 = vld [vmem:[#allocation5 + $0x210] sm:$0xff]  ;;  %v255_v35 = vld [vmem:[#allocation5 + $0x248] sm:$0xff]  ;;  %v261_v36 = vld [vmem:[#allocation5 + $0x278] sm:$0xff] }
  0x40   :  { %2164 = vmatprep.subr.bf16.mxu0 %v2163_v14  ;;  %2349 = vmatprep.subr.bf16.mxu1 %v2163_v14  ;;  %v2177_v37 = vpack.c.bf16 %v248_v34, %v242_v33  ;;  %v254_v38 = vld [vmem:[#allocation5 + $0x240] sm:$0xff]  ;;  %v2179_v39 = vpack.c.bf16 %v261_v36, %v255_v35  ;;  %v260_v40 = vld [vmem:[#allocation5 + $0x270] sm:$0xff]  ;;  %v55_v41 = vld [vmem:[#allocation2 + $0x8] sm:$0xff] }
  0x41   :  { %v119_v42 = vld [vmem:[#allocation2 + $0x208] sm:$0xff]  ;;  %v273_v44 = vld [vmem:[#allocation5 + $0x2d8] sm:$0xff]  ;;  %470 = vmatprep.mubr.f32.mxu0 %v55_v41  ;;  %v2181_v45 = vpack.c.bf16 %v260_v40, %v254_v38  ;;  %v266_v47 = vld [vmem:[#allocation5 + $0x2a0] sm:$0xff] }
  0x42   :  { %v267_v43 = vld [vmem:[#allocation5 + $0x2a8] sm:$0xff]  ;;  %662 = vmatprep.mubr.f32.mxu1 %v119_v42  ;;  %v272_v48 = vld [vmem:[#allocation5 + $0x2d0] sm:$0xff]  ;;  %v285_v50 = vld [vmem:[#allocation5 + $0x338] sm:$0xff] }
  0x43   :  { %2166 = vmatpush1.bf16.msra.mxu0 %v2165_v19  ;;  %2365 = vmatpush1.bf16.msra.mxu1 %v2165_v19  ;;  %v2183_v46 = vpack.c.bf16 %v273_v44, %v267_v43  ;;  %v279_v49 = vld [vmem:[#allocation5 + $0x308] sm:$0xff]  ;;  %v2185_v51 = vpack.c.bf16 %v272_v48, %v266_v47  ;;  %v278_v53 = vld [vmem:[#allocation5 + $0x300] sm:$0xff]  ;;  %v284_v54 = vld [vmem:[#allocation5 + $0x330] sm:$0xff] }
  0x44   :  { %2168 = vmatprep.subr.bf16.mxu0 %v2167_v20  ;;  %2350 = vmatprep.subr.bf16.mxu1 %v2167_v20  ;;  %v2187_v52 = vpack.c.bf16 %v285_v50, %v279_v49  ;;  %v291_v55 = vld [vmem:[#allocation5 + $0x368] sm:$0xff]  ;;  %v297_v56 = vld [vmem:[#allocation5 + $0x398] sm:$0xff]  ;;  %v2189_v57 = vpack.c.bf16 %v284_v54, %v278_v53  ;;  %v290_v59 = vld [vmem:[#allocation5 + $0x360] sm:$0xff] }
  0x45   :  { %v2191_v58 = vpack.c.bf16 %v297_v56, %v291_v55  ;;  %v296_v60 = vld [vmem:[#allocation5 + $0x390] sm:$0xff]  ;;  %v303_v61 = vld [vmem:[#allocation5 + $0x3c8] sm:$0xff]  ;;  %v309_v62 = vld [vmem:[#allocation5 + $0x3f8] sm:$0xff] }
  0x46   :  { %v2193_v63 = vpack.c.bf16 %v296_v60, %v290_v59  ;;  %v2195_v0 = vpack.c.bf16 %v309_v62, %v303_v61  ;;  %v302_v1 = vld [vmem:[#allocation5 + $0x3c0] sm:$0xff]  ;;  %v308_v2 = vld [vmem:[#allocation5 + $0x3f0] sm:$0xff]  ;;  %v315_v3 = vld [vmem:[#allocation5 + $0x428] sm:$0xff] }
  0x47   :  { %2170 = vmatpush1.bf16.msra.mxu0 %v2169_v25  ;;  %2366 = vmatpush1.bf16.msra.mxu1 %v2169_v25  ;;  %v321_v4 = vld [vmem:[#allocation5 + $0x458] sm:$0xff]  ;;  %v2197_v5 = vpack.c.bf16 %v308_v2, %v302_v1  ;;  %v314_v7 = vld [vmem:[#allocation5 + $0x420] sm:$0xff]  ;;  %v320_v8 = vld [vmem:[#allocation5 + $0x450] sm:$0xff] }
  0x48   :  { %2172 = vmatprep.subr.bf16.mxu0 %v2171_v26  ;;  %2351 = vmatprep.subr.bf16.mxu1 %v2171_v26  ;;  %v2199_v6 = vpack.c.bf16 %v321_v4, %v315_v3  ;;  %v327_v9 = vld [vmem:[#allocation5 + $0x488] sm:$0xff]  ;;  %v333_v10 = vld [vmem:[#allocation5 + $0x4b8] sm:$0xff]  ;;  %v2201_v11 = vpack.c.bf16 %v320_v8, %v314_v7  ;;  %v326_v13 = vld [vmem:[#allocation5 + $0x480] sm:$0xff] }
  0x49   :  { %v2203_v12 = vpack.c.bf16 %v333_v10, %v327_v9  ;;  %v332_v14 = vld [vmem:[#allocation5 + $0x4b0] sm:$0xff]  ;;  %v339_v15 = vld [vmem:[#allocation5 + $0x4e8] sm:$0xff]  ;;  %v345_v16 = vld [vmem:[#allocation5 + $0x518] sm:$0xff] }
  0x4a   :  { %v2205_v17 = vpack.c.bf16 %v332_v14, %v326_v13  ;;  %v2207_v18 = vpack.c.bf16 %v345_v16, %v339_v15  ;;  %v338_v19 = vld [vmem:[#allocation5 + $0x4e0] sm:$0xff]  ;;  %v344_v20 = vld [vmem:[#allocation5 + $0x510] sm:$0xff]  ;;  %v351_v21 = vld [vmem:[#allocation5 + $0x548] sm:$0xff] }
  0x4b   :  { %2174 = vmatpush1.bf16.msra.mxu0 %v2173_v31  ;;  %2367 = vmatpush1.bf16.msra.mxu1 %v2173_v31  ;;  %v357_v22 = vld [vmem:[#allocation5 + $0x578] sm:$0xff]  ;;  %v2209_v23 = vpack.c.bf16 %v344_v20, %v338_v19  ;;  %v350_v25 = vld [vmem:[#allocation5 + $0x540] sm:$0xff]  ;;  %v356_v26 = vld [vmem:[#allocation5 + $0x570] sm:$0xff] }
  0x4c   :  { %2176 = vmatprep.subr.bf16.mxu0 %v2175_v32  ;;  %2352 = vmatprep.subr.bf16.mxu1 %v2175_v32  ;;  %v2211_v24 = vpack.c.bf16 %v357_v22, %v351_v21  ;;  %v363_v27 = vld [vmem:[#allocation5 + $0x5a8] sm:$0xff]  ;;  %v369_v28 = vld [vmem:[#allocation5 + $0x5d8] sm:$0xff]  ;;  %v2213_v29 = vpack.c.bf16 %v356_v26, %v350_v25  ;;  %v362_v31 = vld [vmem:[#allocation5 + $0x5a0] sm:$0xff] }
  0x4d   :  { %v2215_v30 = vpack.c.bf16 %v369_v28, %v363_v27  ;;  %v368_v32 = vld [vmem:[#allocation5 + $0x5d0] sm:$0xff]  ;;  %v185_v33 = vld [vmem:[#allocation5 + $0x18] sm:$0xff]  ;;  %v191_v34 = vld [vmem:[#allocation5 + $0x48] sm:$0xff] }
  0x4e   :  { %v187_v35 = vld [vmem:[#allocation5 + $0x28] sm:$0xff]  ;;  %v193_v36 = vld [vmem:[#allocation5 + $0x58] sm:$0xff]  ;;  %v184_v38 = vld [vmem:[#allocation5 + $0x10] sm:$0xff] }
  0x4f   :  { %2178 = vmatpush1.bf16.msra.mxu0 %v2177_v37  ;;  %2368 = vmatpush1.bf16.msra.mxu1 %v2177_v37  ;;  %v2217_v37 = vpack.c.bf16 %v368_v32, %v362_v31  ;;  %v2283_v40 = vpack.c.bf16 %v193_v36, %v187_v35  ;;  %v190_v41 = vld [vmem:[#allocation5 + $0x40] sm:$0xff]  ;;  %v192_v43 = vld [vmem:[#allocation5 + $0x50] sm:$0xff]  ;;  %v197_v44 = vld [vmem:[#allocation5 + $0x78] sm:$0xff] }
  0x50   :  { %2180 = vmatprep.subr.bf16.mxu0 %v2179_v39  ;;  %2353 = vmatprep.subr.bf16.mxu1 %v2179_v39  ;;  %v2219_v39 = vpack.c.bf16 %v191_v34, %v185_v33  ;;  %v186_v42 = vld [vmem:[#allocation5 + $0x20] sm:$0xff]  ;;  %v205_v47 = vld [vmem:[#allocation5 + $0xb8] sm:$0xff]  ;;  %v2221_v50 = vpack.c.bf16 %v190_v41, %v184_v38  ;;  %v196_v54 = vld [vmem:[#allocation5 + $0x70] sm:$0xff] }
  0x51   :  { %v2614_v48 = vld [vmem:[#allocation2] sm:$0xff]  ;;  %v121_v53 = vld [vmem:[#allocation2 + $0x218] sm:$0xff]  ;;  %v204_v59 = vld [vmem:[#allocation5 + $0xb0] sm:$0xff] }
  0x52   :  { %v118_v49 = vld [vmem:[#allocation2 + $0x200] sm:$0xff]  ;;  %v209_v60 = vld [vmem:[#allocation5 + $0xd8] sm:$0xff]  ;;  %v215_v61 = vld [vmem:[#allocation5 + $0x108] sm:$0xff] }
  0x53   :  { %2182 = vmatpush1.bf16.msra.mxu0 %v2181_v45  ;;  %2369 = vmatpush1.bf16.msra.mxu1 %v2181_v45  ;;  %v203_v45 = vld [vmem:[#allocation5 + $0xa8] sm:$0xff]  ;;  %v202_v55 = vld [vmem:[#allocation5 + $0xa0] sm:$0xff]  ;;  %v120_v1 = vld [vmem:[#allocation2 + $0x210] sm:$0xff]  ;;  %v2227_v8 = vpack.c.bf16 %v215_v61, %v209_v60 }
  0x54   :  { %2184 = vmatprep.subr.bf16.mxu0 %v2183_v46  ;;  %2354 = vmatprep.subr.bf16.mxu1 %v2183_v46  ;;  %v199_v46 = vld [vmem:[#allocation5 + $0x88] sm:$0xff]  ;;  %v2223_v56 = vpack.c.bf16 %v203_v45, %v197_v44  ;;  %v2225_v4 = vpack.c.bf16 %v202_v55, %v196_v54  ;;  %v214_v7 = vld [vmem:[#allocation5 + $0x100] sm:$0xff]  ;;  %v229_v15 = vld [vmem:[#allocation5 + $0x178] sm:$0xff] }
  0x55   :  { %v211_v62 = vld [vmem:[#allocation5 + $0xe8] sm:$0xff]  ;;  %v210_v10 = vld [vmem:[#allocation5 + $0xe0] sm:$0xff]  ;;  %v125_v19 = vld [vmem:[#allocation2 + $0x238] sm:$0xff] }
  0x56   :  { %v2621_v2 = vld [vmem:[#allocation2 + $0x28] sm:$0xff]  ;;  %v2626_v16 = vld [vmem:[#allocation2 + $0x20] sm:$0xff]  ;;  %v220_v22 = vld [vmem:[#allocation5 + $0x130] sm:$0xff] }
  0x57   :  { %2186 = vmatpush1.bf16.msra.mxu0 %v2185_v51  ;;  %2370 = vmatpush1.bf16.msra.mxu1 %v2185_v51  ;;  %v2285_v51 = vpack.c.bf16 %v192_v43, %v186_v42  ;;  %v123_v3 = vld [vmem:[#allocation2 + $0x228] sm:$0xff]  ;;  %v222_v26 = vld [vmem:[#allocation5 + $0x140] sm:$0xff]  ;;  %v228_v27 = vld [vmem:[#allocation5 + $0x170] sm:$0xff] }
  0x58   :  { %2188 = vmatprep.subr.bf16.mxu0 %v2187_v52  ;;  %2355 = vmatprep.subr.bf16.mxu1 %v2187_v52  ;;  %v2616_v52 = vld [vmem:[#allocation2 + $0x18] sm:$0xff]  ;;  %v227_v13 = vld [vmem:[#allocation5 + $0x168] sm:$0xff]  ;;  %v2632_v32 = vld [vmem:[#allocation2 + $0x30] sm:$0xff] }
  0x59   :  { %v223_v14 = vld [vmem:[#allocation5 + $0x148] sm:$0xff]  ;;  %v233_v28 = vld [vmem:[#allocation5 + $0x198] sm:$0xff]  ;;  %v124_v33 = vld [vmem:[#allocation2 + $0x230] sm:$0xff] }
  0x5a   :  { %v2295_v25 = vpack.c.bf16 %v229_v15, %v223_v14  ;;  %v241_v31 = vld [vmem:[#allocation5 + $0x1d8] sm:$0xff]  ;;  %v2634_v34 = vld [vmem:[#allocation2 + $0x48] sm:$0xff]  ;;  %v232_v38 = vld [vmem:[#allocation5 + $0x190] sm:$0xff] }
  0x5b   :  { %2190 = vmatpush1.bf16.msra.mxu0 %v2189_v57  ;;  %2371 = vmatpush1.bf16.msra.mxu1 %v2189_v57  ;;  %v2287_v57 = vpack.c.bf16 %v205_v47, %v199_v46  ;;  %v127_v35 = vld [vmem:[#allocation2 + $0x248] sm:$0xff]  ;;  %v234_v42 = vld [vmem:[#allocation5 + $0x1a0] sm:$0xff]  ;;  %v240_v43 = vld [vmem:[#allocation5 + $0x1d0] sm:$0xff] }
  0x5c   :  { %2192 = vmatprep.subr.bf16.mxu0 %v2191_v58  ;;  %2356 = vmatprep.subr.bf16.mxu1 %v2191_v58  ;;  %v198_v58 = vld [vmem:[#allocation5 + $0x80] sm:$0xff]  ;;  %v245_v44 = vld [vmem:[#allocation5 + $0x1f8] sm:$0xff]  ;;  %v251_v45 = vld [vmem:[#allocation5 + $0x228] sm:$0xff]  ;;  %v2301_v55 = vpack.c.bf16 %v240_v43, %v234_v42 }
  0x5d   :  { %v247_v46 = vld [vmem:[#allocation5 + $0x208] sm:$0xff]  ;;  %v253_v47 = vld [vmem:[#allocation5 + $0x238] sm:$0xff]  ;;  %v246_v60 = vld [vmem:[#allocation5 + $0x200] sm:$0xff] }
  0x5e   :  { %v252_v61 = vld [vmem:[#allocation5 + $0x230] sm:$0xff]  ;;  %v258_v14 = vld [vmem:[#allocation5 + $0x260] sm:$0xff]  ;;  %v2658_v42 = vld [vmem:[#allocation2 + $0x88] sm:$0xff] }
  0x5f   :  { %2194 = vmatpush1.bf16.msra.mxu0 %v2193_v63  ;;  %2372 = vmatpush1.bf16.msra.mxu1 %v2193_v63  ;;  %v217_v63 = vld [vmem:[#allocation5 + $0x118] sm:$0xff]  ;;  %v264_v15 = vld [vmem:[#allocation5 + $0x290] sm:$0xff]  ;;  %v135_v43 = vld [vmem:[#allocation2 + $0x288] sm:$0xff] }
  0x60   :  { %2196 = vmatprep.subr.bf16.mxu0 %v2195_v0  ;;  %2357 = vmatprep.subr.bf16.mxu1 %v2195_v0  ;;  %v2619_v0 = vld [vmem:[#allocation2 + $0x10] sm:$0xff]  ;;  %v2291_v9 = vpack.c.bf16 %v217_v63, %v211_v62  ;;  %v257_v62 = vld [vmem:[#allocation5 + $0x258] sm:$0xff]  ;;  %v263_v63 = vld [vmem:[#allocation5 + $0x288] sm:$0xff] }
  0x63   :  { %2198 = vmatpush1.bf16.msra.mxu0 %v2197_v5  ;;  %2373 = vmatpush1.bf16.msra.mxu1 %v2197_v5  ;;  %v2289_v5 = vpack.c.bf16 %v204_v59, %v198_v58  ;;  %v2239_v58 = vpack.c.bf16 %v251_v45, %v245_v44  ;;  %v2303_v59 = vpack.c.bf16 %v253_v47, %v247_v46  ;;  %v280_v46 = vld [vmem:[#allocation5 + $0x310] sm:$0xff]  ;;  %v286_v47 = vld [vmem:[#allocation5 + $0x340] sm:$0xff] }
  0x64   :  { %2200 = vmatprep.subr.bf16.mxu0 %v2199_v6  ;;  %2358 = vmatprep.subr.bf16.mxu1 %v2199_v6  ;;  %v208_v6 = vld [vmem:[#allocation5 + $0xd0] sm:$0xff] }
  0x65   :  { %v2229_v20 = vpack.c.bf16 %v214_v7, %v208_v6  ;;  %v2646_v6 = vld [vmem:[#allocation2 + $0x68] sm:$0xff] }
  0x66   :  { %v131_v7 = vld [vmem:[#allocation2 + $0x268] sm:$0xff] }
  0x67   :  { %2202 = vmatpush1.bf16.msra.mxu0 %v2201_v11  ;;  %2374 = vmatpush1.bf16.msra.mxu1 %v2201_v11  ;;  %v216_v11 = vld [vmem:[#allocation5 + $0x110] sm:$0xff] }
  0x68   :  { %2204 = vmatprep.subr.bf16.mxu0 %v2203_v12  ;;  %2359 = vmatprep.subr.bf16.mxu1 %v2203_v12  ;;  %v221_v12 = vld [vmem:[#allocation5 + $0x138] sm:$0xff]  ;;  %v2293_v21 = vpack.c.bf16 %v216_v11, %v210_v10  ;;  %v256_v10 = vld [vmem:[#allocation5 + $0x250] sm:$0xff]  ;;  %v262_v11 = vld [vmem:[#allocation5 + $0x280] sm:$0xff] }
  0x6b   :  { %2206 = vmatpush1.bf16.msra.mxu0 %v2205_v17  ;;  %2375 = vmatpush1.bf16.msra.mxu1 %v2205_v17  ;;  %v122_v17 = vld [vmem:[#allocation2 + $0x220] sm:$0xff] }
  0x6c   :  { %2208 = vmatprep.subr.bf16.mxu0 %v2207_v18  ;;  %2360 = vmatprep.subr.bf16.mxu1 %v2207_v18  ;;  %v2628_v18 = vld [vmem:[#allocation2 + $0x38] sm:$0xff] }
  0x6f   :  { %2210 = vmatpush1.bf16.msra.mxu0 %v2209_v23  ;;  %2376 = vmatpush1.bf16.msra.mxu1 %v2209_v23  ;;  %v226_v23 = vld [vmem:[#allocation5 + $0x160] sm:$0xff] }
  0x70   :  { %2212 = vmatprep.subr.bf16.mxu0 %v2211_v24  ;;  %2361 = vmatprep.subr.bf16.mxu1 %v2211_v24  ;;  %v2231_v24 = vpack.c.bf16 %v227_v13, %v221_v12  ;;  %v2233_v36 = vpack.c.bf16 %v226_v23, %v220_v22  ;;  %v2243_v12 = vpack.c.bf16 %v263_v63, %v257_v62  ;;  %v2650_v22 = vld [vmem:[#allocation2 + $0x60] sm:$0xff]  ;;  %v2664_v62 = vld [vmem:[#allocation2 + $0x98] sm:$0xff] }
  0x71   :  { %v130_v23 = vld [vmem:[#allocation2 + $0x260] sm:$0xff]  ;;  %v137_v63 = vld [vmem:[#allocation2 + $0x298] sm:$0xff] }
  0x73   :  { %2214 = vmatpush1.bf16.msra.mxu0 %v2213_v29  ;;  %2377 = vmatpush1.bf16.msra.mxu1 %v2213_v29  ;;  %v239_v29 = vld [vmem:[#allocation5 + $0x1c8] sm:$0xff] }
  0x74   :  { %2216 = vmatprep.subr.bf16.mxu0 %v2215_v30  ;;  %2362 = vmatprep.subr.bf16.mxu1 %v2215_v30  ;;  %v235_v30 = vld [vmem:[#allocation5 + $0x1a8] sm:$0xff] }
  0x75   :  { %v2299_v41 = vpack.c.bf16 %v241_v31, %v235_v30 }
  0x77   :  { %2218 = vmatpush1.bf16.msra.mxu0 %v2217_v37  ;;  %2378 = vmatpush1.bf16.msra.mxu1 %v2217_v37  ;;  %v2297_v37 = vpack.c.bf16 %v228_v27, %v222_v26  ;;  %v2245_v26 = vpack.c.bf16 %v262_v11, %v256_v10  ;;  %v2309_v27 = vpack.c.bf16 %v264_v15, %v258_v14  ;;  %v294_v10 = vld [vmem:[#allocation5 + $0x380] sm:$0xff]  ;;  %v300_v11 = vld [vmem:[#allocation5 + $0x3b0] sm:$0xff]  ;;  %v307_v14 = vld [vmem:[#allocation5 + $0x3e8] sm:$0xff] }
  0x78   :  { %2220 = vmatprep.subr.bf16.mxu1 %v2219_v39  ;;  %2284 = vmatprep.subr.bf16.mxu0 %v2283_v40  ;;  %v238_v39 = vld [vmem:[#allocation5 + $0x1c0] sm:$0xff]  ;;  %v2235_v40 = vpack.c.bf16 %v239_v29, %v233_v28  ;;  %v268_v28 = vld [vmem:[#allocation5 + $0x2b0] sm:$0xff]  ;;  %v313_v15 = vld [vmem:[#allocation5 + $0x418] sm:$0xff] }
  0x79   :  { %v2237_v54 = vpack.c.bf16 %v238_v39, %v232_v38  ;;  %v274_v29 = vld [vmem:[#allocation5 + $0x2e0] sm:$0xff]  ;;  %v283_v38 = vld [vmem:[#allocation5 + $0x328] sm:$0xff]  ;;  %v289_v39 = vld [vmem:[#allocation5 + $0x358] sm:$0xff] }
  0x7a   :  { %471 = vmatmul.mubr.f32.vlgmr.msra.gmra.mrb[0].mxu0 %v2614_v48  ;;  %663 = vmatmul.mubr.f32.vlgmr.msra.gmra.mrb[0].mxu1 %v118_v49  ;;  %v2638_v49 = vld [vmem:[#allocation2 + $0x40] sm:$0xff]  ;;  %v2249_v44 = vpack.c.bf16 %v274_v29, %v268_v28  ;;  %v2323_v29 = vpack.c.bf16 %v313_v15, %v307_v14  ;;  %v341_v14 = vld [vmem:[#allocation5 + $0x4f8] sm:$0xff]  ;;  %v347_v15 = vld [vmem:[#allocation5 + $0x528] sm:$0xff] }
  0x7b   :  { %2222 = vmatpush1.bf16.msra.mxu1 %v2221_v50  ;;  %2286 = vmatpush1.bf16.msra.mxu0 %v2285_v51  ;;  %v126_v50 = vld [vmem:[#allocation2 + $0x240] sm:$0xff]  ;;  %v2640_v51 = vld [vmem:[#allocation2 + $0x58] sm:$0xff] }
  0x7c   :  { %476 = vmatprep.mubr.f32.mxu0 %v2616_v52  ;;  %668 = vmatprep.mubr.f32.mxu1 %v121_v53  ;;  %v129_v53 = vld [vmem:[#allocation2 + $0x258] sm:$0xff] }
  0x7d   :  { %2224 = vmatprep.subr.bf16.mxu1 %v2223_v56  ;;  %2288 = vmatprep.subr.bf16.mxu0 %v2287_v57  ;;  %v244_v56 = vld [vmem:[#allocation5 + $0x1f0] sm:$0xff]  ;;  %v250_v57 = vld [vmem:[#allocation5 + $0x220] sm:$0xff] }
  0x7e   :  { %477 = vmatmul.mubr.f32.gmra.mrb[2].mxu0 %v2619_v0  ;;  %669 = vmatmul.mubr.f32.gmra.mrb[2].mxu1 %v120_v1  ;;  %v259_v1 = vld [vmem:[#allocation5 + $0x268] sm:$0xff] }
  0x7f   :  { %482 = vmatprep.mubr.f32.mxu0 %v2621_v2  ;;  %674 = vmatprep.mubr.f32.mxu1 %v123_v3  ;;  %v265_v3 = vld [vmem:[#allocation5 + $0x298] sm:$0xff] }
  0x80   :  { %2226 = vmatpush1.bf16.msra.mxu1 %v2225_v4  ;;  %2290 = vmatpush1.bf16.msra.mxu0 %v2289_v5  ;;  %v2644_v4 = vld [vmem:[#allocation2 + $0x50] sm:$0xff]  ;;  %v2307_v13 = vpack.c.bf16 %v265_v3, %v259_v1  ;;  %v2253_v1 = vpack.c.bf16 %v286_v47, %v280_v46  ;;  %v322_v47 = vld [vmem:[#allocation5 + $0x460] sm:$0xff] }
  0x81   :  { %2228 = vmatprep.subr.bf16.mxu1 %v2227_v8  ;;  %2292 = vmatprep.subr.bf16.mxu0 %v2291_v9  ;;  %v128_v5 = vld [vmem:[#allocation2 + $0x250] sm:$0xff]  ;;  %v2241_v8 = vpack.c.bf16 %v250_v57, %v244_v56  ;;  %v2305_v9 = vpack.c.bf16 %v252_v61, %v246_v60  ;;  %v293_v56 = vld [vmem:[#allocation5 + $0x378] sm:$0xff]  ;;  %v299_v57 = vld [vmem:[#allocation5 + $0x3a8] sm:$0xff] }
  0x82   :  { %483 = vmatmul.mubr.f32.gmra.mrb[4].mxu0 %v2626_v16  ;;  %675 = vmatmul.mubr.f32.gmra.mrb[4].mxu1 %v122_v17  ;;  %v269_v17 = vld [vmem:[#allocation5 + $0x2b8] sm:$0xff]  ;;  %v2662_v60 = vld [vmem:[#allocation2 + $0x80] sm:$0xff]  ;;  %v316_v46 = vld [vmem:[#allocation5 + $0x430] sm:$0xff] }
  0x83   :  { %488 = vmatprep.mubr.f32.mxu0 %v2628_v18  ;;  %680 = vmatprep.mubr.f32.mxu1 %v125_v19  ;;  %v275_v19 = vld [vmem:[#allocation5 + $0x2e8] sm:$0xff]  ;;  %v134_v61 = vld [vmem:[#allocation2 + $0x280] sm:$0xff] }
  0x84   :  { %2230 = vmatpush1.bf16.msra.mxu1 %v2229_v20  ;;  %2294 = vmatpush1.bf16.msra.mxu0 %v2293_v21  ;;  %v271_v20 = vld [vmem:[#allocation5 + $0x2c8] sm:$0xff]  ;;  %v277_v21 = vld [vmem:[#allocation5 + $0x2f8] sm:$0xff]  ;;  %v2247_v30 = vpack.c.bf16 %v275_v19, %v269_v17  ;;  %v2668_v17 = vld [vmem:[#allocation2 + $0x90] sm:$0xff] }
  0x85   :  { %2232 = vmatprep.subr.bf16.mxu1 %v2231_v24  ;;  %2296 = vmatprep.subr.bf16.mxu0 %v2295_v25  ;;  %v2652_v24 = vld [vmem:[#allocation2 + $0x78] sm:$0xff]  ;;  %v2311_v31 = vpack.c.bf16 %v277_v21, %v271_v20  ;;  %v136_v19 = vld [vmem:[#allocation2 + $0x290] sm:$0xff]  ;;  %v2670_v20 = vld [vmem:[#allocation2 + $0xa8] sm:$0xff] }
  0x86   :  { %489 = vmatmul.mubr.f32.gmra.mrb[6].mxu0 %v2632_v32  ;;  %681 = vmatmul.mubr.f32.gmra.mrb[6].mxu1 %v124_v33  ;;  %v133_v25 = vld [vmem:[#allocation2 + $0x278] sm:$0xff]  ;;  %v270_v33 = vld [vmem:[#allocation5 + $0x2c0] sm:$0xff]  ;;  %v139_v21 = vld [vmem:[#allocation2 + $0x2a8] sm:$0xff] }
  0x87   :  { %494 = vmatprep.mubr.f32.mxu0 %v2634_v34  ;;  %686 = vmatprep.mubr.f32.mxu1 %v127_v35  ;;  %v276_v35 = vld [vmem:[#allocation5 + $0x2f0] sm:$0xff] }
  0x88   :  { %2234 = vmatpush1.bf16.msra.mxu1 %v2233_v36  ;;  %2298 = vmatpush1.bf16.msra.mxu0 %v2297_v37  ;;  %v281_v36 = vld [vmem:[#allocation5 + $0x318] sm:$0xff]  ;;  %v287_v37 = vld [vmem:[#allocation5 + $0x348] sm:$0xff]  ;;  %v2313_v45 = vpack.c.bf16 %v276_v35, %v270_v33 }
  0x89   :  { %2236 = vmatprep.subr.bf16.mxu1 %v2235_v40  ;;  %2300 = vmatprep.subr.bf16.mxu0 %v2299_v41  ;;  %v2656_v40 = vld [vmem:[#allocation2 + $0x70] sm:$0xff]  ;;  %v317_v33 = vld [vmem:[#allocation5 + $0x438] sm:$0xff]  ;;  %v323_v35 = vld [vmem:[#allocation5 + $0x468] sm:$0xff] }
  0x8a   :  { %495 = vmatmul.mubr.f32.gmra.mrb[8].mxu0 %v2638_v49  ;;  %687 = vmatmul.mubr.f32.gmra.mrb[8].mxu1 %v126_v50  ;;  %v132_v41 = vld [vmem:[#allocation2 + $0x270] sm:$0xff]  ;;  %v2251_v50 = vpack.c.bf16 %v287_v37, %v281_v36  ;;  %v319_v36 = vld [vmem:[#allocation5 + $0x448] sm:$0xff]  ;;  %v325_v37 = vld [vmem:[#allocation5 + $0x478] sm:$0xff] }
  0x8b   :  { %500 = vmatprep.mubr.f32.mxu0 %v2640_v51  ;;  %692 = vmatprep.mubr.f32.mxu1 %v129_v53  ;;  %v2315_v53 = vpack.c.bf16 %v289_v39, %v283_v38  ;;  %v2674_v38 = vld [vmem:[#allocation2 + $0xa0] sm:$0xff] }
  0x8c   :  { %2238 = vmatpush1.bf16.msra.mxu1 %v2237_v54  ;;  %2302 = vmatpush1.bf16.msra.mxu0 %v2301_v55  ;;  %v282_v54 = vld [vmem:[#allocation5 + $0x320] sm:$0xff]  ;;  %v288_v55 = vld [vmem:[#allocation5 + $0x350] sm:$0xff] }
  0x8d   :  { %2240 = vmatprep.subr.bf16.mxu1 %v2239_v58  ;;  %2304 = vmatprep.subr.bf16.mxu0 %v2303_v59  ;;  %v295_v58 = vld [vmem:[#allocation5 + $0x388] sm:$0xff]  ;;  %v301_v59 = vld [vmem:[#allocation5 + $0x3b8] sm:$0xff]  ;;  %v2317_v3 = vpack.c.bf16 %v288_v55, %v282_v54  ;;  %v138_v39 = vld [vmem:[#allocation2 + $0x2a0] sm:$0xff] }
  0x8e   :  { %501 = vmatmul.mubr.f32.gmra.mrb[10].mxu0 %v2644_v4  ;;  %693 = vmatmul.mubr.f32.gmra.mrb[10].mxu1 %v128_v5  ;;  %v292_v5 = vld [vmem:[#allocation5 + $0x370] sm:$0xff]  ;;  %v318_v54 = vld [vmem:[#allocation5 + $0x440] sm:$0xff] }
  0x8f   :  { %506 = vmatprep.mubr.f32.mxu0 %v2646_v6  ;;  %698 = vmatprep.mubr.f32.mxu1 %v131_v7  ;;  %v298_v7 = vld [vmem:[#allocation5 + $0x3a0] sm:$0xff]  ;;  %v324_v55 = vld [vmem:[#allocation5 + $0x470] sm:$0xff] }
  0x90   :  { %2242 = vmatpush1.bf16.msra.mxu1 %v2241_v8  ;;  %2306 = vmatpush1.bf16.msra.mxu0 %v2305_v9  ;;  %v2255_v8 = vpack.c.bf16 %v299_v57, %v293_v56  ;;  %v2319_v9 = vpack.c.bf16 %v301_v59, %v295_v58  ;;  %v329_v56 = vld [vmem:[#allocation5 + $0x498] sm:$0xff]  ;;  %v335_v57 = vld [vmem:[#allocation5 + $0x4c8] sm:$0xff] }
  0x91   :  { %2244 = vmatprep.subr.bf16.mxu1 %v2243_v12  ;;  %2308 = vmatprep.subr.bf16.mxu0 %v2307_v13  ;;  %v305_v12 = vld [vmem:[#allocation5 + $0x3d8] sm:$0xff]  ;;  %v311_v13 = vld [vmem:[#allocation5 + $0x408] sm:$0xff] }
  0x92   :  { %507 = vmatmul.mubr.f32.gmra.mrb[12].mxu0 %v2650_v22  ;;  %699 = vmatmul.mubr.f32.gmra.mrb[12].mxu1 %v130_v23  ;;  %v2257_v23 = vpack.c.bf16 %v298_v7, %v292_v5  ;;  %v2259_v28 = vpack.c.bf16 %v311_v13, %v305_v12  ;;  %v331_v58 = vld [vmem:[#allocation5 + $0x4a8] sm:$0xff]  ;;  %v337_v59 = vld [vmem:[#allocation5 + $0x4d8] sm:$0xff]  ;;  %v2265_v5 = vpack.c.bf16 %v322_v47, %v316_v46  ;;  %v330_v12 = vld [vmem:[#allocation5 + $0x4a0] sm:$0xff] }
  0x93   :  { %512 = vmatprep.mubr.f32.mxu0 %v2652_v24  ;;  %704 = vmatprep.mubr.f32.mxu1 %v133_v25  ;;  %v2321_v25 = vpack.c.bf16 %v300_v11, %v294_v10  ;;  %v2329_v7 = vpack.c.bf16 %v324_v55, %v318_v54  ;;  %v2267_v10 = vpack.c.bf16 %v335_v57, %v329_v56  ;;  %v336_v13 = vld [vmem:[#allocation5 + $0x4d0] sm:$0xff]  ;;  %v358_v57 = vld [vmem:[#allocation5 + $0x580] sm:$0xff] }
  0x94   :  { %2246 = vmatpush1.bf16.msra.mxu1 %v2245_v26  ;;  %2310 = vmatpush1.bf16.msra.mxu0 %v2309_v27  ;;  %v304_v26 = vld [vmem:[#allocation5 + $0x3d0] sm:$0xff]  ;;  %v310_v27 = vld [vmem:[#allocation5 + $0x400] sm:$0xff]  ;;  %v2331_v11 = vpack.c.bf16 %v337_v59, %v331_v58 }
  0x95   :  { %2248 = vmatprep.subr.bf16.mxu1 %v2247_v30  ;;  %2312 = vmatprep.subr.bf16.mxu0 %v2311_v31  ;;  %v306_v30 = vld [vmem:[#allocation5 + $0x3e0] sm:$0xff]  ;;  %v312_v31 = vld [vmem:[#allocation5 + $0x410] sm:$0xff] }
  0x96   :  { %513 = vmatmul.mubr.f32.gmra.mrb[14].mxu0 %v2656_v40  ;;  %705 = vmatmul.mubr.f32.gmra.mrb[14].mxu1 %v132_v41  ;;  %v2676_v41 = vld [vmem:[#allocation2 + $0xb8] sm:$0xff]  ;;  %v2692_v46 = vld [vmem:[#allocation2 + $0xd0] sm:$0xff] }
  0x97   :  { %518 = vmatprep.mubr.f32.mxu0 %v2658_v42  ;;  %710 = vmatprep.mubr.f32.mxu1 %v135_v43  ;;  %v141_v43 = vld [vmem:[#allocation2 + $0x2b8] sm:$0xff]  ;;  %v144_v47 = vld [vmem:[#allocation2 + $0x2d0] sm:$0xff] }
  0x98   :  { %2250 = vmatpush1.bf16.msra.mxu1 %v2249_v44  ;;  %2314 = vmatpush1.bf16.msra.mxu0 %v2313_v45  ;;  %v2261_v44 = vpack.c.bf16 %v310_v27, %v304_v26  ;;  %v2325_v45 = vpack.c.bf16 %v312_v31, %v306_v30  ;;  %v2688_v26 = vld [vmem:[#allocation2 + $0xd8] sm:$0xff]  ;;  %v340_v30 = vld [vmem:[#allocation5 + $0x4f0] sm:$0xff]  ;;  %v346_v31 = vld [vmem:[#allocation5 + $0x520] sm:$0xff] }
  0x99   :  { %2252 = vmatprep.subr.bf16.mxu1 %v2251_v50  ;;  %2316 = vmatprep.subr.bf16.mxu0 %v2315_v53  ;;  %v2263_v50 = vpack.c.bf16 %v323_v35, %v317_v33  ;;  %v2327_v53 = vpack.c.bf16 %v325_v37, %v319_v36  ;;  %v145_v27 = vld [vmem:[#allocation2 + $0x2d8] sm:$0xff]  ;;  %v2271_v33 = vpack.c.bf16 %v347_v15, %v341_v14  ;;  %v342_v36 = vld [vmem:[#allocation5 + $0x500] sm:$0xff]  ;;  %v348_v37 = vld [vmem:[#allocation5 + $0x530] sm:$0xff] }
  0x9a   :  { %519 = vmatmul.mubr.f32.gmra.mrb[16].mxu0 %v2662_v60  ;;  %711 = vmatmul.mubr.f32.gmra.mrb[16].mxu1 %v134_v61  ;;  %v2680_v61 = vld [vmem:[#allocation2 + $0xb0] sm:$0xff]  ;;  %v2273_v54 = vpack.c.bf16 %v346_v31, %v340_v30  ;;  %v2337_v55 = vpack.c.bf16 %v348_v37, %v342_v36 }
  0x9b   :  { %524 = vmatprep.mubr.f32.mxu0 %v2664_v62  ;;  %716 = vmatprep.mubr.f32.mxu1 %v137_v63  ;;  %v140_v63 = vld [vmem:[#allocation2 + $0x2b0] sm:$0xff] }
  0x9c   :  { %2254 = vmatpush1.bf16.msra.mxu1 %v2253_v1  ;;  %2318 = vmatpush1.bf16.msra.mxu0 %v2317_v3  ;;  %v2682_v1 = vld [vmem:[#allocation2 + $0xc8] sm:$0xff]  ;;  %v352_v56 = vld [vmem:[#allocation5 + $0x550] sm:$0xff] }
  0x9d   :  { %2256 = vmatprep.subr.bf16.mxu1 %v2255_v8  ;;  %2320 = vmatprep.subr.bf16.mxu0 %v2319_v9  ;;  %v143_v3 = vld [vmem:[#allocation2 + $0x2c8] sm:$0xff]  ;;  %v328_v8 = vld [vmem:[#allocation5 + $0x490] sm:$0xff]  ;;  %v334_v9 = vld [vmem:[#allocation5 + $0x4c0] sm:$0xff]  ;;  %v2277_v14 = vpack.c.bf16 %v358_v57, %v352_v56 }
  0x9e   :  { %525 = vmatmul.mubr.f32.gmra.mrb[18].mxu0 %v2668_v17  ;;  %717 = vmatmul.mubr.f32.gmra.mrb[18].mxu1 %v136_v19  ;;  %v343_v19 = vld [vmem:[#allocation5 + $0x508] sm:$0xff]  ;;  %v2704_v30 = vld [vmem:[#allocation2 + $0xf0] sm:$0xff]  ;;  %v2722_v56 = vld [vmem:[#allocation2 + $0x120] sm:$0xff] }
  0x9f   :  { %530 = vmatprep.mubr.f32.mxu0 %v2670_v20  ;;  %722 = vmatprep.mubr.f32.mxu1 %v139_v21  ;;  %v349_v21 = vld [vmem:[#allocation5 + $0x538] sm:$0xff]  ;;  %v148_v31 = vld [vmem:[#allocation2 + $0x2f0] sm:$0xff]  ;;  %v154_v57 = vld [vmem:[#allocation2 + $0x320] sm:$0xff] }
  0xa0   :  { %2258 = vmatpush1.bf16.msra.mxu1 %v2257_v23  ;;  %2322 = vmatpush1.bf16.msra.mxu0 %v2321_v25  ;;  %v2686_v23 = vld [vmem:[#allocation2 + $0xc0] sm:$0xff]  ;;  %v2335_v35 = vpack.c.bf16 %v349_v21, %v343_v19  ;;  %v364_v19 = vld [vmem:[#allocation5 + $0x5b0] sm:$0xff] }
  0xa1   :  { %2260 = vmatprep.subr.bf16.mxu1 %v2259_v28  ;;  %2324 = vmatprep.subr.bf16.mxu0 %v2323_v29  ;;  %v142_v25 = vld [vmem:[#allocation2 + $0x2c0] sm:$0xff]  ;;  %v2269_v28 = vpack.c.bf16 %v334_v9, %v328_v8  ;;  %v2333_v29 = vpack.c.bf16 %v336_v13, %v330_v12  ;;  %v367_v8 = vld [vmem:[#allocation5 + $0x5c8] sm:$0xff]  ;;  %v373_v9 = vld [vmem:[#allocation5 + $0x5f8] sm:$0xff] }
  0xa2   :  { %531 = vmatmul.mubr.f32.gmra.mrb[20].mxu0 %v2674_v38  ;;  %723 = vmatmul.mubr.f32.gmra.mrb[20].mxu1 %v138_v39  ;;  %v353_v39 = vld [vmem:[#allocation5 + $0x558] sm:$0xff] }
  0xa3   :  { %536 = vmatprep.mubr.f32.mxu0 %v2676_v41  ;;  %728 = vmatprep.mubr.f32.mxu1 %v141_v43  ;;  %v359_v43 = vld [vmem:[#allocation5 + $0x588] sm:$0xff]  ;;  %v2700_v12 = vld [vmem:[#allocation2 + $0xf8] sm:$0xff] }
  0xa4   :  { %2262 = vmatpush1.bf16.msra.mxu1 %v2261_v44  ;;  %2326 = vmatpush1.bf16.msra.mxu0 %v2325_v45  ;;  %v355_v44 = vld [vmem:[#allocation5 + $0x568] sm:$0xff]  ;;  %v361_v45 = vld [vmem:[#allocation5 + $0x598] sm:$0xff]  ;;  %v2275_v58 = vpack.c.bf16 %v359_v43, %v353_v39  ;;  %v2710_v39 = vld [vmem:[#allocation2 + $0x100] sm:$0xff] }
  0xa5   :  { %2264 = vmatprep.subr.bf16.mxu1 %v2263_v50  ;;  %2328 = vmatprep.subr.bf16.mxu0 %v2327_v53  ;;  %v2694_v50 = vld [vmem:[#allocation2 + $0xe8] sm:$0xff]  ;;  %v2339_v59 = vpack.c.bf16 %v361_v45, %v355_v44  ;;  %v149_v13 = vld [vmem:[#allocation2 + $0x2f8] sm:$0xff]  ;;  %v150_v43 = vld [vmem:[#allocation2 + $0x300] sm:$0xff] }
  0xa6   :  { %537 = vmatmul.mubr.f32.gmra.mrb[22].mxu0 %v2680_v61  ;;  %729 = vmatmul.mubr.f32.gmra.mrb[22].mxu1 %v140_v63  ;;  %v147_v53 = vld [vmem:[#allocation2 + $0x2e8] sm:$0xff]  ;;  %v354_v63 = vld [vmem:[#allocation5 + $0x560] sm:$0xff]  ;;  %v2712_v44 = vld [vmem:[#allocation2 + $0x118] sm:$0xff] }
  0xa7   :  { %542 = vmatprep.mubr.f32.mxu0 %v2682_v1  ;;  %734 = vmatprep.mubr.f32.mxu1 %v143_v3  ;;  %v360_v3 = vld [vmem:[#allocation5 + $0x590] sm:$0xff]  ;;  %v153_v45 = vld [vmem:[#allocation2 + $0x318] sm:$0xff] }
  0xa8   :  { %2266 = vmatpush1.bf16.msra.mxu1 %v2265_v5  ;;  %2330 = vmatpush1.bf16.msra.mxu0 %v2329_v7  ;;  %v365_v5 = vld [vmem:[#allocation5 + $0x5b8] sm:$0xff]  ;;  %v371_v7 = vld [vmem:[#allocation5 + $0x5e8] sm:$0xff]  ;;  %v2341_v15 = vpack.c.bf16 %v360_v3, %v354_v63  ;;  %v2728_v63 = vld [vmem:[#allocation2 + $0x130] sm:$0xff] }
  0xa9   :  { %2268 = vmatprep.subr.bf16.mxu1 %v2267_v10  ;;  %2332 = vmatprep.subr.bf16.mxu0 %v2331_v11  ;;  %v2698_v10 = vld [vmem:[#allocation2 + $0xe0] sm:$0xff]  ;;  %v2279_v21 = vpack.c.bf16 %v371_v7, %v365_v5  ;;  %v156_v3 = vld [vmem:[#allocation2 + $0x330] sm:$0xff]  ;;  %v2730_v5 = vld [vmem:[#allocation2 + $0x148] sm:$0xff] }
  0xaa   :  { %543 = vmatmul.mubr.f32.gmra.mrb[24].mxu0 %v2686_v23  ;;  %735 = vmatmul.mubr.f32.gmra.mrb[24].mxu1 %v142_v25  ;;  %v146_v11 = vld [vmem:[#allocation2 + $0x2e0] sm:$0xff]  ;;  %v2343_v25 = vpack.c.bf16 %v373_v9, %v367_v8  ;;  %v159_v7 = vld [vmem:[#allocation2 + $0x348] sm:$0xff] }
  0xab   :  { %548 = vmatprep.mubr.f32.mxu0 %v2688_v26  ;;  %740 = vmatprep.mubr.f32.mxu1 %v145_v27  ;;  %v370_v27 = vld [vmem:[#allocation5 + $0x5e0] sm:$0xff] }
  0xac   :  { %2270 = vmatpush1.bf16.msra.mxu1 %v2269_v28  ;;  %2334 = vmatpush1.bf16.msra.mxu0 %v2333_v29  ;;  %v366_v28 = vld [vmem:[#allocation5 + $0x5c0] sm:$0xff]  ;;  %v372_v29 = vld [vmem:[#allocation5 + $0x5f0] sm:$0xff]  ;;  %v2281_v36 = vpack.c.bf16 %v370_v27, %v364_v19  ;;  %v2742_v19 = vld [vmem:[#allocation2 + $0x168] sm:$0xff] }
  0xad   :  { %2272 = vmatprep.subr.bf16.mxu1 %v2271_v33  ;;  %2336 = vmatprep.subr.bf16.mxu0 %v2335_v35  ;;  %v2706_v33 = vld [vmem:[#allocation2 + $0x108] sm:$0xff]  ;;  %v2345_v37 = vpack.c.bf16 %v372_v29, %v366_v28  ;;  %v2734_v8 = vld [vmem:[#allocation2 + $0x140] sm:$0xff]  ;;  %v2748_v28 = vld [vmem:[#allocation2 + $0x178] sm:$0xff] }
  0xae   :  { %549 = vmatmul.mubr.f32.gmra.mrb[26].mxu0 %v2692_v46  ;;  %741 = vmatmul.mubr.f32.gmra.mrb[26].mxu1 %v144_v47  ;;  %v151_v35 = vld [vmem:[#allocation2 + $0x308] sm:$0xff]  ;;  %v2716_v47 = vld [vmem:[#allocation2 + $0x110] sm:$0xff]  ;;  %v158_v9 = vld [vmem:[#allocation2 + $0x340] sm:$0xff] }
  0xaf   :  { %554 = vmatprep.mubr.f32.mxu0 %v2694_v50  ;;  %746 = vmatprep.mubr.f32.mxu1 %v147_v53  ;;  %v152_v53 = vld [vmem:[#allocation2 + $0x310] sm:$0xff]  ;;  %v162_v27 = vld [vmem:[#allocation2 + $0x360] sm:$0xff]  ;;  %v165_v29 = vld [vmem:[#allocation2 + $0x378] sm:$0xff] }
  0xb0   :  { %2274 = vmatpush1.bf16.msra.mxu1 %v2273_v54  ;;  %2338 = vmatpush1.bf16.msra.mxu0 %v2337_v55  ;;  %v2718_v54 = vld [vmem:[#allocation2 + $0x128] sm:$0xff] }
  0xb1   :  { %2276 = vmatprep.subr.bf16.mxu1 %v2275_v58  ;;  %2340 = vmatprep.subr.bf16.mxu0 %v2339_v59  ;;  %v155_v55 = vld [vmem:[#allocation2 + $0x328] sm:$0xff]  ;;  %v2724_v58 = vld [vmem:[#allocation2 + $0x138] sm:$0xff] }
  0xb2   :  { %555 = vmatmul.mubr.f32.gmra.mrb[28].mxu0 %v2698_v10  ;;  %747 = vmatmul.mubr.f32.gmra.mrb[28].mxu1 %v146_v11  ;;  %v157_v59 = vld [vmem:[#allocation2 + $0x338] sm:$0xff] }
  0xb3   :  { %560 = vmatprep.mubr.f32.mxu0 %v2700_v12  ;;  %752 = vmatprep.mubr.f32.mxu1 %v149_v13  ;;  %v2736_v11 = vld [vmem:[#allocation2 + $0x158] sm:$0xff] }
  0xb4   :  { %2278 = vmatpush1.bf16.msra.mxu1 %v2277_v14  ;;  %2342 = vmatpush1.bf16.msra.mxu0 %v2341_v15  ;;  %v161_v13 = vld [vmem:[#allocation2 + $0x358] sm:$0xff]  ;;  %v2740_v14 = vld [vmem:[#allocation2 + $0x150] sm:$0xff] }
  0xb5   :  { %2280 = vmatprep.subr.bf16.mxu1 %v2279_v21  ;;  %2344 = vmatprep.subr.bf16.mxu0 %v2343_v25  ;;  %v160_v15 = vld [vmem:[#allocation2 + $0x350] sm:$0xff]  ;;  %v163_v21 = vld [vmem:[#allocation2 + $0x368] sm:$0xff]  ;;  %v2746_v25 = vld [vmem:[#allocation2 + $0x160] sm:$0xff] }
  0xb6   :  { %561 = vmatmul.mubr.f32.gmra.mrb[30].mxu0 %v2704_v30  ;;  %753 = vmatmul.mubr.f32.gmra.mrb[30].mxu1 %v148_v31  ;;  %v2752_v31 = vld [vmem:[#allocation2 + $0x170] sm:$0xff] }
  0xb7   :  { %566 = vmatprep.mubr.f32.mxu0 %v2706_v33  ;;  %758 = vmatprep.mubr.f32.mxu1 %v151_v35  ;;  %v164_v35 = vld [vmem:[#allocation2 + $0x370] sm:$0xff] }
  0xb8   :  { %2282 = vmatpush1.bf16.msra.mxu1 %v2281_v36  ;;  %2346 = vmatpush1.bf16.msra.mxu0 %v2345_v37  ;;  %v2754_v36 = vld [vmem:[#allocation2 + $0x188] sm:$0xff] }
  0xb9   :  { %v167_v37 = vld [vmem:[#allocation2 + $0x388] sm:$0xff] }
  0xba   :  { %567 = vmatmul.mubr.f32.gmra.mrb[32].mxu0 %v2710_v39  ;;  %759 = vmatmul.mubr.f32.gmra.mrb[32].mxu1 %v150_v43  ;;  %v2758_v43 = vld [vmem:[#allocation2 + $0x180] sm:$0xff] }
  0xbb   :  { %572 = vmatprep.mubr.f32.mxu0 %v2712_v44  ;;  %764 = vmatprep.mubr.f32.mxu1 %v153_v45  ;;  %v166_v45 = vld [vmem:[#allocation2 + $0x380] sm:$0xff] }
  0xbe   :  { %573 = vmatmul.mubr.f32.gmra.mrb[34].mxu0 %v2716_v47  ;;  %765 = vmatmul.mubr.f32.gmra.mrb[34].mxu1 %v152_v53  ;;  %v2760_v53 = vld [vmem:[#allocation2 + $0x198] sm:$0xff] }
  0xbf   :  { %578 = vmatprep.mubr.f32.mxu0 %v2718_v54  ;;  %770 = vmatprep.mubr.f32.mxu1 %v155_v55  ;;  %v169_v55 = vld [vmem:[#allocation2 + $0x398] sm:$0xff] }
  0xc2   :  { %579 = vmatmul.mubr.f32.gmra.mrb[36].mxu0 %v2722_v56  ;;  %771 = vmatmul.mubr.f32.gmra.mrb[36].mxu1 %v154_v57  ;;  %v2764_v57 = vld [vmem:[#allocation2 + $0x190] sm:$0xff] }
  0xc3   :  { %584 = vmatprep.mubr.f32.mxu0 %v2724_v58  ;;  %776 = vmatprep.mubr.f32.mxu1 %v157_v59  ;;  %v168_v59 = vld [vmem:[#allocation2 + $0x390] sm:$0xff] }
  0xc6   :  { %585 = vmatmul.mubr.f32.gmra.mrb[38].mxu0 %v2728_v63  ;;  %777 = vmatmul.mubr.f32.gmra.mrb[38].mxu1 %v156_v3  ;;  %v2766_v3 = vld [vmem:[#allocation2 + $0x1a8] sm:$0xff] }
  0xc7   :  { %590 = vmatprep.mubr.f32.mxu0 %v2730_v5  ;;  %782 = vmatprep.mubr.f32.mxu1 %v159_v7  ;;  %v171_v7 = vld [vmem:[#allocation2 + $0x3a8] sm:$0xff] }
  0xca   :  { %591 = vmatmul.mubr.f32.gmra.mrb[40].mxu0 %v2734_v8  ;;  %783 = vmatmul.mubr.f32.gmra.mrb[40].mxu1 %v158_v9  ;;  %v2770_v9 = vld [vmem:[#allocation2 + $0x1a0] sm:$0xff] }
  0xcb   :  { %596 = vmatprep.mubr.f32.mxu0 %v2736_v11  ;;  %788 = vmatprep.mubr.f32.mxu1 %v161_v13  ;;  %v170_v13 = vld [vmem:[#allocation2 + $0x3a0] sm:$0xff] }
  0xce   :  { %597 = vmatmul.mubr.f32.gmra.mrb[42].mxu0 %v2740_v14  ;;  %789 = vmatmul.mubr.f32.gmra.mrb[42].mxu1 %v160_v15  ;;  %v2772_v15 = vld [vmem:[#allocation2 + $0x1b8] sm:$0xff] }
  0xcf   :  { %602 = vmatprep.mubr.f32.mxu0 %v2742_v19  ;;  %794 = vmatprep.mubr.f32.mxu1 %v163_v21  ;;  %v173_v21 = vld [vmem:[#allocation2 + $0x3b8] sm:$0xff] }
  0xd2   :  { %603 = vmatmul.mubr.f32.gmra.mrb[44].mxu0 %v2746_v25  ;;  %795 = vmatmul.mubr.f32.gmra.mrb[44].mxu1 %v162_v27  ;;  %v2776_v27 = vld [vmem:[#allocation2 + $0x1b0] sm:$0xff] }
  0xd3   :  { %608 = vmatprep.mubr.f32.mxu0 %v2748_v28  ;;  %800 = vmatprep.mubr.f32.mxu1 %v165_v29  ;;  %3366 = vst [vmem:[#allocation12_spill] sm:$0xff] %v2776_v27  ;;  %v172_v29 = vld [vmem:[#allocation2 + $0x3b0] sm:$0xff] }
  0xd6   :  { %609 = vmatmul.mubr.f32.gmra.mrb[46].mxu0 %v2752_v31  ;;  %801 = vmatmul.mubr.f32.gmra.mrb[46].mxu1 %v164_v35  ;;  %v2778_v35 = vld [vmem:[#allocation2 + $0x1c8] sm:$0xff] }
  0xd7   :  { %614 = vmatprep.mubr.f32.mxu0 %v2754_v36  ;;  %806 = vmatprep.mubr.f32.mxu1 %v167_v37  ;;  %3367 = vst [vmem:[#allocation13_spill] sm:$0xff] %v2778_v35  ;;  %v175_v37 = vld [vmem:[#allocation2 + $0x3c8] sm:$0xff] }
  0xda   :  { %615 = vmatmul.mubr.f32.gmra.mrb[48].mxu0 %v2758_v43  ;;  %807 = vmatmul.mubr.f32.gmra.mrb[48].mxu1 %v166_v45  ;;  %v2782_v45 = vld [vmem:[#allocation2 + $0x1c0] sm:$0xff] }
  0xdb   :  { %620 = vmatprep.mubr.f32.mxu0 %v2760_v53  ;;  %812 = vmatprep.mubr.f32.mxu1 %v169_v55  ;;  %3368 = vst [vmem:[#allocation14_spill] sm:$0xff] %v2782_v45  ;;  %v174_v55 = vld [vmem:[#allocation2 + $0x3c0] sm:$0xff] }
  0xde   :  { %621 = vmatmul.mubr.f32.gmra.mrb[50].mxu0 %v2764_v57  ;;  %813 = vmatmul.mubr.f32.gmra.mrb[50].mxu1 %v168_v59  ;;  %v2784_v59 = vld [vmem:[#allocation2 + $0x1d8] sm:$0xff] }
  0xdf   :  { %626 = vmatprep.mubr.f32.mxu0 %v2766_v3  ;;  %818 = vmatprep.mubr.f32.mxu1 %v171_v7  ;;  %3369 = vst [vmem:[#allocation15_spill] sm:$0xff] %v2784_v59  ;;  %v177_v7 = vld [vmem:[#allocation2 + $0x3d8] sm:$0xff] }
  0xe2   :  { %627 = vmatmul.mubr.f32.gmra.mrb[52].mxu0 %v2770_v9  ;;  %819 = vmatmul.mubr.f32.gmra.mrb[52].mxu1 %v170_v13  ;;  %v2788_v13 = vld [vmem:[#allocation2 + $0x1d0] sm:$0xff] }
  0xe3   :  { %632 = vmatprep.mubr.f32.mxu0 %v2772_v15  ;;  %824 = vmatprep.mubr.f32.mxu1 %v173_v21  ;;  %v176_v21 = vld [vmem:[#allocation2 + $0x3d0] sm:$0xff] }
  0xe6   :  { %633 = vmatmul.mubr.f32.gmra.mrb[54].mxu0 %v2776_v27  ;;  %825 = vmatmul.mubr.f32.gmra.mrb[54].mxu1 %v172_v29  ;;  %v2790_v27 = vld [vmem:[#allocation2 + $0x1e8] sm:$0xff] }
  0xe7   :  { %638 = vmatprep.mubr.f32.mxu0 %v2778_v35  ;;  %830 = vmatprep.mubr.f32.mxu1 %v175_v37  ;;  %v179_v29 = vld [vmem:[#allocation2 + $0x3e8] sm:$0xff]  ;;  %v2794_v37 = vld [vmem:[#allocation2 + $0x1e0] sm:$0xff] }
  0xe8   :  { %v178_v35 = vld [vmem:[#allocation2 + $0x3e0] sm:$0xff] }
  0xea   :  { %639 = vmatmul.mubr.f32.gmra.mrb[56].mxu0 %v2782_v45  ;;  %831 = vmatmul.mubr.f32.gmra.mrb[56].mxu1 %v174_v55  ;;  %v2796_v45 = vld [vmem:[#allocation2 + $0x1f8] sm:$0xff] }
  0xeb   :  { %644 = vmatprep.mubr.f32.mxu0 %v2784_v59  ;;  %836 = vmatprep.mubr.f32.mxu1 %v177_v7  ;;  %v181_v55 = vld [vmem:[#allocation2 + $0x3f8] sm:$0xff]  ;;  %v2800_v7 = vld [vmem:[#allocation2 + $0x1f0] sm:$0xff] }
  0xec   :  { %v180_v59 = vld [vmem:[#allocation2 + $0x3f0] sm:$0xff] }
  0xee   :  { %645 = vmatmul.mubr.f32.gmra.mrb[58].mxu0 %v2788_v13  ;;  %837 = vmatmul.mubr.f32.gmra.mrb[58].mxu1 %v176_v21  ;;  %v2387_v21 = vld [vmem:[#allocation2 + $0x8] sm:$0xff] }
  0xef   :  { %650 = vmatprep.mubr.f32.mxu0 %v2790_v27  ;;  %842 = vmatprep.mubr.f32.mxu1 %v179_v29 }
  0xf2   :  { %651 = vmatmul.mubr.f32.gmra.mrb[60].mxu0 %v2794_v37  ;;  %843 = vmatmul.mubr.f32.gmra.mrb[60].mxu1 %v178_v35 }
  0xf3   :  { %656 = vmatprep.mubr.f32.mxu0 %v2796_v45  ;;  %848 = vmatprep.mubr.f32.mxu1 %v181_v55 }
  0xf6   :  { %657 = vmatmul.mubr.f32.gmra.mrb[62].mxu0 %v2800_v7  ;;  %849 = vmatmul.mubr.f32.gmra.mrb[62].mxu1 %v180_v59 }
  0xf7   :  { %919 = vmatprep.mubr.f32.mxu1 %v2387_v21  ;;  %1368 = vmatprep.mubr.f32.mxu0 %v2387_v21 }
  0xfa   :  { %920 = vmatmul.mubr.f32.vlgmr.msra.gmra.mrb[64].mxu1 %v2614_v48  ;;  %1369 = vmatmul.mubr.f32.vlgmr.msra.gmra.mrb[64].mxu0 %v2614_v48  ;;  %v376_v48 = vlaneseq }
  0xfb   :  { %925 = vmatprep.mubr.f32.mxu1 %v2616_v52  ;;  %1374 = vmatprep.mubr.f32.mxu0 %v2616_v52 }
  0xfc   :  { %v2877_v52 = vshrl.u32 %v376_v48, 7 }
  0xfe   :  { %926 = vmatmul.mubr.f32.gmra.mrb[66].mxu1 %v2619_v0  ;;  %1375 = vmatmul.mubr.f32.gmra.mrb[66].mxu0 %v2619_v0  ;;  %v378_v0 = vsub.s32 0, %v2877_v52 }
  0xff   :  { %931 = vmatprep.mubr.f32.mxu1 %v2621_v2  ;;  %1380 = vmatprep.mubr.f32.mxu0 %v2621_v2  ;;  %v2886_v2 = vld [vmem:[#allocation7] sm:$0x3f] }
 0x102   :  { %932 = vmatmul.mubr.f32.gmra.mrb[68].mxu1 %v2626_v16  ;;  %1381 = vmatmul.mubr.f32.gmra.mrb[68].mxu0 %v2626_v16  ;;  %v382_v16 = vsub.s32 1, %v2877_v52 }
 0x103   :  { %937 = vmatprep.mubr.f32.mxu1 %v2628_v18  ;;  %1386 = vmatprep.mubr.f32.mxu0 %v2628_v18  ;;  %v2892_v18 = vrot.slane %v2886_v2, %v378_v0 }
 0x106   :  { %938 = vmatmul.mubr.f32.gmra.mrb[70].mxu1 %v2632_v32  ;;  %1387 = vmatmul.mubr.f32.gmra.mrb[70].mxu0 %v2632_v32  ;;  %v2897_v32 = vrot.slane %v2886_v2, %v382_v16 }
 0x107   :  { %943 = vmatprep.mubr.f32.mxu1 %v2634_v34  ;;  %1392 = vmatprep.mubr.f32.mxu0 %v2634_v34 }
 0x10a   :  { %944 = vmatmul.mubr.f32.gmra.mrb[72].mxu1 %v2638_v49  ;;  %1393 = vmatmul.mubr.f32.gmra.mrb[72].mxu0 %v2638_v49 }
 0x10b   :  { %949 = vmatprep.mubr.f32.mxu1 %v2640_v51  ;;  %1398 = vmatprep.mubr.f32.mxu0 %v2640_v51 }
 0x10e   :  { %950 = vmatmul.mubr.f32.gmra.mrb[74].mxu1 %v2644_v4  ;;  %1399 = vmatmul.mubr.f32.gmra.mrb[74].mxu0 %v2644_v4 }
 0x10f   :  { %955 = vmatprep.mubr.f32.mxu1 %v2646_v6  ;;  %1404 = vmatprep.mubr.f32.mxu0 %v2646_v6 }
 0x112   :  { %956 = vmatmul.mubr.f32.gmra.mrb[76].mxu1 %v2650_v22  ;;  %1405 = vmatmul.mubr.f32.gmra.mrb[76].mxu0 %v2650_v22 }
 0x113   :  { %961 = vmatprep.mubr.f32.mxu1 %v2652_v24  ;;  %1410 = vmatprep.mubr.f32.mxu0 %v2652_v24 }
 0x116   :  { %962 = vmatmul.mubr.f32.gmra.mrb[78].mxu1 %v2656_v40  ;;  %1411 = vmatmul.mubr.f32.gmra.mrb[78].mxu0 %v2656_v40 }
 0x117   :  { %967 = vmatprep.mubr.f32.mxu1 %v2658_v42  ;;  %1416 = vmatprep.mubr.f32.mxu0 %v2658_v42 }
 0x11a   :  { %968 = vmatmul.mubr.f32.gmra.mrb[80].mxu1 %v2662_v60  ;;  %1417 = vmatmul.mubr.f32.gmra.mrb[80].mxu0 %v2662_v60 }
 0x11b   :  { %973 = vmatprep.mubr.f32.mxu1 %v2664_v62  ;;  %1422 = vmatprep.mubr.f32.mxu0 %v2664_v62 }
 0x11e   :  { %974 = vmatmul.mubr.f32.gmra.mrb[82].mxu1 %v2668_v17  ;;  %1423 = vmatmul.mubr.f32.gmra.mrb[82].mxu0 %v2668_v17 }
 0x11f   :  { %979 = vmatprep.mubr.f32.mxu1 %v2670_v20  ;;  %1428 = vmatprep.mubr.f32.mxu0 %v2670_v20 }
 0x122   :  { %980 = vmatmul.mubr.f32.gmra.mrb[84].mxu1 %v2674_v38  ;;  %1429 = vmatmul.mubr.f32.gmra.mrb[84].mxu0 %v2674_v38 }
 0x123   :  { %985 = vmatprep.mubr.f32.mxu1 %v2676_v41  ;;  %1434 = vmatprep.mubr.f32.mxu0 %v2676_v41 }
 0x126   :  { %986 = vmatmul.mubr.f32.gmra.mrb[86].mxu1 %v2680_v61  ;;  %1435 = vmatmul.mubr.f32.gmra.mrb[86].mxu0 %v2680_v61 }
 0x127   :  { %991 = vmatprep.mubr.f32.mxu1 %v2682_v1  ;;  %1440 = vmatprep.mubr.f32.mxu0 %v2682_v1 }
 0x12a   :  { %992 = vmatmul.mubr.f32.gmra.mrb[88].mxu1 %v2686_v23  ;;  %1441 = vmatmul.mubr.f32.gmra.mrb[88].mxu0 %v2686_v23 }
 0x12b   :  { %997 = vmatprep.mubr.f32.mxu1 %v2688_v26  ;;  %1446 = vmatprep.mubr.f32.mxu0 %v2688_v26 }
 0x12e   :  { %998 = vmatmul.mubr.f32.gmra.mrb[90].mxu1 %v2692_v46  ;;  %1447 = vmatmul.mubr.f32.gmra.mrb[90].mxu0 %v2692_v46 }
 0x12f   :  { %1003 = vmatprep.mubr.f32.mxu1 %v2694_v50  ;;  %1452 = vmatprep.mubr.f32.mxu0 %v2694_v50 }
 0x132   :  { %1004 = vmatmul.mubr.f32.gmra.mrb[92].mxu1 %v2698_v10  ;;  %1453 = vmatmul.mubr.f32.gmra.mrb[92].mxu0 %v2698_v10 }
 0x133   :  { %1009 = vmatprep.mubr.f32.mxu1 %v2700_v12  ;;  %1458 = vmatprep.mubr.f32.mxu0 %v2700_v12 }
 0x136   :  { %1010 = vmatmul.mubr.f32.gmra.mrb[94].mxu1 %v2704_v30  ;;  %1459 = vmatmul.mubr.f32.gmra.mrb[94].mxu0 %v2704_v30 }
 0x137   :  { %1015 = vmatprep.mubr.f32.mxu1 %v2706_v33  ;;  %1464 = vmatprep.mubr.f32.mxu0 %v2706_v33 }
 0x13a   :  { %1016 = vmatmul.mubr.f32.gmra.mrb[96].mxu1 %v2710_v39  ;;  %1465 = vmatmul.mubr.f32.gmra.mrb[96].mxu0 %v2710_v39 }
 0x13b   :  { %1021 = vmatprep.mubr.f32.mxu1 %v2712_v44  ;;  %1470 = vmatprep.mubr.f32.mxu0 %v2712_v44 }
 0x13e   :  { %1022 = vmatmul.mubr.f32.gmra.mrb[98].mxu1 %v2716_v47  ;;  %1471 = vmatmul.mubr.f32.gmra.mrb[98].mxu0 %v2716_v47 }
 0x13f   :  { %1027 = vmatprep.mubr.f32.mxu1 %v2718_v54  ;;  %1476 = vmatprep.mubr.f32.mxu0 %v2718_v54 }
 0x142   :  { %1028 = vmatmul.mubr.f32.gmra.mrb[100].mxu1 %v2722_v56  ;;  %1477 = vmatmul.mubr.f32.gmra.mrb[100].mxu0 %v2722_v56 }
 0x143   :  { %1033 = vmatprep.mubr.f32.mxu1 %v2724_v58  ;;  %1482 = vmatprep.mubr.f32.mxu0 %v2724_v58 }
 0x146   :  { %1034 = vmatmul.mubr.f32.gmra.mrb[102].mxu1 %v2728_v63  ;;  %1483 = vmatmul.mubr.f32.gmra.mrb[102].mxu0 %v2728_v63 }
 0x147   :  { %1039 = vmatprep.mubr.f32.mxu1 %v2730_v5  ;;  %1488 = vmatprep.mubr.f32.mxu0 %v2730_v5 }
 0x14a   :  { %1040 = vmatmul.mubr.f32.gmra.mrb[104].mxu1 %v2734_v8  ;;  %1489 = vmatmul.mubr.f32.gmra.mrb[104].mxu0 %v2734_v8 }
 0x14b   :  { %1045 = vmatprep.mubr.f32.mxu1 %v2736_v11  ;;  %1494 = vmatprep.mubr.f32.mxu0 %v2736_v11 }
 0x14d   :  { %v472_v34 = vpop.f32.mrb[0].mxu0  ;;  %v664_v49 = vpop.f32.mrb[0].mxu1 }
 0x14e   :  { %v473_v51 = vadd.f32 %v472_v34, %v2892_v18  ;;  %v665_v4 = vadd.f32 %v664_v49, %v2892_v18  ;;  %v474_v6 = vpop.f32.mrb[1].mxu0  ;;  %v666_v22 = vpop.f32.mrb[1].mxu1  ;;  %1046 = vmatmul.mubr.f32.gmra.mrb[106].mxu1 %v2740_v14  ;;  %1495 = vmatmul.mubr.f32.gmra.mrb[106].mxu0 %v2740_v14  ;;  %v3370_v34 = vld [vmem:[#allocation12_spill] sm:$0xff] }
 0x14f   :  { %v475_v24 = vadd.f32 %v474_v6, %v2897_v32  ;;  %v667_v40 = vadd.f32 %v666_v22, %v2897_v32  ;;  %1051 = vmatprep.mubr.f32.mxu1 %v2742_v19  ;;  %1500 = vmatprep.mubr.f32.mxu0 %v2742_v19 }
 0x150   :  { %1753 = vst [vmem:[#allocation8] sm:$0xff] %v473_v51  ;;  %1945 = vst [vmem:[#allocation8 + $0x600] sm:$0xff] %v665_v4  ;;  %v3371_v51 = vld [vmem:[#allocation13_spill] sm:$0xff] }
 0x151   :  { %1754 = vst [vmem:[#allocation8 + $0x8] sm:$0xff] %v475_v24  ;;  %1946 = vst [vmem:[#allocation8 + $0x608] sm:$0xff] %v667_v40  ;;  %v478_v42 = vpop.f32.mrb[2].mxu0  ;;  %v670_v60 = vpop.f32.mrb[2].mxu1 }
 0x152   :  { %v479_v62 = vadd.f32 %v478_v42, %v2892_v18  ;;  %v671_v17 = vadd.f32 %v670_v60, %v2892_v18  ;;  %v480_v20 = vpop.f32.mrb[3].mxu0  ;;  %v672_v38 = vpop.f32.mrb[3].mxu1  ;;  %1052 = vmatmul.mubr.f32.gmra.mrb[108].mxu1 %v2746_v25  ;;  %1501 = vmatmul.mubr.f32.gmra.mrb[108].mxu0 %v2746_v25  ;;  %v3372_v60 = vld [vmem:[#allocation14_spill] sm:$0xff] }
 0x153   :  { %v481_v41 = vadd.f32 %v480_v20, %v2897_v32  ;;  %v673_v61 = vadd.f32 %v672_v38, %v2897_v32  ;;  %1057 = vmatprep.mubr.f32.mxu1 %v2748_v28  ;;  %1506 = vmatprep.mubr.f32.mxu0 %v2748_v28  ;;  %v3373_v20 = vld [vmem:[#allocation15_spill] sm:$0xff] }
 0x154   :  { %1759 = vst [vmem:[#allocation8 + $0x30] sm:$0xff] %v479_v62  ;;  %1951 = vst [vmem:[#allocation8 + $0x630] sm:$0xff] %v671_v17 }
 0x155   :  { %1760 = vst [vmem:[#allocation8 + $0x38] sm:$0xff] %v481_v41  ;;  %1952 = vst [vmem:[#allocation8 + $0x638] sm:$0xff] %v673_v61  ;;  %v484_v1 = vpop.f32.mrb[4].mxu0  ;;  %v676_v23 = vpop.f32.mrb[4].mxu1 }
 0x156   :  { %v485_v26 = vadd.f32 %v484_v1, %v2892_v18  ;;  %v677_v46 = vadd.f32 %v676_v23, %v2892_v18  ;;  %v486_v50 = vpop.f32.mrb[5].mxu0  ;;  %v678_v10 = vpop.f32.mrb[5].mxu1  ;;  %1058 = vmatmul.mubr.f32.gmra.mrb[110].mxu1 %v2752_v31  ;;  %1507 = vmatmul.mubr.f32.gmra.mrb[110].mxu0 %v2752_v31 }
 0x157   :  { %v487_v12 = vadd.f32 %v486_v50, %v2897_v32  ;;  %v679_v30 = vadd.f32 %v678_v10, %v2897_v32  ;;  %1063 = vmatprep.mubr.f32.mxu1 %v2754_v36  ;;  %1512 = vmatprep.mubr.f32.mxu0 %v2754_v36 }
 0x158   :  { %1765 = vst [vmem:[#allocation8 + $0x60] sm:$0xff] %v485_v26  ;;  %1957 = vst [vmem:[#allocation8 + $0x660] sm:$0xff] %v677_v46 }
 0x159   :  { %1766 = vst [vmem:[#allocation8 + $0x68] sm:$0xff] %v487_v12  ;;  %1958 = vst [vmem:[#allocation8 + $0x668] sm:$0xff] %v679_v30  ;;  %v490_v33 = vpop.f32.mrb[6].mxu0  ;;  %v682_v39 = vpop.f32.mrb[6].mxu1 }
 0x15a   :  { %v491_v44 = vadd.f32 %v490_v33, %v2892_v18  ;;  %v683_v47 = vadd.f32 %v682_v39, %v2892_v18  ;;  %v492_v54 = vpop.f32.mrb[7].mxu0  ;;  %v684_v56 = vpop.f32.mrb[7].mxu1  ;;  %1064 = vmatmul.mubr.f32.gmra.mrb[112].mxu1 %v2758_v43  ;;  %1513 = vmatmul.mubr.f32.gmra.mrb[112].mxu0 %v2758_v43 }
 0x15b   :  { %v493_v58 = vadd.f32 %v492_v54, %v2897_v32  ;;  %v685_v63 = vadd.f32 %v684_v56, %v2897_v32  ;;  %1069 = vmatprep.mubr.f32.mxu1 %v2760_v53  ;;  %1518 = vmatprep.mubr.f32.mxu0 %v2760_v53 }
 0x15c   :  { %1771 = vst [vmem:[#allocation8 + $0x90] sm:$0xff] %v491_v44  ;;  %1963 = vst [vmem:[#allocation8 + $0x690] sm:$0xff] %v683_v47 }
 0x15d   :  { %1772 = vst [vmem:[#allocation8 + $0x98] sm:$0xff] %v493_v58  ;;  %1964 = vst [vmem:[#allocation8 + $0x698] sm:$0xff] %v685_v63  ;;  %v496_v5 = vpop.f32.mrb[8].mxu0  ;;  %v688_v8 = vpop.f32.mrb[8].mxu1 }
 0x15e   :  { %v497_v11 = vadd.f32 %v496_v5, %v2892_v18  ;;  %v689_v14 = vadd.f32 %v688_v8, %v2892_v18  ;;  %v498_v19 = vpop.f32.mrb[9].mxu0  ;;  %v690_v25 = vpop.f32.mrb[9].mxu1  ;;  %1070 = vmatmul.mubr.f32.gmra.mrb[114].mxu1 %v2764_v57  ;;  %1519 = vmatmul.mubr.f32.gmra.mrb[114].mxu0 %v2764_v57  ;;  %v2388_v8 = vld [vmem:[#allocation2 + $0x208] sm:$0xff] }
 0x15f   :  { %v499_v28 = vadd.f32 %v498_v19, %v2897_v32  ;;  %v691_v31 = vadd.f32 %v690_v25, %v2897_v32  ;;  %1075 = vmatprep.mubr.f32.mxu1 %v2766_v3  ;;  %1524 = vmatprep.mubr.f32.mxu0 %v2766_v3 }
 0x160   :  { %1777 = vst [vmem:[#allocation8 + $0xc0] sm:$0xff] %v497_v11  ;;  %1969 = vst [vmem:[#allocation8 + $0x6c0] sm:$0xff] %v689_v14 }
 0x161   :  { %1778 = vst [vmem:[#allocation8 + $0xc8] sm:$0xff] %v499_v28  ;;  %1970 = vst [vmem:[#allocation8 + $0x6c8] sm:$0xff] %v691_v31  ;;  %v502_v36 = vpop.f32.mrb[10].mxu0  ;;  %v694_v43 = vpop.f32.mrb[10].mxu1 }
 0x162   :  { %v503_v53 = vadd.f32 %v502_v36, %v2892_v18  ;;  %v695_v35 = vadd.f32 %v694_v43, %v2892_v18  ;;  %v504_v59 = vpop.f32.mrb[11].mxu0  ;;  %v696_v57 = vpop.f32.mrb[11].mxu1  ;;  %1076 = vmatmul.mubr.f32.gmra.mrb[116].mxu1 %v2770_v9  ;;  %1525 = vmatmul.mubr.f32.gmra.mrb[116].mxu0 %v2770_v9 }
 0x163   :  { %v505_v29 = vadd.f32 %v504_v59, %v2897_v32  ;;  %v697_v3 = vadd.f32 %v696_v57, %v2897_v32  ;;  %1081 = vmatprep.mubr.f32.mxu1 %v2772_v15  ;;  %1530 = vmatprep.mubr.f32.mxu0 %v2772_v15 }
 0x164   :  { %1783 = vst [vmem:[#allocation8 + $0xf0] sm:$0xff] %v503_v53  ;;  %1975 = vst [vmem:[#allocation8 + $0x6f0] sm:$0xff] %v695_v35  ;;  %v2390_v53 = vld [vmem:[#allocation2 + $0x218] sm:$0xff] }
 0x165   :  { %1784 = vst [vmem:[#allocation8 + $0xf8] sm:$0xff] %v505_v29  ;;  %1976 = vst [vmem:[#allocation8 + $0x6f8] sm:$0xff] %v697_v3  ;;  %v508_v55 = vpop.f32.mrb[12].mxu0  ;;  %v700_v21 = vpop.f32.mrb[12].mxu1 }
 0x166   :  { %v509_v48 = vadd.f32 %v508_v55, %v2892_v18  ;;  %v701_v0 = vadd.f32 %v700_v21, %v2892_v18  ;;  %v510_v16 = vpop.f32.mrb[13].mxu0  ;;  %v702_v9 = vpop.f32.mrb[13].mxu1  ;;  %1082 = vmatmul.mubr.f32.gmra.mrb[118].mxu1 %v3370_v34  ;;  %1531 = vmatmul.mubr.f32.gmra.mrb[118].mxu0 %v3370_v34  ;;  %v2391_v21 = vld [vmem:[#allocation2 + $0x210] sm:$0xff] }
 0x167   :  { %v511_v49 = vadd.f32 %v510_v16, %v2897_v32  ;;  %v703_v15 = vadd.f32 %v702_v9, %v2897_v32  ;;  %1087 = vmatprep.mubr.f32.mxu1 %v3371_v51  ;;  %1536 = vmatprep.mubr.f32.mxu0 %v3371_v51  ;;  %v2392_v16 = vld [vmem:[#allocation2 + $0x228] sm:$0xff] }
 0x168   :  { %1789 = vst [vmem:[#allocation8 + $0x120] sm:$0xff] %v509_v48  ;;  %1981 = vst [vmem:[#allocation8 + $0x720] sm:$0xff] %v701_v0 }
 0x169   :  { %1790 = vst [vmem:[#allocation8 + $0x128] sm:$0xff] %v511_v49  ;;  %1982 = vst [vmem:[#allocation8 + $0x728] sm:$0xff] %v703_v15  ;;  %v514_v4 = vpop.f32.mrb[14].mxu0  ;;  %v706_v6 = vpop.f32.mrb[14].mxu1 }
 0x16a   :  { %v515_v22 = vadd.f32 %v514_v4, %v2892_v18  ;;  %v707_v24 = vadd.f32 %v706_v6, %v2892_v18  ;;  %v516_v40 = vpop.f32.mrb[15].mxu0  ;;  %v708_v42 = vpop.f32.mrb[15].mxu1  ;;  %1088 = vmatmul.mubr.f32.gmra.mrb[120].mxu1 %v3372_v60  ;;  %1537 = vmatmul.mubr.f32.gmra.mrb[120].mxu0 %v3372_v60  ;;  %v2393_v6 = vld [vmem:[#allocation2 + $0x220] sm:$0xff] }
 0x16b   :  { %v517_v62 = vadd.f32 %v516_v40, %v2897_v32  ;;  %v709_v17 = vadd.f32 %v708_v42, %v2897_v32  ;;  %1093 = vmatprep.mubr.f32.mxu1 %v3373_v20  ;;  %1542 = vmatprep.mubr.f32.mxu0 %v3373_v20  ;;  %v2394_v40 = vld [vmem:[#allocation2 + $0x238] sm:$0xff] }
 0x16c   :  { %1795 = vst [vmem:[#allocation8 + $0x150] sm:$0xff] %v515_v22  ;;  %1987 = vst [vmem:[#allocation8 + $0x750] sm:$0xff] %v707_v24 }
 0x16d   :  { %1796 = vst [vmem:[#allocation8 + $0x158] sm:$0xff] %v517_v62  ;;  %1988 = vst [vmem:[#allocation8 + $0x758] sm:$0xff] %v709_v17  ;;  %v520_v38 = vpop.f32.mrb[16].mxu0  ;;  %v712_v41 = vpop.f32.mrb[16].mxu1 }
 0x16e   :  { %v521_v61 = vadd.f32 %v520_v38, %v2892_v18  ;;  %v713_v1 = vadd.f32 %v712_v41, %v2892_v18  ;;  %v522_v23 = vpop.f32.mrb[17].mxu0  ;;  %v714_v26 = vpop.f32.mrb[17].mxu1  ;;  %1094 = vmatmul.mubr.f32.gmra.mrb[122].mxu1 %v2788_v13  ;;  %1543 = vmatmul.mubr.f32.gmra.mrb[122].mxu0 %v2788_v13  ;;  %v2395_v41 = vld [vmem:[#allocation2 + $0x230] sm:$0xff] }
 0x16f   :  { %v523_v46 = vadd.f32 %v522_v23, %v2897_v32  ;;  %v715_v50 = vadd.f32 %v714_v26, %v2897_v32  ;;  %1099 = vmatprep.mubr.f32.mxu1 %v2790_v27  ;;  %1548 = vmatprep.mubr.f32.mxu0 %v2790_v27  ;;  %v2396_v23 = vld [vmem:[#allocation2 + $0x248] sm:$0xff] }
 0x170   :  { %1801 = vst [vmem:[#allocation8 + $0x180] sm:$0xff] %v521_v61  ;;  %1993 = vst [vmem:[#allocation8 + $0x780] sm:$0xff] %v713_v1 }
 0x171   :  { %1802 = vst [vmem:[#allocation8 + $0x188] sm:$0xff] %v523_v46  ;;  %1994 = vst [vmem:[#allocation8 + $0x788] sm:$0xff] %v715_v50  ;;  %v526_v10 = vpop.f32.mrb[18].mxu0  ;;  %v718_v12 = vpop.f32.mrb[18].mxu1 }
 0x172   :  { %v527_v30 = vadd.f32 %v526_v10, %v2892_v18  ;;  %v719_v33 = vadd.f32 %v718_v12, %v2892_v18  ;;  %v528_v39 = vpop.f32.mrb[19].mxu0  ;;  %v720_v13 = vpop.f32.mrb[19].mxu1  ;;  %1100 = vmatmul.mubr.f32.gmra.mrb[124].mxu1 %v2794_v37  ;;  %1549 = vmatmul.mubr.f32.gmra.mrb[124].mxu0 %v2794_v37 }
 0x173   :  { %v529_v44 = vadd.f32 %v528_v39, %v2897_v32  ;;  %v721_v27 = vadd.f32 %v720_v13, %v2897_v32  ;;  %1105 = vmatprep.mubr.f32.mxu1 %v2796_v45  ;;  %1554 = vmatprep.mubr.f32.mxu0 %v2796_v45 }
 0x174   :  { %1807 = vst [vmem:[#allocation8 + $0x1b0] sm:$0xff] %v527_v30  ;;  %1999 = vst [vmem:[#allocation8 + $0x7b0] sm:$0xff] %v719_v33  ;;  %v2397_v33 = vld [vmem:[#allocation2 + $0x240] sm:$0xff] }
 0x175   :  { %1808 = vst [vmem:[#allocation8 + $0x1b8] sm:$0xff] %v529_v44  ;;  %2000 = vst [vmem:[#allocation8 + $0x7b8] sm:$0xff] %v721_v27  ;;  %v532_v47 = vpop.f32.mrb[20].mxu0  ;;  %v724_v54 = vpop.f32.mrb[20].mxu1  ;;  %v2398_v44 = vld [vmem:[#allocation2 + $0x258] sm:$0xff] }
 0x176   :  { %v533_v56 = vadd.f32 %v532_v47, %v2892_v18  ;;  %v725_v58 = vadd.f32 %v724_v54, %v2892_v18  ;;  %v534_v63 = vpop.f32.mrb[21].mxu0  ;;  %v726_v37 = vpop.f32.mrb[21].mxu1  ;;  %1106 = vmatmul.mubr.f32.gmra.mrb[126].mxu1 %v2800_v7  ;;  %1555 = vmatmul.mubr.f32.gmra.mrb[126].mxu0 %v2800_v7  ;;  %v2389_v7 = vld [vmem:[#allocation2 + $0x200] sm:$0xff] }
 0x177   :  { %v535_v5 = vadd.f32 %v534_v63, %v2897_v32  ;;  %v727_v45 = vadd.f32 %v726_v37, %v2897_v32  ;;  %1111 = vmatprep.mubr.f32.mxu1 %v2388_v8  ;;  %1560 = vmatprep.mubr.f32.mxu0 %v2388_v8  ;;  %v2399_v37 = vld [vmem:[#allocation2 + $0x250] sm:$0xff]  ;;  %v2400_v8 = vld [vmem:[#allocation2 + $0x268] sm:$0xff] }
 0x178   :  { %1813 = vst [vmem:[#allocation8 + $0x1e0] sm:$0xff] %v533_v56  ;;  %2005 = vst [vmem:[#allocation8 + $0x7e0] sm:$0xff] %v725_v58 }
 0x179   :  { %1814 = vst [vmem:[#allocation8 + $0x1e8] sm:$0xff] %v535_v5  ;;  %2006 = vst [vmem:[#allocation8 + $0x7e8] sm:$0xff] %v727_v45  ;;  %v538_v11 = vpop.f32.mrb[22].mxu0  ;;  %v730_v14 = vpop.f32.mrb[22].mxu1 }
 0x17a   :  { %v539_v19 = vadd.f32 %v538_v11, %v2892_v18  ;;  %v731_v25 = vadd.f32 %v730_v14, %v2892_v18  ;;  %v540_v28 = vpop.f32.mrb[23].mxu0  ;;  %v732_v31 = vpop.f32.mrb[23].mxu1  ;;  %1112 = vmatmul.mubr.f32.gmra.mrb[128].mxu1 %v2389_v7  ;;  %1561 = vmatmul.mubr.f32.gmra.mrb[128].mxu0 %v2389_v7  ;;  %v2401_v7 = vld [vmem:[#allocation2 + $0x260] sm:$0xff] }
 0x17b   :  { %v541_v36 = vadd.f32 %v540_v28, %v2897_v32  ;;  %v733_v43 = vadd.f32 %v732_v31, %v2897_v32  ;;  %1117 = vmatprep.mubr.f32.mxu1 %v2390_v53  ;;  %1566 = vmatprep.mubr.f32.mxu0 %v2390_v53  ;;  %v2402_v53 = vld [vmem:[#allocation2 + $0x278] sm:$0xff] }
 0x17c   :  { %1819 = vst [vmem:[#allocation8 + $0x210] sm:$0xff] %v539_v19  ;;  %2011 = vst [vmem:[#allocation8 + $0x810] sm:$0xff] %v731_v25 }
 0x17d   :  { %1820 = vst [vmem:[#allocation8 + $0x218] sm:$0xff] %v541_v36  ;;  %2012 = vst [vmem:[#allocation8 + $0x818] sm:$0xff] %v733_v43  ;;  %v544_v35 = vpop.f32.mrb[24].mxu0  ;;  %v736_v59 = vpop.f32.mrb[24].mxu1 }
 0x17e   :  { %v545_v57 = vadd.f32 %v544_v35, %v2892_v18  ;;  %v737_v29 = vadd.f32 %v736_v59, %v2892_v18  ;;  %v546_v3 = vpop.f32.mrb[25].mxu0  ;;  %v738_v55 = vpop.f32.mrb[25].mxu1  ;;  %1118 = vmatmul.mubr.f32.gmra.mrb[130].mxu1 %v2391_v21  ;;  %1567 = vmatmul.mubr.f32.gmra.mrb[130].mxu0 %v2391_v21  ;;  %v2403_v21 = vld [vmem:[#allocation2 + $0x270] sm:$0xff] }
 0x17f   :  { %v547_v48 = vadd.f32 %v546_v3, %v2897_v32  ;;  %v739_v0 = vadd.f32 %v738_v55, %v2897_v32  ;;  %1123 = vmatprep.mubr.f32.mxu1 %v2392_v16  ;;  %1572 = vmatprep.mubr.f32.mxu0 %v2392_v16  ;;  %v2404_v16 = vld [vmem:[#allocation2 + $0x288] sm:$0xff] }
 0x180   :  { %1825 = vst [vmem:[#allocation8 + $0x240] sm:$0xff] %v545_v57  ;;  %2017 = vst [vmem:[#allocation8 + $0x840] sm:$0xff] %v737_v29 }
 0x181   :  { %1826 = vst [vmem:[#allocation8 + $0x248] sm:$0xff] %v547_v48  ;;  %2018 = vst [vmem:[#allocation8 + $0x848] sm:$0xff] %v739_v0  ;;  %v550_v9 = vpop.f32.mrb[26].mxu0  ;;  %v742_v34 = vpop.f32.mrb[26].mxu1 }
 0x182   :  { %v551_v49 = vadd.f32 %v550_v9, %v2892_v18  ;;  %v743_v15 = vadd.f32 %v742_v34, %v2892_v18  ;;  %v552_v51 = vpop.f32.mrb[27].mxu0  ;;  %v744_v4 = vpop.f32.mrb[27].mxu1  ;;  %1124 = vmatmul.mubr.f32.gmra.mrb[132].mxu1 %v2393_v6  ;;  %1573 = vmatmul.mubr.f32.gmra.mrb[132].mxu0 %v2393_v6  ;;  %v2405_v6 = vld [vmem:[#allocation2 + $0x280] sm:$0xff] }
 0x183   :  { %v553_v22 = vadd.f32 %v552_v51, %v2897_v32  ;;  %v745_v24 = vadd.f32 %v744_v4, %v2897_v32  ;;  %1129 = vmatprep.mubr.f32.mxu1 %v2394_v40  ;;  %1578 = vmatprep.mubr.f32.mxu0 %v2394_v40  ;;  %v2406_v40 = vld [vmem:[#allocation2 + $0x298] sm:$0xff] }
 0x184   :  { %1831 = vst [vmem:[#allocation8 + $0x270] sm:$0xff] %v551_v49  ;;  %2023 = vst [vmem:[#allocation8 + $0x870] sm:$0xff] %v743_v15 }
 0x185   :  { %1832 = vst [vmem:[#allocation8 + $0x278] sm:$0xff] %v553_v22  ;;  %2024 = vst [vmem:[#allocation8 + $0x878] sm:$0xff] %v745_v24  ;;  %v556_v42 = vpop.f32.mrb[28].mxu0  ;;  %v748_v60 = vpop.f32.mrb[28].mxu1 }
 0x186   :  { %v557_v62 = vadd.f32 %v556_v42, %v2892_v18  ;;  %v749_v17 = vadd.f32 %v748_v60, %v2892_v18  ;;  %v558_v20 = vpop.f32.mrb[29].mxu0  ;;  %v750_v38 = vpop.f32.mrb[29].mxu1  ;;  %1130 = vmatmul.mubr.f32.gmra.mrb[134].mxu1 %v2395_v41  ;;  %1579 = vmatmul.mubr.f32.gmra.mrb[134].mxu0 %v2395_v41  ;;  %v2407_v41 = vld [vmem:[#allocation2 + $0x290] sm:$0xff] }
 0x187   :  { %v559_v61 = vadd.f32 %v558_v20, %v2897_v32  ;;  %v751_v1 = vadd.f32 %v750_v38, %v2897_v32  ;;  %1135 = vmatprep.mubr.f32.mxu1 %v2396_v23  ;;  %1584 = vmatprep.mubr.f32.mxu0 %v2396_v23  ;;  %v2408_v23 = vld [vmem:[#allocation2 + $0x2a8] sm:$0xff] }
 0x188   :  { %1837 = vst [vmem:[#allocation8 + $0x2a0] sm:$0xff] %v557_v62  ;;  %2029 = vst [vmem:[#allocation8 + $0x8a0] sm:$0xff] %v749_v17 }
 0x189   :  { %1838 = vst [vmem:[#allocation8 + $0x2a8] sm:$0xff] %v559_v61  ;;  %2030 = vst [vmem:[#allocation8 + $0x8a8] sm:$0xff] %v751_v1  ;;  %v562_v26 = vpop.f32.mrb[30].mxu0  ;;  %v754_v46 = vpop.f32.mrb[30].mxu1 }
 0x18a   :  { %v563_v50 = vadd.f32 %v562_v26, %v2892_v18  ;;  %v755_v10 = vadd.f32 %v754_v46, %v2892_v18  ;;  %v564_v12 = vpop.f32.mrb[31].mxu0  ;;  %v756_v30 = vpop.f32.mrb[31].mxu1  ;;  %1136 = vmatmul.mubr.f32.gmra.mrb[136].mxu1 %v2397_v33  ;;  %1585 = vmatmul.mubr.f32.gmra.mrb[136].mxu0 %v2397_v33  ;;  %v2409_v33 = vld [vmem:[#allocation2 + $0x2a0] sm:$0xff] }
 0x18b   :  { %v565_v39 = vadd.f32 %v564_v12, %v2897_v32  ;;  %v757_v13 = vadd.f32 %v756_v30, %v2897_v32  ;;  %1141 = vmatprep.mubr.f32.mxu1 %v2398_v44  ;;  %1590 = vmatprep.mubr.f32.mxu0 %v2398_v44  ;;  %v2410_v44 = vld [vmem:[#allocation2 + $0x2b8] sm:$0xff] }
 0x18c   :  { %1843 = vst [vmem:[#allocation8 + $0x2d0] sm:$0xff] %v563_v50  ;;  %2035 = vst [vmem:[#allocation8 + $0x8d0] sm:$0xff] %v755_v10 }
 0x18d   :  { %1844 = vst [vmem:[#allocation8 + $0x2d8] sm:$0xff] %v565_v39  ;;  %2036 = vst [vmem:[#allocation8 + $0x8d8] sm:$0xff] %v757_v13  ;;  %v568_v27 = vpop.f32.mrb[32].mxu0  ;;  %v760_v47 = vpop.f32.mrb[32].mxu1 }
 0x18e   :  { %v569_v54 = vadd.f32 %v568_v27, %v2892_v18  ;;  %v761_v56 = vadd.f32 %v760_v47, %v2892_v18  ;;  %v570_v58 = vpop.f32.mrb[33].mxu0  ;;  %v762_v63 = vpop.f32.mrb[33].mxu1  ;;  %1142 = vmatmul.mubr.f32.gmra.mrb[138].mxu1 %v2399_v37  ;;  %1591 = vmatmul.mubr.f32.gmra.mrb[138].mxu0 %v2399_v37  ;;  %v2411_v37 = vld [vmem:[#allocation2 + $0x2b0] sm:$0xff] }
 0x18f   :  { %v571_v5 = vadd.f32 %v570_v58, %v2897_v32  ;;  %v763_v45 = vadd.f32 %v762_v63, %v2897_v32  ;;  %1147 = vmatprep.mubr.f32.mxu1 %v2400_v8  ;;  %1596 = vmatprep.mubr.f32.mxu0 %v2400_v8  ;;  %v2412_v8 = vld [vmem:[#allocation2 + $0x2c8] sm:$0xff] }
 0x190   :  { %1849 = vst [vmem:[#allocation8 + $0x300] sm:$0xff] %v569_v54  ;;  %2041 = vst [vmem:[#allocation8 + $0x900] sm:$0xff] %v761_v56 }
 0x191   :  { %1850 = vst [vmem:[#allocation8 + $0x308] sm:$0xff] %v571_v5  ;;  %2042 = vst [vmem:[#allocation8 + $0x908] sm:$0xff] %v763_v45  ;;  %v574_v11 = vpop.f32.mrb[34].mxu0  ;;  %v766_v14 = vpop.f32.mrb[34].mxu1 }
 0x192   :  { %v575_v19 = vadd.f32 %v574_v11, %v2892_v18  ;;  %v767_v25 = vadd.f32 %v766_v14, %v2892_v18  ;;  %v576_v28 = vpop.f32.mrb[35].mxu0  ;;  %v768_v31 = vpop.f32.mrb[35].mxu1  ;;  %1148 = vmatmul.mubr.f32.gmra.mrb[140].mxu1 %v2401_v7  ;;  %1597 = vmatmul.mubr.f32.gmra.mrb[140].mxu0 %v2401_v7  ;;  %v2413_v7 = vld [vmem:[#allocation2 + $0x2c0] sm:$0xff] }
 0x193   :  { %v577_v36 = vadd.f32 %v576_v28, %v2897_v32  ;;  %v769_v43 = vadd.f32 %v768_v31, %v2897_v32  ;;  %1153 = vmatprep.mubr.f32.mxu1 %v2402_v53  ;;  %1602 = vmatprep.mubr.f32.mxu0 %v2402_v53  ;;  %v2414_v53 = vld [vmem:[#allocation2 + $0x2d8] sm:$0xff] }
 0x194   :  { %1855 = vst [vmem:[#allocation8 + $0x330] sm:$0xff] %v575_v19  ;;  %2047 = vst [vmem:[#allocation8 + $0x930] sm:$0xff] %v767_v25 }
 0x195   :  { %1856 = vst [vmem:[#allocation8 + $0x338] sm:$0xff] %v577_v36  ;;  %2048 = vst [vmem:[#allocation8 + $0x938] sm:$0xff] %v769_v43  ;;  %v580_v35 = vpop.f32.mrb[36].mxu0  ;;  %v772_v59 = vpop.f32.mrb[36].mxu1 }
 0x196   :  { %v581_v57 = vadd.f32 %v580_v35, %v2892_v18  ;;  %v773_v29 = vadd.f32 %v772_v59, %v2892_v18  ;;  %v582_v3 = vpop.f32.mrb[37].mxu0  ;;  %v774_v55 = vpop.f32.mrb[37].mxu1  ;;  %1154 = vmatmul.mubr.f32.gmra.mrb[142].mxu1 %v2403_v21  ;;  %1603 = vmatmul.mubr.f32.gmra.mrb[142].mxu0 %v2403_v21  ;;  %v2415_v21 = vld [vmem:[#allocation2 + $0x2d0] sm:$0xff] }
 0x197   :  { %v583_v48 = vadd.f32 %v582_v3, %v2897_v32  ;;  %v775_v0 = vadd.f32 %v774_v55, %v2897_v32  ;;  %1159 = vmatprep.mubr.f32.mxu1 %v2404_v16  ;;  %1608 = vmatprep.mubr.f32.mxu0 %v2404_v16  ;;  %v2416_v16 = vld [vmem:[#allocation2 + $0x2e8] sm:$0xff] }
 0x198   :  { %1861 = vst [vmem:[#allocation8 + $0x360] sm:$0xff] %v581_v57  ;;  %2053 = vst [vmem:[#allocation8 + $0x960] sm:$0xff] %v773_v29 }
 0x199   :  { %1862 = vst [vmem:[#allocation8 + $0x368] sm:$0xff] %v583_v48  ;;  %2054 = vst [vmem:[#allocation8 + $0x968] sm:$0xff] %v775_v0  ;;  %v586_v9 = vpop.f32.mrb[38].mxu0  ;;  %v778_v34 = vpop.f32.mrb[38].mxu1 }
 0x19a   :  { %v587_v49 = vadd.f32 %v586_v9, %v2892_v18  ;;  %v779_v15 = vadd.f32 %v778_v34, %v2892_v18  ;;  %v588_v51 = vpop.f32.mrb[39].mxu0  ;;  %v780_v4 = vpop.f32.mrb[39].mxu1  ;;  %1160 = vmatmul.mubr.f32.gmra.mrb[144].mxu1 %v2405_v6  ;;  %1609 = vmatmul.mubr.f32.gmra.mrb[144].mxu0 %v2405_v6  ;;  %v2417_v6 = vld [vmem:[#allocation2 + $0x2e0] sm:$0xff] }
 0x19b   :  { %v589_v22 = vadd.f32 %v588_v51, %v2897_v32  ;;  %v781_v24 = vadd.f32 %v780_v4, %v2897_v32  ;;  %1165 = vmatprep.mubr.f32.mxu1 %v2406_v40  ;;  %1614 = vmatprep.mubr.f32.mxu0 %v2406_v40  ;;  %v2418_v40 = vld [vmem:[#allocation2 + $0x2f8] sm:$0xff] }
 0x19c   :  { %1867 = vst [vmem:[#allocation8 + $0x390] sm:$0xff] %v587_v49  ;;  %2059 = vst [vmem:[#allocation8 + $0x990] sm:$0xff] %v779_v15 }
 0x19d   :  { %1868 = vst [vmem:[#allocation8 + $0x398] sm:$0xff] %v589_v22  ;;  %2060 = vst [vmem:[#allocation8 + $0x998] sm:$0xff] %v781_v24  ;;  %v592_v42 = vpop.f32.mrb[40].mxu0  ;;  %v784_v60 = vpop.f32.mrb[40].mxu1 }
 0x19e   :  { %v593_v62 = vadd.f32 %v592_v42, %v2892_v18  ;;  %v785_v17 = vadd.f32 %v784_v60, %v2892_v18  ;;  %v594_v20 = vpop.f32.mrb[41].mxu0  ;;  %v786_v38 = vpop.f32.mrb[41].mxu1  ;;  %1166 = vmatmul.mubr.f32.gmra.mrb[146].mxu1 %v2407_v41  ;;  %1615 = vmatmul.mubr.f32.gmra.mrb[146].mxu0 %v2407_v41  ;;  %v2419_v41 = vld [vmem:[#allocation2 + $0x2f0] sm:$0xff] }
 0x19f   :  { %v595_v61 = vadd.f32 %v594_v20, %v2897_v32  ;;  %v787_v1 = vadd.f32 %v786_v38, %v2897_v32  ;;  %1171 = vmatprep.mubr.f32.mxu1 %v2408_v23  ;;  %1620 = vmatprep.mubr.f32.mxu0 %v2408_v23  ;;  %v2420_v23 = vld [vmem:[#allocation2 + $0x308] sm:$0xff] }
 0x1a0   :  { %1873 = vst [vmem:[#allocation8 + $0x3c0] sm:$0xff] %v593_v62  ;;  %2065 = vst [vmem:[#allocation8 + $0x9c0] sm:$0xff] %v785_v17 }
 0x1a1   :  { %1874 = vst [vmem:[#allocation8 + $0x3c8] sm:$0xff] %v595_v61  ;;  %2066 = vst [vmem:[#allocation8 + $0x9c8] sm:$0xff] %v787_v1  ;;  %v598_v26 = vpop.f32.mrb[42].mxu0  ;;  %v790_v46 = vpop.f32.mrb[42].mxu1 }
 0x1a2   :  { %v599_v50 = vadd.f32 %v598_v26, %v2892_v18  ;;  %v791_v10 = vadd.f32 %v790_v46, %v2892_v18  ;;  %v600_v12 = vpop.f32.mrb[43].mxu0  ;;  %v792_v30 = vpop.f32.mrb[43].mxu1  ;;  %1172 = vmatmul.mubr.f32.gmra.mrb[148].mxu1 %v2409_v33  ;;  %1621 = vmatmul.mubr.f32.gmra.mrb[148].mxu0 %v2409_v33  ;;  %v2421_v33 = vld [vmem:[#allocation2 + $0x300] sm:$0xff] }
 0x1a3   :  { %v601_v39 = vadd.f32 %v600_v12, %v2897_v32  ;;  %v793_v13 = vadd.f32 %v792_v30, %v2897_v32  ;;  %1177 = vmatprep.mubr.f32.mxu1 %v2410_v44  ;;  %1626 = vmatprep.mubr.f32.mxu0 %v2410_v44  ;;  %v2422_v44 = vld [vmem:[#allocation2 + $0x318] sm:$0xff] }
 0x1a4   :  { %1879 = vst [vmem:[#allocation8 + $0x3f0] sm:$0xff] %v599_v50  ;;  %2071 = vst [vmem:[#allocation8 + $0x9f0] sm:$0xff] %v791_v10 }
 0x1a5   :  { %1880 = vst [vmem:[#allocation8 + $0x3f8] sm:$0xff] %v601_v39  ;;  %2072 = vst [vmem:[#allocation8 + $0x9f8] sm:$0xff] %v793_v13  ;;  %v604_v27 = vpop.f32.mrb[44].mxu0  ;;  %v796_v47 = vpop.f32.mrb[44].mxu1 }
 0x1a6   :  { %v605_v54 = vadd.f32 %v604_v27, %v2892_v18  ;;  %v797_v56 = vadd.f32 %v796_v47, %v2892_v18  ;;  %v606_v58 = vpop.f32.mrb[45].mxu0  ;;  %v798_v63 = vpop.f32.mrb[45].mxu1  ;;  %1178 = vmatmul.mubr.f32.gmra.mrb[150].mxu1 %v2411_v37  ;;  %1627 = vmatmul.mubr.f32.gmra.mrb[150].mxu0 %v2411_v37  ;;  %v2423_v37 = vld [vmem:[#allocation2 + $0x310] sm:$0xff] }
 0x1a7   :  { %v607_v5 = vadd.f32 %v606_v58, %v2897_v32  ;;  %v799_v45 = vadd.f32 %v798_v63, %v2897_v32  ;;  %1183 = vmatprep.mubr.f32.mxu1 %v2412_v8  ;;  %1632 = vmatprep.mubr.f32.mxu0 %v2412_v8  ;;  %v2424_v8 = vld [vmem:[#allocation2 + $0x328] sm:$0xff] }
 0x1a8   :  { %1885 = vst [vmem:[#allocation8 + $0x420] sm:$0xff] %v605_v54  ;;  %2077 = vst [vmem:[#allocation8 + $0xa20] sm:$0xff] %v797_v56 }
 0x1a9   :  { %1886 = vst [vmem:[#allocation8 + $0x428] sm:$0xff] %v607_v5  ;;  %2078 = vst [vmem:[#allocation8 + $0xa28] sm:$0xff] %v799_v45  ;;  %v610_v11 = vpop.f32.mrb[46].mxu0  ;;  %v802_v14 = vpop.f32.mrb[46].mxu1 }
 0x1aa   :  { %v611_v19 = vadd.f32 %v610_v11, %v2892_v18  ;;  %v803_v25 = vadd.f32 %v802_v14, %v2892_v18  ;;  %v612_v28 = vpop.f32.mrb[47].mxu0  ;;  %v804_v31 = vpop.f32.mrb[47].mxu1  ;;  %1184 = vmatmul.mubr.f32.gmra.mrb[152].mxu1 %v2413_v7  ;;  %1633 = vmatmul.mubr.f32.gmra.mrb[152].mxu0 %v2413_v7  ;;  %v2425_v7 = vld [vmem:[#allocation2 + $0x320] sm:$0xff] }
 0x1ab   :  { %v613_v36 = vadd.f32 %v612_v28, %v2897_v32  ;;  %v805_v43 = vadd.f32 %v804_v31, %v2897_v32  ;;  %1189 = vmatprep.mubr.f32.mxu1 %v2414_v53  ;;  %1638 = vmatprep.mubr.f32.mxu0 %v2414_v53  ;;  %v2426_v53 = vld [vmem:[#allocation2 + $0x338] sm:$0xff] }
 0x1ac   :  { %1891 = vst [vmem:[#allocation8 + $0x450] sm:$0xff] %v611_v19  ;;  %2083 = vst [vmem:[#allocation8 + $0xa50] sm:$0xff] %v803_v25 }
 0x1ad   :  { %1892 = vst [vmem:[#allocation8 + $0x458] sm:$0xff] %v613_v36  ;;  %2084 = vst [vmem:[#allocation8 + $0xa58] sm:$0xff] %v805_v43  ;;  %v616_v35 = vpop.f32.mrb[48].mxu0  ;;  %v808_v59 = vpop.f32.mrb[48].mxu1 }
 0x1ae   :  { %v617_v57 = vadd.f32 %v616_v35, %v2892_v18  ;;  %v809_v29 = vadd.f32 %v808_v59, %v2892_v18  ;;  %v618_v3 = vpop.f32.mrb[49].mxu0  ;;  %v810_v55 = vpop.f32.mrb[49].mxu1  ;;  %1190 = vmatmul.mubr.f32.gmra.mrb[154].mxu1 %v2415_v21  ;;  %1639 = vmatmul.mubr.f32.gmra.mrb[154].mxu0 %v2415_v21 }
 0x1af   :  { %v619_v48 = vadd.f32 %v618_v3, %v2897_v32  ;;  %v811_v0 = vadd.f32 %v810_v55, %v2897_v32  ;;  %1195 = vmatprep.mubr.f32.mxu1 %v2416_v16  ;;  %1644 = vmatprep.mubr.f32.mxu0 %v2416_v16  ;;  %v390_v16 = vsub.s32 3, %v2877_v52 }
 0x1b0   :  { %1897 = vst [vmem:[#allocation8 + $0x480] sm:$0xff] %v617_v57  ;;  %2089 = vst [vmem:[#allocation8 + $0xa80] sm:$0xff] %v809_v29  ;;  %v386_v57 = vsub.s32 2, %v2877_v52  ;;  %v394_v29 = vsub.s32 4, %v2877_v52 }
 0x1b1   :  { %1898 = vst [vmem:[#allocation8 + $0x488] sm:$0xff] %v619_v48  ;;  %2090 = vst [vmem:[#allocation8 + $0xa88] sm:$0xff] %v811_v0  ;;  %v622_v9 = vpop.f32.mrb[50].mxu0  ;;  %v814_v34 = vpop.f32.mrb[50].mxu1  ;;  %v2427_v0 = vld [vmem:[#allocation2 + $0x330] sm:$0xff] }
 0x1b2   :  { %v623_v49 = vadd.f32 %v622_v9, %v2892_v18  ;;  %v815_v15 = vadd.f32 %v814_v34, %v2892_v18  ;;  %v624_v51 = vpop.f32.mrb[51].mxu0  ;;  %v816_v4 = vpop.f32.mrb[51].mxu1  ;;  %1196 = vmatmul.mubr.f32.gmra.mrb[156].mxu1 %v2417_v6  ;;  %1645 = vmatmul.mubr.f32.gmra.mrb[156].mxu0 %v2417_v6  ;;  %v3070_v6 = vrot.slane %v2886_v2, %v386_v57 }
 0x1b3   :  { %v625_v22 = vadd.f32 %v624_v51, %v2897_v32  ;;  %v817_v24 = vadd.f32 %v816_v4, %v2897_v32  ;;  %1201 = vmatprep.mubr.f32.mxu1 %v2418_v40  ;;  %1650 = vmatprep.mubr.f32.mxu0 %v2418_v40 }
 0x1b4   :  { %1903 = vst [vmem:[#allocation8 + $0x4b0] sm:$0xff] %v623_v49  ;;  %2095 = vst [vmem:[#allocation8 + $0xab0] sm:$0xff] %v815_v15  ;;  %v2428_v49 = vld [vmem:[#allocation2 + $0x348] sm:$0xff]  ;;  %v398_v15 = vsub.s32 5, %v2877_v52  ;;  %v2430_v52 = vld [vmem:[#allocation7] sm:$0x3f] }
 0x1b5   :  { %1904 = vst [vmem:[#allocation8 + $0x4b8] sm:$0xff] %v625_v22  ;;  %2096 = vst [vmem:[#allocation8 + $0xab8] sm:$0xff] %v817_v24  ;;  %v628_v42 = vpop.f32.mrb[52].mxu0  ;;  %v820_v60 = vpop.f32.mrb[52].mxu1  ;;  %v3073_v22 = vrot.slane %v2886_v2, %v394_v29 }
 0x1b6   :  { %v629_v62 = vadd.f32 %v628_v42, %v2892_v18  ;;  %v821_v17 = vadd.f32 %v820_v60, %v2892_v18  ;;  %v630_v20 = vpop.f32.mrb[53].mxu0  ;;  %v822_v38 = vpop.f32.mrb[53].mxu1  ;;  %1202 = vmatmul.mubr.f32.gmra.mrb[158].mxu1 %v2419_v41  ;;  %1651 = vmatmul.mubr.f32.gmra.mrb[158].mxu0 %v2419_v41  ;;  %v2431_v41 = vld [vmem:[#allocation2 + $0x358] sm:$0xff]  ;;  %v3081_v2 = vrot.slane %v2430_v52, %v398_v15 }
 0x1b7   :  { %v631_v61 = vadd.f32 %v630_v20, %v2897_v32  ;;  %v823_v1 = vadd.f32 %v822_v38, %v2897_v32  ;;  %1207 = vmatprep.mubr.f32.mxu1 %v2420_v23  ;;  %1656 = vmatprep.mubr.f32.mxu0 %v2420_v23 }
 0x1b8   :  { %1909 = vst [vmem:[#allocation8 + $0x4e0] sm:$0xff] %v629_v62  ;;  %2101 = vst [vmem:[#allocation8 + $0xae0] sm:$0xff] %v821_v17  ;;  %v2429_v62 = vld [vmem:[#allocation2 + $0x340] sm:$0xff]  ;;  %v3077_v17 = vrot.slane %v2430_v52, %v390_v16 }
 0x1b9   :  { %1910 = vst [vmem:[#allocation8 + $0x4e8] sm:$0xff] %v631_v61  ;;  %2102 = vst [vmem:[#allocation8 + $0xae8] sm:$0xff] %v823_v1  ;;  %v634_v26 = vpop.f32.mrb[54].mxu0  ;;  %v826_v46 = vpop.f32.mrb[54].mxu1 }
 0x1ba   :  { %v635_v50 = vadd.f32 %v634_v26, %v2892_v18  ;;  %v827_v10 = vadd.f32 %v826_v46, %v2892_v18  ;;  %v636_v12 = vpop.f32.mrb[55].mxu0  ;;  %v828_v30 = vpop.f32.mrb[55].mxu1  ;;  %1208 = vmatmul.mubr.f32.gmra.mrb[160].mxu1 %v2421_v33  ;;  %1657 = vmatmul.mubr.f32.gmra.mrb[160].mxu0 %v2421_v33  ;;  %v2432_v46 = vld [vmem:[#allocation2 + $0x350] sm:$0xff] }
 0x1bb   :  { %v637_v39 = vadd.f32 %v636_v12, %v2897_v32  ;;  %v829_v13 = vadd.f32 %v828_v30, %v2897_v32  ;;  %1213 = vmatprep.mubr.f32.mxu1 %v2422_v44  ;;  %1662 = vmatprep.mubr.f32.mxu0 %v2422_v44  ;;  %v2433_v12 = vld [vmem:[#allocation2 + $0x368] sm:$0xff] }
 0x1bc   :  { %1915 = vst [vmem:[#allocation8 + $0x510] sm:$0xff] %v635_v50  ;;  %2107 = vst [vmem:[#allocation8 + $0xb10] sm:$0xff] %v827_v10 }
 0x1bd   :  { %1916 = vst [vmem:[#allocation8 + $0x518] sm:$0xff] %v637_v39  ;;  %2108 = vst [vmem:[#allocation8 + $0xb18] sm:$0xff] %v829_v13  ;;  %v640_v27 = vpop.f32.mrb[56].mxu0  ;;  %v832_v47 = vpop.f32.mrb[56].mxu1 }
 0x1be   :  { %v641_v54 = vadd.f32 %v640_v27, %v2892_v18  ;;  %v833_v56 = vadd.f32 %v832_v47, %v2892_v18  ;;  %v642_v58 = vpop.f32.mrb[57].mxu0  ;;  %v834_v63 = vpop.f32.mrb[57].mxu1  ;;  %1214 = vmatmul.mubr.f32.gmra.mrb[162].mxu1 %v2423_v37  ;;  %1663 = vmatmul.mubr.f32.gmra.mrb[162].mxu0 %v2423_v37  ;;  %v2434_v27 = vld [vmem:[#allocation2 + $0x360] sm:$0xff] }
 0x1bf   :  { %v643_v5 = vadd.f32 %v642_v58, %v2897_v32  ;;  %v835_v45 = vadd.f32 %v834_v63, %v2897_v32  ;;  %1219 = vmatprep.mubr.f32.mxu1 %v2424_v8  ;;  %1668 = vmatprep.mubr.f32.mxu0 %v2424_v8  ;;  %v2435_v58 = vld [vmem:[#allocation2 + $0x378] sm:$0xff] }
 0x1c0   :  { %1921 = vst [vmem:[#allocation8 + $0x540] sm:$0xff] %v641_v54  ;;  %2113 = vst [vmem:[#allocation8 + $0xb40] sm:$0xff] %v833_v56 }
 0x1c1   :  { %1922 = vst [vmem:[#allocation8 + $0x548] sm:$0xff] %v643_v5  ;;  %2114 = vst [vmem:[#allocation8 + $0xb48] sm:$0xff] %v835_v45  ;;  %v646_v11 = vpop.f32.mrb[58].mxu0  ;;  %v838_v14 = vpop.f32.mrb[58].mxu1 }
 0x1c2   :  { %v647_v19 = vadd.f32 %v646_v11, %v2892_v18  ;;  %v839_v25 = vadd.f32 %v838_v14, %v2892_v18  ;;  %v648_v28 = vpop.f32.mrb[59].mxu0  ;;  %v840_v31 = vpop.f32.mrb[59].mxu1  ;;  %1220 = vmatmul.mubr.f32.gmra.mrb[164].mxu1 %v2425_v7  ;;  %1669 = vmatmul.mubr.f32.gmra.mrb[164].mxu0 %v2425_v7  ;;  %v2436_v11 = vld [vmem:[#allocation2 + $0x370] sm:$0xff] }
 0x1c3   :  { %v649_v36 = vadd.f32 %v648_v28, %v2897_v32  ;;  %v841_v43 = vadd.f32 %v840_v31, %v2897_v32  ;;  %1225 = vmatprep.mubr.f32.mxu1 %v2426_v53  ;;  %1674 = vmatprep.mubr.f32.mxu0 %v2426_v53  ;;  %v2437_v28 = vld [vmem:[#allocation2 + $0x388] sm:$0xff] }
 0x1c4   :  { %1927 = vst [vmem:[#allocation8 + $0x570] sm:$0xff] %v647_v19  ;;  %2119 = vst [vmem:[#allocation8 + $0xb70] sm:$0xff] %v839_v25 }
 0x1c5   :  { %1928 = vst [vmem:[#allocation8 + $0x578] sm:$0xff] %v649_v36  ;;  %2120 = vst [vmem:[#allocation8 + $0xb78] sm:$0xff] %v841_v43  ;;  %v652_v35 = vpop.f32.mrb[60].mxu0  ;;  %v844_v59 = vpop.f32.mrb[60].mxu1 }
 0x1c6   :  { %v653_v3 = vadd.f32 %v652_v35, %v2892_v18  ;;  %v845_v55 = vadd.f32 %v844_v59, %v2892_v18  ;;  %v654_v21 = vpop.f32.mrb[61].mxu0  ;;  %v846_v48 = vpop.f32.mrb[61].mxu1  ;;  %1226 = vmatmul.mubr.f32.gmra.mrb[166].mxu1 %v2427_v0  ;;  %1675 = vmatmul.mubr.f32.gmra.mrb[166].mxu0 %v2427_v0  ;;  %v2438_v35 = vld [vmem:[#allocation2 + $0x380] sm:$0xff] }
 0x1c7   :  { %v655_v9 = vadd.f32 %v654_v21, %v2897_v32  ;;  %v847_v34 = vadd.f32 %v846_v48, %v2897_v32  ;;  %1231 = vmatprep.mubr.f32.mxu1 %v2428_v49  ;;  %1680 = vmatprep.mubr.f32.mxu0 %v2428_v49 }
 0x1c8   :  { %1933 = vst [vmem:[#allocation8 + $0x5a0] sm:$0xff] %v653_v3  ;;  %2125 = vst [vmem:[#allocation8 + $0xba0] sm:$0xff] %v845_v55  ;;  %v2439_v3 = vld [vmem:[#allocation2 + $0x398] sm:$0xff] }
 0x1c9   :  { %1934 = vst [vmem:[#allocation8 + $0x5a8] sm:$0xff] %v655_v9  ;;  %2126 = vst [vmem:[#allocation8 + $0xba8] sm:$0xff] %v847_v34  ;;  %v658_v51 = vpop.f32.mrb[62].mxu0  ;;  %v850_v4 = vpop.f32.mrb[62].mxu1  ;;  %v2440_v9 = vld [vmem:[#allocation2 + $0x390] sm:$0xff] }
 0x1ca   :  { %v659_v24 = vadd.f32 %v658_v51, %v2892_v18  ;;  %v851_v40 = vadd.f32 %v850_v4, %v2892_v18  ;;  %v660_v42 = vpop.f32.mrb[63].mxu0  ;;  %v852_v60 = vpop.f32.mrb[63].mxu1  ;;  %1232 = vmatmul.mubr.f32.gmra.mrb[168].mxu1 %v2429_v62  ;;  %1681 = vmatmul.mubr.f32.gmra.mrb[168].mxu0 %v2429_v62  ;;  %v2441_v51 = vld [vmem:[#allocation2 + $0x3a8] sm:$0xff]  ;;  %v2442_v62 = vld [vmem:[#allocation2 + $0x3a0] sm:$0xff] }
 0x1cb   :  { %v661_v20 = vadd.f32 %v660_v42, %v2897_v32  ;;  %v853_v38 = vadd.f32 %v852_v60, %v2897_v32  ;;  %1237 = vmatprep.mubr.f32.mxu1 %v2431_v41  ;;  %1686 = vmatprep.mubr.f32.mxu0 %v2431_v41  ;;  %v2443_v41 = vld [vmem:[#allocation2 + $0x3b8] sm:$0xff] }
 0x1cc   :  { %1939 = vst [vmem:[#allocation8 + $0x5d0] sm:$0xff] %v659_v24  ;;  %2131 = vst [vmem:[#allocation8 + $0xbd0] sm:$0xff] %v851_v40 }
 0x1cd   :  { %1940 = vst [vmem:[#allocation8 + $0x5d8] sm:$0xff] %v661_v20  ;;  %2132 = vst [vmem:[#allocation8 + $0xbd8] sm:$0xff] %v853_v38  ;;  %v921_v18 = vpop.f32.mrb[64].mxu1  ;;  %v1370_v61 = vpop.f32.mrb[64].mxu0 }
 0x1ce   :  { %v922_v1 = vadd.f32 %v921_v18, %v3070_v6  ;;  %v1371_v23 = vadd.f32 %v1370_v61, %v3073_v22  ;;  %v923_v26 = vpop.f32.mrb[65].mxu1  ;;  %1238 = vmatmul.mubr.f32.gmra.mrb[170].mxu1 %v2432_v46  ;;  %v1372_v50 = vpop.f32.mrb[65].mxu0  ;;  %1687 = vmatmul.mubr.f32.gmra.mrb[170].mxu0 %v2432_v46  ;;  %v2444_v46 = vld [vmem:[#allocation2 + $0x3b0] sm:$0xff] }
 0x1cf   :  { %v924_v32 = vadd.f32 %v923_v26, %v3077_v17  ;;  %v1373_v10 = vadd.f32 %v1372_v50, %v3081_v2  ;;  %1243 = vmatprep.mubr.f32.mxu1 %v2433_v12  ;;  %1692 = vmatprep.mubr.f32.mxu0 %v2433_v12  ;;  %v2445_v12 = vld [vmem:[#allocation2 + $0x3c8] sm:$0xff] }
 0x1d0   :  { %1755 = vst [vmem:[#allocation8 + $0x10] sm:$0xff] %v922_v1  ;;  %1757 = vst [vmem:[#allocation8 + $0x20] sm:$0xff] %v1371_v23 }
 0x1d1   :  { %1756 = vst [vmem:[#allocation8 + $0x18] sm:$0xff] %v924_v32  ;;  %1758 = vst [vmem:[#allocation8 + $0x28] sm:$0xff] %v1373_v10  ;;  %v927_v30 = vpop.f32.mrb[66].mxu1  ;;  %v1376_v33 = vpop.f32.mrb[66].mxu0 }
 0x1d2   :  { %v928_v39 = vadd.f32 %v927_v30, %v3070_v6  ;;  %v1377_v13 = vadd.f32 %v1376_v33, %v3073_v22  ;;  %v929_v44 = vpop.f32.mrb[67].mxu1  ;;  %1244 = vmatmul.mubr.f32.gmra.mrb[172].mxu1 %v2434_v27  ;;  %v1378_v47 = vpop.f32.mrb[67].mxu0  ;;  %1693 = vmatmul.mubr.f32.gmra.mrb[172].mxu0 %v2434_v27  ;;  %v2446_v27 = vld [vmem:[#allocation2 + $0x3c0] sm:$0xff] }
 0x1d3   :  { %v930_v54 = vadd.f32 %v929_v44, %v3077_v17  ;;  %v1379_v56 = vadd.f32 %v1378_v47, %v3081_v2  ;;  %1249 = vmatprep.mubr.f32.mxu1 %v2435_v58  ;;  %1698 = vmatprep.mubr.f32.mxu0 %v2435_v58  ;;  %v2447_v58 = vld [vmem:[#allocation2 + $0x3d8] sm:$0xff] }
 0x1d4   :  { %1761 = vst [vmem:[#allocation8 + $0x40] sm:$0xff] %v928_v39  ;;  %1763 = vst [vmem:[#allocation8 + $0x50] sm:$0xff] %v1377_v13 }
 0x1d5   :  { %1762 = vst [vmem:[#allocation8 + $0x48] sm:$0xff] %v930_v54  ;;  %1764 = vst [vmem:[#allocation8 + $0x58] sm:$0xff] %v1379_v56  ;;  %v933_v63 = vpop.f32.mrb[68].mxu1  ;;  %v1382_v37 = vpop.f32.mrb[68].mxu0 }
 0x1d6   :  { %v934_v5 = vadd.f32 %v933_v63, %v3070_v6  ;;  %v1383_v45 = vadd.f32 %v1382_v37, %v3073_v22  ;;  %v935_v8 = vpop.f32.mrb[69].mxu1  ;;  %1250 = vmatmul.mubr.f32.gmra.mrb[174].mxu1 %v2436_v11  ;;  %v1384_v14 = vpop.f32.mrb[69].mxu0  ;;  %1699 = vmatmul.mubr.f32.gmra.mrb[174].mxu0 %v2436_v11  ;;  %v2448_v11 = vld [vmem:[#allocation2 + $0x3d0] sm:$0xff] }
 0x1d7   :  { %v936_v19 = vadd.f32 %v935_v8, %v3077_v17  ;;  %v1385_v25 = vadd.f32 %v1384_v14, %v3081_v2  ;;  %1255 = vmatprep.mubr.f32.mxu1 %v2437_v28  ;;  %1704 = vmatprep.mubr.f32.mxu0 %v2437_v28  ;;  %v2449_v28 = vld [vmem:[#allocation2 + $0x3e8] sm:$0xff] }
 0x1d8   :  { %1767 = vst [vmem:[#allocation8 + $0x70] sm:$0xff] %v934_v5  ;;  %1769 = vst [vmem:[#allocation8 + $0x80] sm:$0xff] %v1383_v45 }
 0x1d9   :  { %1768 = vst [vmem:[#allocation8 + $0x78] sm:$0xff] %v936_v19  ;;  %1770 = vst [vmem:[#allocation8 + $0x88] sm:$0xff] %v1385_v25  ;;  %v939_v31 = vpop.f32.mrb[70].mxu1  ;;  %v1388_v7 = vpop.f32.mrb[70].mxu0 }
 0x1da   :  { %v940_v36 = vadd.f32 %v939_v31, %v3070_v6  ;;  %v1389_v43 = vadd.f32 %v1388_v7, %v3073_v22  ;;  %v941_v53 = vpop.f32.mrb[71].mxu1  ;;  %1256 = vmatmul.mubr.f32.gmra.mrb[176].mxu1 %v2438_v35  ;;  %v1390_v59 = vpop.f32.mrb[71].mxu0  ;;  %1705 = vmatmul.mubr.f32.gmra.mrb[176].mxu0 %v2438_v35  ;;  %v2450_v35 = vld [vmem:[#allocation2 + $0x3e0] sm:$0xff] }
 0x1db   :  { %v942_v57 = vadd.f32 %v941_v53, %v3077_v17  ;;  %v1391_v29 = vadd.f32 %v1390_v59, %v3081_v2  ;;  %1261 = vmatprep.mubr.f32.mxu1 %v2439_v3  ;;  %1710 = vmatprep.mubr.f32.mxu0 %v2439_v3  ;;  %v2451_v3 = vld [vmem:[#allocation2 + $0x3f8] sm:$0xff] }
 0x1dc   :  { %1773 = vst [vmem:[#allocation8 + $0xa0] sm:$0xff] %v940_v36  ;;  %1775 = vst [vmem:[#allocation8 + $0xb0] sm:$0xff] %v1389_v43 }
 0x1dd   :  { %1774 = vst [vmem:[#allocation8 + $0xa8] sm:$0xff] %v942_v57  ;;  %1776 = vst [vmem:[#allocation8 + $0xb8] sm:$0xff] %v1391_v29  ;;  %v945_v55 = vpop.f32.mrb[72].mxu1  ;;  %v1394_v21 = vpop.f32.mrb[72].mxu0 }
 0x1de   :  { %v946_v48 = vadd.f32 %v945_v55, %v3070_v6  ;;  %v1395_v0 = vadd.f32 %v1394_v21, %v3073_v22  ;;  %v947_v16 = vpop.f32.mrb[73].mxu1  ;;  %1262 = vmatmul.mubr.f32.gmra.mrb[178].mxu1 %v2440_v9  ;;  %v1396_v34 = vpop.f32.mrb[73].mxu0  ;;  %1711 = vmatmul.mubr.f32.gmra.mrb[178].mxu0 %v2440_v9  ;;  %v2452_v9 = vld [vmem:[#allocation2 + $0x3f0] sm:$0xff] }
 0x1df   :  { %v948_v49 = vadd.f32 %v947_v16, %v3077_v17  ;;  %v1397_v15 = vadd.f32 %v1396_v34, %v3081_v2  ;;  %1267 = vmatprep.mubr.f32.mxu1 %v2441_v51  ;;  %1716 = vmatprep.mubr.f32.mxu0 %v2441_v51 }
 0x1e0   :  { %1779 = vst [vmem:[#allocation8 + $0xd0] sm:$0xff] %v946_v48  ;;  %1781 = vst [vmem:[#allocation8 + $0xe0] sm:$0xff] %v1395_v0 }
 0x1e1   :  { %1780 = vst [vmem:[#allocation8 + $0xd8] sm:$0xff] %v948_v49  ;;  %1782 = vst [vmem:[#allocation8 + $0xe8] sm:$0xff] %v1397_v15  ;;  %v951_v4 = vpop.f32.mrb[74].mxu1  ;;  %v1400_v24 = vpop.f32.mrb[74].mxu0 }
 0x1e2   :  { %v952_v40 = vadd.f32 %v951_v4, %v3070_v6  ;;  %v1401_v42 = vadd.f32 %v1400_v24, %v3073_v22  ;;  %v953_v60 = vpop.f32.mrb[75].mxu1  ;;  %1268 = vmatmul.mubr.f32.gmra.mrb[180].mxu1 %v2442_v62  ;;  %v1402_v52 = vpop.f32.mrb[75].mxu0  ;;  %1717 = vmatmul.mubr.f32.gmra.mrb[180].mxu0 %v2442_v62 }
 0x1e3   :  { %v954_v20 = vadd.f32 %v953_v60, %v3077_v17  ;;  %v1403_v38 = vadd.f32 %v1402_v52, %v3081_v2  ;;  %1273 = vmatprep.mubr.f32.mxu1 %v2443_v41  ;;  %1722 = vmatprep.mubr.f32.mxu0 %v2443_v41 }
 0x1e4   :  { %1785 = vst [vmem:[#allocation8 + $0x100] sm:$0xff] %v952_v40  ;;  %1787 = vst [vmem:[#allocation8 + $0x110] sm:$0xff] %v1401_v42 }
 0x1e5   :  { %1786 = vst [vmem:[#allocation8 + $0x108] sm:$0xff] %v954_v20  ;;  %1788 = vst [vmem:[#allocation8 + $0x118] sm:$0xff] %v1403_v38  ;;  %v957_v18 = vpop.f32.mrb[76].mxu1  ;;  %v1406_v61 = vpop.f32.mrb[76].mxu0 }
 0x1e6   :  { %v958_v1 = vadd.f32 %v957_v18, %v3070_v6  ;;  %v1407_v23 = vadd.f32 %v1406_v61, %v3073_v22  ;;  %v959_v26 = vpop.f32.mrb[77].mxu1  ;;  %1274 = vmatmul.mubr.f32.gmra.mrb[182].mxu1 %v2444_v46  ;;  %v1408_v50 = vpop.f32.mrb[77].mxu0  ;;  %1723 = vmatmul.mubr.f32.gmra.mrb[182].mxu0 %v2444_v46 }
 0x1e7   :  { %v960_v32 = vadd.f32 %v959_v26, %v3077_v17  ;;  %v1409_v10 = vadd.f32 %v1408_v50, %v3081_v2  ;;  %1279 = vmatprep.mubr.f32.mxu1 %v2445_v12  ;;  %1728 = vmatprep.mubr.f32.mxu0 %v2445_v12 }
 0x1e8   :  { %1791 = vst [vmem:[#allocation8 + $0x130] sm:$0xff] %v958_v1  ;;  %1793 = vst [vmem:[#allocation8 + $0x140] sm:$0xff] %v1407_v23 }
 0x1e9   :  { %1792 = vst [vmem:[#allocation8 + $0x138] sm:$0xff] %v960_v32  ;;  %1794 = vst [vmem:[#allocation8 + $0x148] sm:$0xff] %v1409_v10  ;;  %v963_v30 = vpop.f32.mrb[78].mxu1  ;;  %v1412_v33 = vpop.f32.mrb[78].mxu0 }
 0x1ea   :  { %v964_v39 = vadd.f32 %v963_v30, %v3070_v6  ;;  %v1413_v13 = vadd.f32 %v1412_v33, %v3073_v22  ;;  %v965_v44 = vpop.f32.mrb[79].mxu1  ;;  %1280 = vmatmul.mubr.f32.gmra.mrb[184].mxu1 %v2446_v27  ;;  %v1414_v47 = vpop.f32.mrb[79].mxu0  ;;  %1729 = vmatmul.mubr.f32.gmra.mrb[184].mxu0 %v2446_v27 }
 0x1eb   :  { %v966_v54 = vadd.f32 %v965_v44, %v3077_v17  ;;  %v1415_v56 = vadd.f32 %v1414_v47, %v3081_v2  ;;  %1285 = vmatprep.mubr.f32.mxu1 %v2447_v58  ;;  %1734 = vmatprep.mubr.f32.mxu0 %v2447_v58 }
 0x1ec   :  { %1797 = vst [vmem:[#allocation8 + $0x160] sm:$0xff] %v964_v39  ;;  %1799 = vst [vmem:[#allocation8 + $0x170] sm:$0xff] %v1413_v13 }
 0x1ed   :  { %1798 = vst [vmem:[#allocation8 + $0x168] sm:$0xff] %v966_v54  ;;  %1800 = vst [vmem:[#allocation8 + $0x178] sm:$0xff] %v1415_v56  ;;  %v969_v63 = vpop.f32.mrb[80].mxu1  ;;  %v1418_v37 = vpop.f32.mrb[80].mxu0 }
 0x1ee   :  { %v970_v5 = vadd.f32 %v969_v63, %v3070_v6  ;;  %v1419_v45 = vadd.f32 %v1418_v37, %v3073_v22  ;;  %v971_v8 = vpop.f32.mrb[81].mxu1  ;;  %1286 = vmatmul.mubr.f32.gmra.mrb[186].mxu1 %v2448_v11  ;;  %v1420_v14 = vpop.f32.mrb[81].mxu0  ;;  %1735 = vmatmul.mubr.f32.gmra.mrb[186].mxu0 %v2448_v11 }
 0x1ef   :  { %v972_v19 = vadd.f32 %v971_v8, %v3077_v17  ;;  %v1421_v25 = vadd.f32 %v1420_v14, %v3081_v2  ;;  %1291 = vmatprep.mubr.f32.mxu1 %v2449_v28  ;;  %1740 = vmatprep.mubr.f32.mxu0 %v2449_v28 }
 0x1f0   :  { %1803 = vst [vmem:[#allocation8 + $0x190] sm:$0xff] %v970_v5  ;;  %1805 = vst [vmem:[#allocation8 + $0x1a0] sm:$0xff] %v1419_v45 }
 0x1f1   :  { %1804 = vst [vmem:[#allocation8 + $0x198] sm:$0xff] %v972_v19  ;;  %1806 = vst [vmem:[#allocation8 + $0x1a8] sm:$0xff] %v1421_v25  ;;  %v975_v31 = vpop.f32.mrb[82].mxu1  ;;  %v1424_v7 = vpop.f32.mrb[82].mxu0 }
 0x1f2   :  { %v976_v36 = vadd.f32 %v975_v31, %v3070_v6  ;;  %v1425_v43 = vadd.f32 %v1424_v7, %v3073_v22  ;;  %v977_v53 = vpop.f32.mrb[83].mxu1  ;;  %1292 = vmatmul.mubr.f32.gmra.mrb[188].mxu1 %v2450_v35  ;;  %v1426_v59 = vpop.f32.mrb[83].mxu0  ;;  %1741 = vmatmul.mubr.f32.gmra.mrb[188].mxu0 %v2450_v35 }
 0x1f3   :  { %v978_v57 = vadd.f32 %v977_v53, %v3077_v17  ;;  %v1427_v29 = vadd.f32 %v1426_v59, %v3081_v2  ;;  %1297 = vmatprep.mubr.f32.mxu1 %v2451_v3  ;;  %1746 = vmatprep.mubr.f32.mxu0 %v2451_v3 }
 0x1f4   :  { %1809 = vst [vmem:[#allocation8 + $0x1c0] sm:$0xff] %v976_v36  ;;  %1811 = vst [vmem:[#allocation8 + $0x1d0] sm:$0xff] %v1425_v43 }
 0x1f5   :  { %1810 = vst [vmem:[#allocation8 + $0x1c8] sm:$0xff] %v978_v57  ;;  %1812 = vst [vmem:[#allocation8 + $0x1d8] sm:$0xff] %v1427_v29  ;;  %v981_v55 = vpop.f32.mrb[84].mxu1  ;;  %v1430_v21 = vpop.f32.mrb[84].mxu0 }
 0x1f6   :  { %v982_v48 = vadd.f32 %v981_v55, %v3070_v6  ;;  %v1431_v0 = vadd.f32 %v1430_v21, %v3073_v22  ;;  %v983_v16 = vpop.f32.mrb[85].mxu1  ;;  %1298 = vmatmul.mubr.f32.gmra.mrb[190].mxu1 %v2452_v9  ;;  %v1432_v34 = vpop.f32.mrb[85].mxu0  ;;  %1747 = vmatmul.mubr.f32.gmra.mrb[190].mxu0 %v2452_v9 }
 0x1f7   :  { %v984_v49 = vadd.f32 %v983_v16, %v3077_v17  ;;  %v1433_v15 = vadd.f32 %v1432_v34, %v3081_v2 }
 0x1f8   :  { %1815 = vst [vmem:[#allocation8 + $0x1f0] sm:$0xff] %v982_v48  ;;  %1817 = vst [vmem:[#allocation8 + $0x200] sm:$0xff] %v1431_v0 }
 0x1f9   :  { %1816 = vst [vmem:[#allocation8 + $0x1f8] sm:$0xff] %v984_v49  ;;  %1818 = vst [vmem:[#allocation8 + $0x208] sm:$0xff] %v1433_v15  ;;  %v987_v51 = vpop.f32.mrb[86].mxu1  ;;  %v1436_v4 = vpop.f32.mrb[86].mxu0 }
 0x1fa   :  { %v988_v24 = vadd.f32 %v987_v51, %v3070_v6  ;;  %v1437_v40 = vadd.f32 %v1436_v4, %v3073_v22  ;;  %v989_v42 = vpop.f32.mrb[87].mxu1  ;;  %v1438_v60 = vpop.f32.mrb[87].mxu0 }
 0x1fb   :  { %v990_v62 = vadd.f32 %v989_v42, %v3077_v17  ;;  %v1439_v52 = vadd.f32 %v1438_v60, %v3081_v2 }
 0x1fc   :  { %1821 = vst [vmem:[#allocation8 + $0x220] sm:$0xff] %v988_v24  ;;  %1823 = vst [vmem:[#allocation8 + $0x230] sm:$0xff] %v1437_v40 }
 0x1fd   :  { %1822 = vst [vmem:[#allocation8 + $0x228] sm:$0xff] %v990_v62  ;;  %1824 = vst [vmem:[#allocation8 + $0x238] sm:$0xff] %v1439_v52  ;;  %v993_v20 = vpop.f32.mrb[88].mxu1  ;;  %v1442_v38 = vpop.f32.mrb[88].mxu0 }
 0x1fe   :  { %v994_v41 = vadd.f32 %v993_v20, %v3070_v6  ;;  %v1443_v18 = vadd.f32 %v1442_v38, %v3073_v22  ;;  %v995_v61 = vpop.f32.mrb[89].mxu1  ;;  %v1444_v1 = vpop.f32.mrb[89].mxu0 }
 0x1ff   :  { %v996_v23 = vadd.f32 %v995_v61, %v3077_v17  ;;  %v1445_v26 = vadd.f32 %v1444_v1, %v3081_v2 }
 0x200   :  { %1827 = vst [vmem:[#allocation8 + $0x250] sm:$0xff] %v994_v41  ;;  %1829 = vst [vmem:[#allocation8 + $0x260] sm:$0xff] %v1443_v18 }
 0x201   :  { %1828 = vst [vmem:[#allocation8 + $0x258] sm:$0xff] %v996_v23  ;;  %1830 = vst [vmem:[#allocation8 + $0x268] sm:$0xff] %v1445_v26  ;;  %v999_v46 = vpop.f32.mrb[90].mxu1  ;;  %v1448_v50 = vpop.f32.mrb[90].mxu0 }
 0x202   :  { %v1000_v32 = vadd.f32 %v999_v46, %v3070_v6  ;;  %v1449_v10 = vadd.f32 %v1448_v50, %v3073_v22  ;;  %v1001_v12 = vpop.f32.mrb[91].mxu1  ;;  %v1450_v30 = vpop.f32.mrb[91].mxu0 }
 0x203   :  { %v1002_v33 = vadd.f32 %v1001_v12, %v3077_v17  ;;  %v1451_v39 = vadd.f32 %v1450_v30, %v3081_v2 }
 0x204   :  { %1833 = vst [vmem:[#allocation8 + $0x280] sm:$0xff] %v1000_v32  ;;  %1835 = vst [vmem:[#allocation8 + $0x290] sm:$0xff] %v1449_v10 }
 0x205   :  { %1834 = vst [vmem:[#allocation8 + $0x288] sm:$0xff] %v1002_v33  ;;  %1836 = vst [vmem:[#allocation8 + $0x298] sm:$0xff] %v1451_v39  ;;  %v1005_v13 = vpop.f32.mrb[92].mxu1  ;;  %v1454_v44 = vpop.f32.mrb[92].mxu0 }
 0x206   :  { %v1006_v27 = vadd.f32 %v1005_v13, %v3070_v6  ;;  %v1455_v47 = vadd.f32 %v1454_v44, %v3073_v22  ;;  %v1007_v54 = vpop.f32.mrb[93].mxu1  ;;  %v1456_v56 = vpop.f32.mrb[93].mxu0 }
 0x207   :  { %v1008_v58 = vadd.f32 %v1007_v54, %v3077_v17  ;;  %v1457_v63 = vadd.f32 %v1456_v56, %v3081_v2 }
 0x208   :  { %1839 = vst [vmem:[#allocation8 + $0x2b0] sm:$0xff] %v1006_v27  ;;  %1841 = vst [vmem:[#allocation8 + $0x2c0] sm:$0xff] %v1455_v47 }
 0x209   :  { %1840 = vst [vmem:[#allocation8 + $0x2b8] sm:$0xff] %v1008_v58  ;;  %1842 = vst [vmem:[#allocation8 + $0x2c8] sm:$0xff] %v1457_v63  ;;  %v1011_v37 = vpop.f32.mrb[94].mxu1  ;;  %v1460_v5 = vpop.f32.mrb[94].mxu0 }
 0x20a   :  { %v1012_v45 = vadd.f32 %v1011_v37, %v3070_v6  ;;  %v1461_v8 = vadd.f32 %v1460_v5, %v3073_v22  ;;  %v1013_v11 = vpop.f32.mrb[95].mxu1  ;;  %v1462_v14 = vpop.f32.mrb[95].mxu0 }
 0x20b   :  { %v1014_v19 = vadd.f32 %v1013_v11, %v3077_v17  ;;  %v1463_v25 = vadd.f32 %v1462_v14, %v3081_v2 }
 0x20c   :  { %1845 = vst [vmem:[#allocation8 + $0x2e0] sm:$0xff] %v1012_v45  ;;  %1847 = vst [vmem:[#allocation8 + $0x2f0] sm:$0xff] %v1461_v8 }
 0x20d   :  { %1846 = vst [vmem:[#allocation8 + $0x2e8] sm:$0xff] %v1014_v19  ;;  %1848 = vst [vmem:[#allocation8 + $0x2f8] sm:$0xff] %v1463_v25  ;;  %v1017_v28 = vpop.f32.mrb[96].mxu1  ;;  %v1466_v31 = vpop.f32.mrb[96].mxu0 }
 0x20e   :  { %v1018_v7 = vadd.f32 %v1017_v28, %v3070_v6  ;;  %v1467_v36 = vadd.f32 %v1466_v31, %v3073_v22  ;;  %v1019_v43 = vpop.f32.mrb[97].mxu1  ;;  %v1468_v53 = vpop.f32.mrb[97].mxu0 }
 0x20f   :  { %v1020_v35 = vadd.f32 %v1019_v43, %v3077_v17  ;;  %v1469_v59 = vadd.f32 %v1468_v53, %v3081_v2 }
 0x210   :  { %1851 = vst [vmem:[#allocation8 + $0x310] sm:$0xff] %v1018_v7  ;;  %1853 = vst [vmem:[#allocation8 + $0x320] sm:$0xff] %v1467_v36 }
 0x211   :  { %1852 = vst [vmem:[#allocation8 + $0x318] sm:$0xff] %v1020_v35  ;;  %1854 = vst [vmem:[#allocation8 + $0x328] sm:$0xff] %v1469_v59  ;;  %v1023_v57 = vpop.f32.mrb[98].mxu1  ;;  %v1472_v29 = vpop.f32.mrb[98].mxu0 }
 0x212   :  { %v1024_v3 = vadd.f32 %v1023_v57, %v3070_v6  ;;  %v1473_v55 = vadd.f32 %v1472_v29, %v3073_v22  ;;  %v1025_v21 = vpop.f32.mrb[99].mxu1  ;;  %v1474_v48 = vpop.f32.mrb[99].mxu0 }
 0x213   :  { %v1026_v0 = vadd.f32 %v1025_v21, %v3077_v17  ;;  %v1475_v16 = vadd.f32 %v1474_v48, %v3081_v2 }
 0x214   :  { %1857 = vst [vmem:[#allocation8 + $0x340] sm:$0xff] %v1024_v3  ;;  %1859 = vst [vmem:[#allocation8 + $0x350] sm:$0xff] %v1473_v55 }
 0x215   :  { %1858 = vst [vmem:[#allocation8 + $0x348] sm:$0xff] %v1026_v0  ;;  %1860 = vst [vmem:[#allocation8 + $0x358] sm:$0xff] %v1475_v16  ;;  %v1029_v9 = vpop.f32.mrb[100].mxu1  ;;  %v1478_v34 = vpop.f32.mrb[100].mxu0 }
 0x216   :  { %v1030_v49 = vadd.f32 %v1029_v9, %v3070_v6  ;;  %v1479_v15 = vadd.f32 %v1478_v34, %v3073_v22  ;;  %v1031_v51 = vpop.f32.mrb[101].mxu1  ;;  %v1480_v4 = vpop.f32.mrb[101].mxu0 }
 0x217   :  { %v1032_v24 = vadd.f32 %v1031_v51, %v3077_v17  ;;  %v1481_v40 = vadd.f32 %v1480_v4, %v3081_v2 }
 0x218   :  { %1863 = vst [vmem:[#allocation8 + $0x370] sm:$0xff] %v1030_v49  ;;  %1865 = vst [vmem:[#allocation8 + $0x380] sm:$0xff] %v1479_v15 }
 0x219   :  { %1864 = vst [vmem:[#allocation8 + $0x378] sm:$0xff] %v1032_v24  ;;  %1866 = vst [vmem:[#allocation8 + $0x388] sm:$0xff] %v1481_v40  ;;  %v1035_v42 = vpop.f32.mrb[102].mxu1  ;;  %v1484_v60 = vpop.f32.mrb[102].mxu0 }
 0x21a   :  { %v1036_v62 = vadd.f32 %v1035_v42, %v3070_v6  ;;  %v1485_v52 = vadd.f32 %v1484_v60, %v3073_v22  ;;  %v1037_v20 = vpop.f32.mrb[103].mxu1  ;;  %v1486_v38 = vpop.f32.mrb[103].mxu0 }
 0x21b   :  { %v1038_v41 = vadd.f32 %v1037_v20, %v3077_v17  ;;  %v1487_v18 = vadd.f32 %v1486_v38, %v3081_v2 }
 0x21c   :  { %1869 = vst [vmem:[#allocation8 + $0x3a0] sm:$0xff] %v1036_v62  ;;  %1871 = vst [vmem:[#allocation8 + $0x3b0] sm:$0xff] %v1485_v52 }
 0x21d   :  { %1870 = vst [vmem:[#allocation8 + $0x3a8] sm:$0xff] %v1038_v41  ;;  %1872 = vst [vmem:[#allocation8 + $0x3b8] sm:$0xff] %v1487_v18  ;;  %v1041_v61 = vpop.f32.mrb[104].mxu1  ;;  %v1490_v1 = vpop.f32.mrb[104].mxu0 }
 0x21e   :  { %v1042_v23 = vadd.f32 %v1041_v61, %v3070_v6  ;;  %v1491_v26 = vadd.f32 %v1490_v1, %v3073_v22  ;;  %v1043_v46 = vpop.f32.mrb[105].mxu1  ;;  %v1492_v50 = vpop.f32.mrb[105].mxu0 }
 0x21f   :  { %v1044_v32 = vadd.f32 %v1043_v46, %v3077_v17  ;;  %v1493_v10 = vadd.f32 %v1492_v50, %v3081_v2 }
 0x220   :  { %1875 = vst [vmem:[#allocation8 + $0x3d0] sm:$0xff] %v1042_v23  ;;  %1877 = vst [vmem:[#allocation8 + $0x3e0] sm:$0xff] %v1491_v26 }
 0x221   :  { %1876 = vst [vmem:[#allocation8 + $0x3d8] sm:$0xff] %v1044_v32  ;;  %1878 = vst [vmem:[#allocation8 + $0x3e8] sm:$0xff] %v1493_v10  ;;  %v1047_v12 = vpop.f32.mrb[106].mxu1  ;;  %v1496_v30 = vpop.f32.mrb[106].mxu0 }
 0x222   :  { %v1048_v33 = vadd.f32 %v1047_v12, %v3070_v6  ;;  %v1497_v39 = vadd.f32 %v1496_v30, %v3073_v22  ;;  %v1049_v13 = vpop.f32.mrb[107].mxu1  ;;  %v1498_v44 = vpop.f32.mrb[107].mxu0 }
 0x223   :  { %v1050_v27 = vadd.f32 %v1049_v13, %v3077_v17  ;;  %v1499_v47 = vadd.f32 %v1498_v44, %v3081_v2 }
 0x224   :  { %1881 = vst [vmem:[#allocation8 + $0x400] sm:$0xff] %v1048_v33  ;;  %1883 = vst [vmem:[#allocation8 + $0x410] sm:$0xff] %v1497_v39 }
 0x225   :  { %1882 = vst [vmem:[#allocation8 + $0x408] sm:$0xff] %v1050_v27  ;;  %1884 = vst [vmem:[#allocation8 + $0x418] sm:$0xff] %v1499_v47  ;;  %v1053_v54 = vpop.f32.mrb[108].mxu1  ;;  %v1502_v56 = vpop.f32.mrb[108].mxu0 }
 0x226   :  { %v1054_v58 = vadd.f32 %v1053_v54, %v3070_v6  ;;  %v1503_v63 = vadd.f32 %v1502_v56, %v3073_v22  ;;  %v1055_v37 = vpop.f32.mrb[109].mxu1  ;;  %v1504_v5 = vpop.f32.mrb[109].mxu0 }
 0x227   :  { %v1056_v45 = vadd.f32 %v1055_v37, %v3077_v17  ;;  %v1505_v8 = vadd.f32 %v1504_v5, %v3081_v2 }
 0x228   :  { %1887 = vst [vmem:[#allocation8 + $0x430] sm:$0xff] %v1054_v58  ;;  %1889 = vst [vmem:[#allocation8 + $0x440] sm:$0xff] %v1503_v63 }
 0x229   :  { %1888 = vst [vmem:[#allocation8 + $0x438] sm:$0xff] %v1056_v45  ;;  %1890 = vst [vmem:[#allocation8 + $0x448] sm:$0xff] %v1505_v8  ;;  %v1059_v11 = vpop.f32.mrb[110].mxu1  ;;  %v1508_v14 = vpop.f32.mrb[110].mxu0 }
 0x22a   :  { %v1060_v19 = vadd.f32 %v1059_v11, %v3070_v6  ;;  %v1509_v25 = vadd.f32 %v1508_v14, %v3073_v22  ;;  %v1061_v28 = vpop.f32.mrb[111].mxu1  ;;  %v1510_v31 = vpop.f32.mrb[111].mxu0 }
 0x22b   :  { %v1062_v7 = vadd.f32 %v1061_v28, %v3077_v17  ;;  %v1511_v36 = vadd.f32 %v1510_v31, %v3081_v2 }
 0x22c   :  { %1893 = vst [vmem:[#allocation8 + $0x460] sm:$0xff] %v1060_v19  ;;  %1895 = vst [vmem:[#allocation8 + $0x470] sm:$0xff] %v1509_v25 }
 0x22d   :  { %1894 = vst [vmem:[#allocation8 + $0x468] sm:$0xff] %v1062_v7  ;;  %1896 = vst [vmem:[#allocation8 + $0x478] sm:$0xff] %v1511_v36  ;;  %v1065_v43 = vpop.f32.mrb[112].mxu1  ;;  %v1514_v53 = vpop.f32.mrb[112].mxu0 }
 0x22e   :  { %v1066_v35 = vadd.f32 %v1065_v43, %v3070_v6  ;;  %v1515_v59 = vadd.f32 %v1514_v53, %v3073_v22  ;;  %v1067_v57 = vpop.f32.mrb[113].mxu1  ;;  %v1516_v29 = vpop.f32.mrb[113].mxu0 }
 0x22f   :  { %v1068_v3 = vadd.f32 %v1067_v57, %v3077_v17  ;;  %v1517_v55 = vadd.f32 %v1516_v29, %v3081_v2 }
 0x230   :  { %1899 = vst [vmem:[#allocation8 + $0x490] sm:$0xff] %v1066_v35  ;;  %1901 = vst [vmem:[#allocation8 + $0x4a0] sm:$0xff] %v1515_v59 }
 0x231   :  { %1900 = vst [vmem:[#allocation8 + $0x498] sm:$0xff] %v1068_v3  ;;  %1902 = vst [vmem:[#allocation8 + $0x4a8] sm:$0xff] %v1517_v55  ;;  %v1071_v21 = vpop.f32.mrb[114].mxu1  ;;  %v1520_v48 = vpop.f32.mrb[114].mxu0 }
 0x232   :  { %v1072_v0 = vadd.f32 %v1071_v21, %v3070_v6  ;;  %v1521_v16 = vadd.f32 %v1520_v48, %v3073_v22  ;;  %v1073_v9 = vpop.f32.mrb[115].mxu1  ;;  %v1522_v34 = vpop.f32.mrb[115].mxu0 }
 0x233   :  { %v1074_v49 = vadd.f32 %v1073_v9, %v3077_v17  ;;  %v1523_v15 = vadd.f32 %v1522_v34, %v3081_v2 }
 0x234   :  { %1905 = vst [vmem:[#allocation8 + $0x4c0] sm:$0xff] %v1072_v0  ;;  %1907 = vst [vmem:[#allocation8 + $0x4d0] sm:$0xff] %v1521_v16 }
 0x235   :  { %1906 = vst [vmem:[#allocation8 + $0x4c8] sm:$0xff] %v1074_v49  ;;  %1908 = vst [vmem:[#allocation8 + $0x4d8] sm:$0xff] %v1523_v15  ;;  %v1077_v51 = vpop.f32.mrb[116].mxu1  ;;  %v1526_v4 = vpop.f32.mrb[116].mxu0 }
 0x236   :  { %v1078_v24 = vadd.f32 %v1077_v51, %v3070_v6  ;;  %v1527_v40 = vadd.f32 %v1526_v4, %v3073_v22  ;;  %v1079_v42 = vpop.f32.mrb[117].mxu1  ;;  %v1528_v60 = vpop.f32.mrb[117].mxu0 }
 0x237   :  { %v1080_v62 = vadd.f32 %v1079_v42, %v3077_v17  ;;  %v1529_v52 = vadd.f32 %v1528_v60, %v3081_v2 }
 0x238   :  { %1911 = vst [vmem:[#allocation8 + $0x4f0] sm:$0xff] %v1078_v24  ;;  %1913 = vst [vmem:[#allocation8 + $0x500] sm:$0xff] %v1527_v40 }
 0x239   :  { %1912 = vst [vmem:[#allocation8 + $0x4f8] sm:$0xff] %v1080_v62  ;;  %1914 = vst [vmem:[#allocation8 + $0x508] sm:$0xff] %v1529_v52  ;;  %v1083_v20 = vpop.f32.mrb[118].mxu1  ;;  %v1532_v38 = vpop.f32.mrb[118].mxu0 }
 0x23a   :  { %v1084_v41 = vadd.f32 %v1083_v20, %v3070_v6  ;;  %v1533_v18 = vadd.f32 %v1532_v38, %v3073_v22  ;;  %v1085_v61 = vpop.f32.mrb[119].mxu1  ;;  %v1534_v1 = vpop.f32.mrb[119].mxu0 }
 0x23b   :  { %v1086_v23 = vadd.f32 %v1085_v61, %v3077_v17  ;;  %v1535_v26 = vadd.f32 %v1534_v1, %v3081_v2 }
 0x23c   :  { %1917 = vst [vmem:[#allocation8 + $0x520] sm:$0xff] %v1084_v41  ;;  %1919 = vst [vmem:[#allocation8 + $0x530] sm:$0xff] %v1533_v18 }
 0x23d   :  { %1918 = vst [vmem:[#allocation8 + $0x528] sm:$0xff] %v1086_v23  ;;  %1920 = vst [vmem:[#allocation8 + $0x538] sm:$0xff] %v1535_v26  ;;  %v1089_v46 = vpop.f32.mrb[120].mxu1  ;;  %v1538_v50 = vpop.f32.mrb[120].mxu0 }
 0x23e   :  { %v1090_v32 = vadd.f32 %v1089_v46, %v3070_v6  ;;  %v1539_v10 = vadd.f32 %v1538_v50, %v3073_v22  ;;  %v1091_v12 = vpop.f32.mrb[121].mxu1  ;;  %v1540_v30 = vpop.f32.mrb[121].mxu0 }
 0x23f   :  { %v1092_v33 = vadd.f32 %v1091_v12, %v3077_v17  ;;  %v1541_v39 = vadd.f32 %v1540_v30, %v3081_v2 }
 0x240   :  { %1923 = vst [vmem:[#allocation8 + $0x550] sm:$0xff] %v1090_v32  ;;  %1925 = vst [vmem:[#allocation8 + $0x560] sm:$0xff] %v1539_v10 }
 0x241   :  { %1924 = vst [vmem:[#allocation8 + $0x558] sm:$0xff] %v1092_v33  ;;  %1926 = vst [vmem:[#allocation8 + $0x568] sm:$0xff] %v1541_v39  ;;  %v1095_v13 = vpop.f32.mrb[122].mxu1  ;;  %v1544_v44 = vpop.f32.mrb[122].mxu0 }
 0x242   :  { %v1096_v27 = vadd.f32 %v1095_v13, %v3070_v6  ;;  %v1545_v47 = vadd.f32 %v1544_v44, %v3073_v22  ;;  %v1097_v54 = vpop.f32.mrb[123].mxu1  ;;  %v1546_v56 = vpop.f32.mrb[123].mxu0 }
 0x243   :  { %v1098_v58 = vadd.f32 %v1097_v54, %v3077_v17  ;;  %v1547_v63 = vadd.f32 %v1546_v56, %v3081_v2 }
 0x244   :  { %1929 = vst [vmem:[#allocation8 + $0x580] sm:$0xff] %v1096_v27  ;;  %1931 = vst [vmem:[#allocation8 + $0x590] sm:$0xff] %v1545_v47 }
 0x245   :  { %1930 = vst [vmem:[#allocation8 + $0x588] sm:$0xff] %v1098_v58  ;;  %1932 = vst [vmem:[#allocation8 + $0x598] sm:$0xff] %v1547_v63  ;;  %v1101_v37 = vpop.f32.mrb[124].mxu1  ;;  %v1550_v5 = vpop.f32.mrb[124].mxu0 }
 0x246   :  { %v1102_v45 = vadd.f32 %v1101_v37, %v3070_v6  ;;  %v1551_v8 = vadd.f32 %v1550_v5, %v3073_v22  ;;  %v1103_v11 = vpop.f32.mrb[125].mxu1  ;;  %v1552_v14 = vpop.f32.mrb[125].mxu0 }
 0x247   :  { %v1104_v19 = vadd.f32 %v1103_v11, %v3077_v17  ;;  %v1553_v25 = vadd.f32 %v1552_v14, %v3081_v2 }
 0x248   :  { %1935 = vst [vmem:[#allocation8 + $0x5b0] sm:$0xff] %v1102_v45  ;;  %1937 = vst [vmem:[#allocation8 + $0x5c0] sm:$0xff] %v1551_v8 }
 0x249   :  { %1936 = vst [vmem:[#allocation8 + $0x5b8] sm:$0xff] %v1104_v19  ;;  %1938 = vst [vmem:[#allocation8 + $0x5c8] sm:$0xff] %v1553_v25  ;;  %v1107_v28 = vpop.f32.mrb[126].mxu1  ;;  %v1556_v31 = vpop.f32.mrb[126].mxu0 }
 0x24a   :  { %v1108_v7 = vadd.f32 %v1107_v28, %v3070_v6  ;;  %v1557_v36 = vadd.f32 %v1556_v31, %v3073_v22  ;;  %v1109_v43 = vpop.f32.mrb[127].mxu1  ;;  %v1558_v53 = vpop.f32.mrb[127].mxu0 }
 0x24b   :  { %v1110_v35 = vadd.f32 %v1109_v43, %v3077_v17  ;;  %v1559_v59 = vadd.f32 %v1558_v53, %v3081_v2 }
 0x24c   :  { %1941 = vst [vmem:[#allocation8 + $0x5e0] sm:$0xff] %v1108_v7  ;;  %1943 = vst [vmem:[#allocation8 + $0x5f0] sm:$0xff] %v1557_v36 }
 0x24d   :  { %1942 = vst [vmem:[#allocation8 + $0x5e8] sm:$0xff] %v1110_v35  ;;  %1944 = vst [vmem:[#allocation8 + $0x5f8] sm:$0xff] %v1559_v59  ;;  %v1113_v57 = vpop.f32.mrb[128].mxu1  ;;  %v1562_v29 = vpop.f32.mrb[128].mxu0 }
 0x24e   :  { %v1114_v3 = vadd.f32 %v1113_v57, %v3070_v6  ;;  %v1563_v55 = vadd.f32 %v1562_v29, %v3073_v22  ;;  %v1115_v21 = vpop.f32.mrb[129].mxu1  ;;  %v1564_v48 = vpop.f32.mrb[129].mxu0 }
 0x24f   :  { %v1116_v0 = vadd.f32 %v1115_v21, %v3077_v17  ;;  %v1565_v16 = vadd.f32 %v1564_v48, %v3081_v2 }
 0x250   :  { %1947 = vst [vmem:[#allocation8 + $0x610] sm:$0xff] %v1114_v3  ;;  %1949 = vst [vmem:[#allocation8 + $0x620] sm:$0xff] %v1563_v55 }
 0x251   :  { %1948 = vst [vmem:[#allocation8 + $0x618] sm:$0xff] %v1116_v0  ;;  %1950 = vst [vmem:[#allocation8 + $0x628] sm:$0xff] %v1565_v16  ;;  %v1119_v9 = vpop.f32.mrb[130].mxu1  ;;  %v1568_v34 = vpop.f32.mrb[130].mxu0 }
 0x252   :  { %v1120_v49 = vadd.f32 %v1119_v9, %v3070_v6  ;;  %v1569_v15 = vadd.f32 %v1568_v34, %v3073_v22  ;;  %v1121_v51 = vpop.f32.mrb[131].mxu1  ;;  %v1570_v4 = vpop.f32.mrb[131].mxu0 }
 0x253   :  { %v1122_v24 = vadd.f32 %v1121_v51, %v3077_v17  ;;  %v1571_v40 = vadd.f32 %v1570_v4, %v3081_v2 }
 0x254   :  { %1953 = vst [vmem:[#allocation8 + $0x640] sm:$0xff] %v1120_v49  ;;  %1955 = vst [vmem:[#allocation8 + $0x650] sm:$0xff] %v1569_v15 }
 0x255   :  { %1954 = vst [vmem:[#allocation8 + $0x648] sm:$0xff] %v1122_v24  ;;  %1956 = vst [vmem:[#allocation8 + $0x658] sm:$0xff] %v1571_v40  ;;  %v1125_v42 = vpop.f32.mrb[132].mxu1  ;;  %v1574_v60 = vpop.f32.mrb[132].mxu0 }
 0x256   :  { %v1126_v62 = vadd.f32 %v1125_v42, %v3070_v6  ;;  %v1575_v52 = vadd.f32 %v1574_v60, %v3073_v22  ;;  %v1127_v20 = vpop.f32.mrb[133].mxu1  ;;  %v1576_v38 = vpop.f32.mrb[133].mxu0 }
 0x257   :  { %v1128_v41 = vadd.f32 %v1127_v20, %v3077_v17  ;;  %v1577_v18 = vadd.f32 %v1576_v38, %v3081_v2 }
 0x258   :  { %1959 = vst [vmem:[#allocation8 + $0x670] sm:$0xff] %v1126_v62  ;;  %1961 = vst [vmem:[#allocation8 + $0x680] sm:$0xff] %v1575_v52 }
 0x259   :  { %1960 = vst [vmem:[#allocation8 + $0x678] sm:$0xff] %v1128_v41  ;;  %1962 = vst [vmem:[#allocation8 + $0x688] sm:$0xff] %v1577_v18  ;;  %v1131_v61 = vpop.f32.mrb[134].mxu1  ;;  %v1580_v1 = vpop.f32.mrb[134].mxu0 }
 0x25a   :  { %v1132_v23 = vadd.f32 %v1131_v61, %v3070_v6  ;;  %v1581_v26 = vadd.f32 %v1580_v1, %v3073_v22  ;;  %v1133_v46 = vpop.f32.mrb[135].mxu1  ;;  %v1582_v50 = vpop.f32.mrb[135].mxu0 }
 0x25b   :  { %v1134_v32 = vadd.f32 %v1133_v46, %v3077_v17  ;;  %v1583_v10 = vadd.f32 %v1582_v50, %v3081_v2 }
 0x25c   :  { %1965 = vst [vmem:[#allocation8 + $0x6a0] sm:$0xff] %v1132_v23  ;;  %1967 = vst [vmem:[#allocation8 + $0x6b0] sm:$0xff] %v1581_v26 }
 0x25d   :  { %1966 = vst [vmem:[#allocation8 + $0x6a8] sm:$0xff] %v1134_v32  ;;  %1968 = vst [vmem:[#allocation8 + $0x6b8] sm:$0xff] %v1583_v10  ;;  %v1137_v12 = vpop.f32.mrb[136].mxu1  ;;  %v1586_v30 = vpop.f32.mrb[136].mxu0 }
 0x25e   :  { %v1138_v33 = vadd.f32 %v1137_v12, %v3070_v6  ;;  %v1587_v39 = vadd.f32 %v1586_v30, %v3073_v22  ;;  %v1139_v13 = vpop.f32.mrb[137].mxu1  ;;  %v1588_v44 = vpop.f32.mrb[137].mxu0 }
 0x25f   :  { %v1140_v27 = vadd.f32 %v1139_v13, %v3077_v17  ;;  %v1589_v47 = vadd.f32 %v1588_v44, %v3081_v2 }
 0x260   :  { %1971 = vst [vmem:[#allocation8 + $0x6d0] sm:$0xff] %v1138_v33  ;;  %1973 = vst [vmem:[#allocation8 + $0x6e0] sm:$0xff] %v1587_v39 }
 0x261   :  { %1972 = vst [vmem:[#allocation8 + $0x6d8] sm:$0xff] %v1140_v27  ;;  %1974 = vst [vmem:[#allocation8 + $0x6e8] sm:$0xff] %v1589_v47  ;;  %v1143_v54 = vpop.f32.mrb[138].mxu1  ;;  %v1592_v56 = vpop.f32.mrb[138].mxu0 }
 0x262   :  { %v1144_v58 = vadd.f32 %v1143_v54, %v3070_v6  ;;  %v1593_v63 = vadd.f32 %v1592_v56, %v3073_v22  ;;  %v1145_v37 = vpop.f32.mrb[139].mxu1  ;;  %v1594_v5 = vpop.f32.mrb[139].mxu0 }
 0x263   :  { %v1146_v45 = vadd.f32 %v1145_v37, %v3077_v17  ;;  %v1595_v8 = vadd.f32 %v1594_v5, %v3081_v2 }
 0x264   :  { %1977 = vst [vmem:[#allocation8 + $0x700] sm:$0xff] %v1144_v58  ;;  %1979 = vst [vmem:[#allocation8 + $0x710] sm:$0xff] %v1593_v63 }
 0x265   :  { %1978 = vst [vmem:[#allocation8 + $0x708] sm:$0xff] %v1146_v45  ;;  %1980 = vst [vmem:[#allocation8 + $0x718] sm:$0xff] %v1595_v8  ;;  %v1149_v11 = vpop.f32.mrb[140].mxu1  ;;  %v1598_v14 = vpop.f32.mrb[140].mxu0 }
 0x266   :  { %v1150_v19 = vadd.f32 %v1149_v11, %v3070_v6  ;;  %v1599_v25 = vadd.f32 %v1598_v14, %v3073_v22  ;;  %v1151_v28 = vpop.f32.mrb[141].mxu1  ;;  %v1600_v31 = vpop.f32.mrb[141].mxu0 }
 0x267   :  { %v1152_v7 = vadd.f32 %v1151_v28, %v3077_v17  ;;  %v1601_v36 = vadd.f32 %v1600_v31, %v3081_v2 }
 0x268   :  { %1983 = vst [vmem:[#allocation8 + $0x730] sm:$0xff] %v1150_v19  ;;  %1985 = vst [vmem:[#allocation8 + $0x740] sm:$0xff] %v1599_v25 }
 0x269   :  { %1984 = vst [vmem:[#allocation8 + $0x738] sm:$0xff] %v1152_v7  ;;  %1986 = vst [vmem:[#allocation8 + $0x748] sm:$0xff] %v1601_v36  ;;  %v1155_v43 = vpop.f32.mrb[142].mxu1  ;;  %v1604_v53 = vpop.f32.mrb[142].mxu0 }
 0x26a   :  { %v1156_v35 = vadd.f32 %v1155_v43, %v3070_v6  ;;  %v1605_v59 = vadd.f32 %v1604_v53, %v3073_v22  ;;  %v1157_v57 = vpop.f32.mrb[143].mxu1  ;;  %v1606_v29 = vpop.f32.mrb[143].mxu0 }
 0x26b   :  { %v1158_v3 = vadd.f32 %v1157_v57, %v3077_v17  ;;  %v1607_v55 = vadd.f32 %v1606_v29, %v3081_v2 }
 0x26c   :  { %1989 = vst [vmem:[#allocation8 + $0x760] sm:$0xff] %v1156_v35  ;;  %1991 = vst [vmem:[#allocation8 + $0x770] sm:$0xff] %v1605_v59 }
 0x26d   :  { %1990 = vst [vmem:[#allocation8 + $0x768] sm:$0xff] %v1158_v3  ;;  %1992 = vst [vmem:[#allocation8 + $0x778] sm:$0xff] %v1607_v55  ;;  %v1161_v21 = vpop.f32.mrb[144].mxu1  ;;  %v1610_v48 = vpop.f32.mrb[144].mxu0 }
 0x26e   :  { %v1162_v0 = vadd.f32 %v1161_v21, %v3070_v6  ;;  %v1611_v16 = vadd.f32 %v1610_v48, %v3073_v22  ;;  %v1163_v9 = vpop.f32.mrb[145].mxu1  ;;  %v1612_v34 = vpop.f32.mrb[145].mxu0 }
 0x26f   :  { %v1164_v49 = vadd.f32 %v1163_v9, %v3077_v17  ;;  %v1613_v15 = vadd.f32 %v1612_v34, %v3081_v2 }
 0x270   :  { %1995 = vst [vmem:[#allocation8 + $0x790] sm:$0xff] %v1162_v0  ;;  %1997 = vst [vmem:[#allocation8 + $0x7a0] sm:$0xff] %v1611_v16 }
 0x271   :  { %1996 = vst [vmem:[#allocation8 + $0x798] sm:$0xff] %v1164_v49  ;;  %1998 = vst [vmem:[#allocation8 + $0x7a8] sm:$0xff] %v1613_v15  ;;  %v1167_v51 = vpop.f32.mrb[146].mxu1  ;;  %v1616_v4 = vpop.f32.mrb[146].mxu0 }
 0x272   :  { %v1168_v24 = vadd.f32 %v1167_v51, %v3070_v6  ;;  %v1617_v40 = vadd.f32 %v1616_v4, %v3073_v22  ;;  %v1169_v42 = vpop.f32.mrb[147].mxu1  ;;  %v1618_v60 = vpop.f32.mrb[147].mxu0 }
 0x273   :  { %v1170_v62 = vadd.f32 %v1169_v42, %v3077_v17  ;;  %v1619_v52 = vadd.f32 %v1618_v60, %v3081_v2 }
 0x274   :  { %2001 = vst [vmem:[#allocation8 + $0x7c0] sm:$0xff] %v1168_v24  ;;  %2003 = vst [vmem:[#allocation8 + $0x7d0] sm:$0xff] %v1617_v40 }
 0x275   :  { %2002 = vst [vmem:[#allocation8 + $0x7c8] sm:$0xff] %v1170_v62  ;;  %2004 = vst [vmem:[#allocation8 + $0x7d8] sm:$0xff] %v1619_v52  ;;  %v1173_v20 = vpop.f32.mrb[148].mxu1  ;;  %v1622_v38 = vpop.f32.mrb[148].mxu0 }
 0x276   :  { %v1174_v41 = vadd.f32 %v1173_v20, %v3070_v6  ;;  %v1623_v18 = vadd.f32 %v1622_v38, %v3073_v22  ;;  %v1175_v61 = vpop.f32.mrb[149].mxu1  ;;  %v1624_v1 = vpop.f32.mrb[149].mxu0 }
 0x277   :  { %v1176_v23 = vadd.f32 %v1175_v61, %v3077_v17  ;;  %v1625_v26 = vadd.f32 %v1624_v1, %v3081_v2 }
 0x278   :  { %2007 = vst [vmem:[#allocation8 + $0x7f0] sm:$0xff] %v1174_v41  ;;  %2009 = vst [vmem:[#allocation8 + $0x800] sm:$0xff] %v1623_v18 }
 0x279   :  { %2008 = vst [vmem:[#allocation8 + $0x7f8] sm:$0xff] %v1176_v23  ;;  %2010 = vst [vmem:[#allocation8 + $0x808] sm:$0xff] %v1625_v26  ;;  %v1179_v46 = vpop.f32.mrb[150].mxu1  ;;  %v1628_v50 = vpop.f32.mrb[150].mxu0 }
 0x27a   :  { %v1180_v32 = vadd.f32 %v1179_v46, %v3070_v6  ;;  %v1629_v10 = vadd.f32 %v1628_v50, %v3073_v22  ;;  %v1181_v12 = vpop.f32.mrb[151].mxu1  ;;  %v1630_v30 = vpop.f32.mrb[151].mxu0 }
 0x27b   :  { %v1182_v33 = vadd.f32 %v1181_v12, %v3077_v17  ;;  %v1631_v39 = vadd.f32 %v1630_v30, %v3081_v2 }
 0x27c   :  { %2013 = vst [vmem:[#allocation8 + $0x820] sm:$0xff] %v1180_v32  ;;  %2015 = vst [vmem:[#allocation8 + $0x830] sm:$0xff] %v1629_v10 }
 0x27d   :  { %2014 = vst [vmem:[#allocation8 + $0x828] sm:$0xff] %v1182_v33  ;;  %2016 = vst [vmem:[#allocation8 + $0x838] sm:$0xff] %v1631_v39  ;;  %v1185_v13 = vpop.f32.mrb[152].mxu1  ;;  %v1634_v44 = vpop.f32.mrb[152].mxu0 }
 0x27e   :  { %v1186_v27 = vadd.f32 %v1185_v13, %v3070_v6  ;;  %v1635_v47 = vadd.f32 %v1634_v44, %v3073_v22  ;;  %v1187_v54 = vpop.f32.mrb[153].mxu1  ;;  %v1636_v56 = vpop.f32.mrb[153].mxu0 }
 0x27f   :  { %v1188_v58 = vadd.f32 %v1187_v54, %v3077_v17  ;;  %v1637_v63 = vadd.f32 %v1636_v56, %v3081_v2 }
 0x280   :  { %2019 = vst [vmem:[#allocation8 + $0x850] sm:$0xff] %v1186_v27  ;;  %2021 = vst [vmem:[#allocation8 + $0x860] sm:$0xff] %v1635_v47 }
 0x281   :  { %2020 = vst [vmem:[#allocation8 + $0x858] sm:$0xff] %v1188_v58  ;;  %2022 = vst [vmem:[#allocation8 + $0x868] sm:$0xff] %v1637_v63  ;;  %v1191_v37 = vpop.f32.mrb[154].mxu1  ;;  %v1640_v5 = vpop.f32.mrb[154].mxu0 }
 0x282   :  { %v1192_v45 = vadd.f32 %v1191_v37, %v3070_v6  ;;  %v1641_v8 = vadd.f32 %v1640_v5, %v3073_v22  ;;  %v1193_v11 = vpop.f32.mrb[155].mxu1  ;;  %v1642_v14 = vpop.f32.mrb[155].mxu0 }
 0x283   :  { %v1194_v19 = vadd.f32 %v1193_v11, %v3077_v17  ;;  %v1643_v25 = vadd.f32 %v1642_v14, %v3081_v2 }
 0x284   :  { %2025 = vst [vmem:[#allocation8 + $0x880] sm:$0xff] %v1192_v45  ;;  %2027 = vst [vmem:[#allocation8 + $0x890] sm:$0xff] %v1641_v8 }
 0x285   :  { %2026 = vst [vmem:[#allocation8 + $0x888] sm:$0xff] %v1194_v19  ;;  %2028 = vst [vmem:[#allocation8 + $0x898] sm:$0xff] %v1643_v25  ;;  %v1197_v28 = vpop.f32.mrb[156].mxu1  ;;  %v1646_v31 = vpop.f32.mrb[156].mxu0 }
 0x286   :  { %v1198_v7 = vadd.f32 %v1197_v28, %v3070_v6  ;;  %v1647_v36 = vadd.f32 %v1646_v31, %v3073_v22  ;;  %v1199_v43 = vpop.f32.mrb[157].mxu1  ;;  %v1648_v53 = vpop.f32.mrb[157].mxu0 }
 0x287   :  { %v1200_v35 = vadd.f32 %v1199_v43, %v3077_v17  ;;  %v1649_v59 = vadd.f32 %v1648_v53, %v3081_v2 }
 0x288   :  { %2031 = vst [vmem:[#allocation8 + $0x8b0] sm:$0xff] %v1198_v7  ;;  %2033 = vst [vmem:[#allocation8 + $0x8c0] sm:$0xff] %v1647_v36 }
 0x289   :  { %2032 = vst [vmem:[#allocation8 + $0x8b8] sm:$0xff] %v1200_v35  ;;  %2034 = vst [vmem:[#allocation8 + $0x8c8] sm:$0xff] %v1649_v59  ;;  %v1203_v57 = vpop.f32.mrb[158].mxu1  ;;  %v1652_v29 = vpop.f32.mrb[158].mxu0 }
 0x28a   :  { %v1204_v3 = vadd.f32 %v1203_v57, %v3070_v6  ;;  %v1653_v55 = vadd.f32 %v1652_v29, %v3073_v22  ;;  %v1205_v21 = vpop.f32.mrb[159].mxu1  ;;  %v1654_v48 = vpop.f32.mrb[159].mxu0 }
 0x28b   :  { %v1206_v0 = vadd.f32 %v1205_v21, %v3077_v17  ;;  %v1655_v16 = vadd.f32 %v1654_v48, %v3081_v2 }
 0x28c   :  { %2037 = vst [vmem:[#allocation8 + $0x8e0] sm:$0xff] %v1204_v3  ;;  %2039 = vst [vmem:[#allocation8 + $0x8f0] sm:$0xff] %v1653_v55 }
 0x28d   :  { %2038 = vst [vmem:[#allocation8 + $0x8e8] sm:$0xff] %v1206_v0  ;;  %2040 = vst [vmem:[#allocation8 + $0x8f8] sm:$0xff] %v1655_v16  ;;  %v1209_v9 = vpop.f32.mrb[160].mxu1  ;;  %v1658_v34 = vpop.f32.mrb[160].mxu0 }
 0x28e   :  { %v1210_v49 = vadd.f32 %v1209_v9, %v3070_v6  ;;  %v1659_v15 = vadd.f32 %v1658_v34, %v3073_v22  ;;  %v1211_v51 = vpop.f32.mrb[161].mxu1  ;;  %v1660_v4 = vpop.f32.mrb[161].mxu0 }
 0x28f   :  { %v1212_v24 = vadd.f32 %v1211_v51, %v3077_v17  ;;  %v1661_v40 = vadd.f32 %v1660_v4, %v3081_v2 }
 0x290   :  { %2043 = vst [vmem:[#allocation8 + $0x910] sm:$0xff] %v1210_v49  ;;  %2045 = vst [vmem:[#allocation8 + $0x920] sm:$0xff] %v1659_v15 }
 0x291   :  { %2044 = vst [vmem:[#allocation8 + $0x918] sm:$0xff] %v1212_v24  ;;  %2046 = vst [vmem:[#allocation8 + $0x928] sm:$0xff] %v1661_v40  ;;  %v1215_v42 = vpop.f32.mrb[162].mxu1  ;;  %v1664_v60 = vpop.f32.mrb[162].mxu0 }
 0x292   :  { %v1216_v62 = vadd.f32 %v1215_v42, %v3070_v6  ;;  %v1665_v52 = vadd.f32 %v1664_v60, %v3073_v22  ;;  %v1217_v20 = vpop.f32.mrb[163].mxu1  ;;  %v1666_v38 = vpop.f32.mrb[163].mxu0 }
 0x293   :  { %v1218_v41 = vadd.f32 %v1217_v20, %v3077_v17  ;;  %v1667_v18 = vadd.f32 %v1666_v38, %v3081_v2 }
 0x294   :  { %2049 = vst [vmem:[#allocation8 + $0x940] sm:$0xff] %v1216_v62  ;;  %2051 = vst [vmem:[#allocation8 + $0x950] sm:$0xff] %v1665_v52 }
 0x295   :  { %2050 = vst [vmem:[#allocation8 + $0x948] sm:$0xff] %v1218_v41  ;;  %2052 = vst [vmem:[#allocation8 + $0x958] sm:$0xff] %v1667_v18  ;;  %v1221_v61 = vpop.f32.mrb[164].mxu1  ;;  %v1670_v1 = vpop.f32.mrb[164].mxu0 }
 0x296   :  { %v1222_v23 = vadd.f32 %v1221_v61, %v3070_v6  ;;  %v1671_v26 = vadd.f32 %v1670_v1, %v3073_v22  ;;  %v1223_v46 = vpop.f32.mrb[165].mxu1  ;;  %v1672_v50 = vpop.f32.mrb[165].mxu0 }
 0x297   :  { %v1224_v32 = vadd.f32 %v1223_v46, %v3077_v17  ;;  %v1673_v10 = vadd.f32 %v1672_v50, %v3081_v2 }
 0x298   :  { %2055 = vst [vmem:[#allocation8 + $0x970] sm:$0xff] %v1222_v23  ;;  %2057 = vst [vmem:[#allocation8 + $0x980] sm:$0xff] %v1671_v26 }
 0x299   :  { %2056 = vst [vmem:[#allocation8 + $0x978] sm:$0xff] %v1224_v32  ;;  %2058 = vst [vmem:[#allocation8 + $0x988] sm:$0xff] %v1673_v10  ;;  %v1227_v12 = vpop.f32.mrb[166].mxu1  ;;  %v1676_v30 = vpop.f32.mrb[166].mxu0 }
 0x29a   :  { %v1228_v33 = vadd.f32 %v1227_v12, %v3070_v6  ;;  %v1677_v39 = vadd.f32 %v1676_v30, %v3073_v22  ;;  %v1229_v13 = vpop.f32.mrb[167].mxu1  ;;  %v1678_v44 = vpop.f32.mrb[167].mxu0 }
 0x29b   :  { %v1230_v27 = vadd.f32 %v1229_v13, %v3077_v17  ;;  %v1679_v47 = vadd.f32 %v1678_v44, %v3081_v2 }
 0x29c   :  { %2061 = vst [vmem:[#allocation8 + $0x9a0] sm:$0xff] %v1228_v33  ;;  %2063 = vst [vmem:[#allocation8 + $0x9b0] sm:$0xff] %v1677_v39 }
 0x29d   :  { %2062 = vst [vmem:[#allocation8 + $0x9a8] sm:$0xff] %v1230_v27  ;;  %2064 = vst [vmem:[#allocation8 + $0x9b8] sm:$0xff] %v1679_v47  ;;  %v1233_v54 = vpop.f32.mrb[168].mxu1  ;;  %v1682_v56 = vpop.f32.mrb[168].mxu0 }
 0x29e   :  { %v1234_v58 = vadd.f32 %v1233_v54, %v3070_v6  ;;  %v1683_v63 = vadd.f32 %v1682_v56, %v3073_v22  ;;  %v1235_v37 = vpop.f32.mrb[169].mxu1  ;;  %v1684_v5 = vpop.f32.mrb[169].mxu0 }
 0x29f   :  { %v1236_v45 = vadd.f32 %v1235_v37, %v3077_v17  ;;  %v1685_v8 = vadd.f32 %v1684_v5, %v3081_v2 }
 0x2a0   :  { %2067 = vst [vmem:[#allocation8 + $0x9d0] sm:$0xff] %v1234_v58  ;;  %2069 = vst [vmem:[#allocation8 + $0x9e0] sm:$0xff] %v1683_v63 }
 0x2a1   :  { %2068 = vst [vmem:[#allocation8 + $0x9d8] sm:$0xff] %v1236_v45  ;;  %2070 = vst [vmem:[#allocation8 + $0x9e8] sm:$0xff] %v1685_v8  ;;  %v1239_v11 = vpop.f32.mrb[170].mxu1  ;;  %v1688_v14 = vpop.f32.mrb[170].mxu0 }
 0x2a2   :  { %v1240_v19 = vadd.f32 %v1239_v11, %v3070_v6  ;;  %v1689_v25 = vadd.f32 %v1688_v14, %v3073_v22  ;;  %v1241_v28 = vpop.f32.mrb[171].mxu1  ;;  %v1690_v31 = vpop.f32.mrb[171].mxu0 }
 0x2a3   :  { %v1242_v7 = vadd.f32 %v1241_v28, %v3077_v17  ;;  %v1691_v36 = vadd.f32 %v1690_v31, %v3081_v2 }
 0x2a4   :  { %2073 = vst [vmem:[#allocation8 + $0xa00] sm:$0xff] %v1240_v19  ;;  %2075 = vst [vmem:[#allocation8 + $0xa10] sm:$0xff] %v1689_v25 }
 0x2a5   :  { %2074 = vst [vmem:[#allocation8 + $0xa08] sm:$0xff] %v1242_v7  ;;  %2076 = vst [vmem:[#allocation8 + $0xa18] sm:$0xff] %v1691_v36  ;;  %v1245_v43 = vpop.f32.mrb[172].mxu1  ;;  %v1694_v53 = vpop.f32.mrb[172].mxu0 }
 0x2a6   :  { %v1246_v35 = vadd.f32 %v1245_v43, %v3070_v6  ;;  %v1695_v59 = vadd.f32 %v1694_v53, %v3073_v22  ;;  %v1247_v57 = vpop.f32.mrb[173].mxu1  ;;  %v1696_v29 = vpop.f32.mrb[173].mxu0 }
 0x2a7   :  { %v1248_v3 = vadd.f32 %v1247_v57, %v3077_v17  ;;  %v1697_v55 = vadd.f32 %v1696_v29, %v3081_v2 }
 0x2a8   :  { %2079 = vst [vmem:[#allocation8 + $0xa30] sm:$0xff] %v1246_v35  ;;  %2081 = vst [vmem:[#allocation8 + $0xa40] sm:$0xff] %v1695_v59 }
 0x2a9   :  { %2080 = vst [vmem:[#allocation8 + $0xa38] sm:$0xff] %v1248_v3  ;;  %2082 = vst [vmem:[#allocation8 + $0xa48] sm:$0xff] %v1697_v55  ;;  %v1251_v21 = vpop.f32.mrb[174].mxu1  ;;  %v1700_v48 = vpop.f32.mrb[174].mxu0 }
 0x2aa   :  { %v1252_v0 = vadd.f32 %v1251_v21, %v3070_v6  ;;  %v1701_v16 = vadd.f32 %v1700_v48, %v3073_v22  ;;  %v1253_v9 = vpop.f32.mrb[175].mxu1  ;;  %v1702_v34 = vpop.f32.mrb[175].mxu0 }
 0x2ab   :  { %v1254_v49 = vadd.f32 %v1253_v9, %v3077_v17  ;;  %v1703_v15 = vadd.f32 %v1702_v34, %v3081_v2 }
 0x2ac   :  { %2085 = vst [vmem:[#allocation8 + $0xa60] sm:$0xff] %v1252_v0  ;;  %2087 = vst [vmem:[#allocation8 + $0xa70] sm:$0xff] %v1701_v16 }
 0x2ad   :  { %2086 = vst [vmem:[#allocation8 + $0xa68] sm:$0xff] %v1254_v49  ;;  %2088 = vst [vmem:[#allocation8 + $0xa78] sm:$0xff] %v1703_v15  ;;  %v1257_v51 = vpop.f32.mrb[176].mxu1  ;;  %v1706_v4 = vpop.f32.mrb[176].mxu0 }
 0x2ae   :  { %v1258_v24 = vadd.f32 %v1257_v51, %v3070_v6  ;;  %v1707_v40 = vadd.f32 %v1706_v4, %v3073_v22  ;;  %v1259_v42 = vpop.f32.mrb[177].mxu1  ;;  %v1708_v60 = vpop.f32.mrb[177].mxu0 }
 0x2af   :  { %v1260_v62 = vadd.f32 %v1259_v42, %v3077_v17  ;;  %v1709_v52 = vadd.f32 %v1708_v60, %v3081_v2 }
 0x2b0   :  { %2091 = vst [vmem:[#allocation8 + $0xa90] sm:$0xff] %v1258_v24  ;;  %2093 = vst [vmem:[#allocation8 + $0xaa0] sm:$0xff] %v1707_v40 }
 0x2b1   :  { %2092 = vst [vmem:[#allocation8 + $0xa98] sm:$0xff] %v1260_v62  ;;  %2094 = vst [vmem:[#allocation8 + $0xaa8] sm:$0xff] %v1709_v52  ;;  %v1263_v20 = vpop.f32.mrb[178].mxu1  ;;  %v1712_v38 = vpop.f32.mrb[178].mxu0 }
 0x2b2   :  { %v1264_v41 = vadd.f32 %v1263_v20, %v3070_v6  ;;  %v1713_v18 = vadd.f32 %v1712_v38, %v3073_v22  ;;  %v1265_v61 = vpop.f32.mrb[179].mxu1  ;;  %v1714_v1 = vpop.f32.mrb[179].mxu0 }
 0x2b3   :  { %v1266_v23 = vadd.f32 %v1265_v61, %v3077_v17  ;;  %v1715_v26 = vadd.f32 %v1714_v1, %v3081_v2 }
 0x2b4   :  { %2097 = vst [vmem:[#allocation8 + $0xac0] sm:$0xff] %v1264_v41  ;;  %2099 = vst [vmem:[#allocation8 + $0xad0] sm:$0xff] %v1713_v18 }
 0x2b5   :  { %2098 = vst [vmem:[#allocation8 + $0xac8] sm:$0xff] %v1266_v23  ;;  %2100 = vst [vmem:[#allocation8 + $0xad8] sm:$0xff] %v1715_v26  ;;  %v1269_v46 = vpop.f32.mrb[180].mxu1  ;;  %v1718_v50 = vpop.f32.mrb[180].mxu0 }
 0x2b6   :  { %v1270_v32 = vadd.f32 %v1269_v46, %v3070_v6  ;;  %v1719_v10 = vadd.f32 %v1718_v50, %v3073_v22  ;;  %v1271_v12 = vpop.f32.mrb[181].mxu1  ;;  %v1720_v30 = vpop.f32.mrb[181].mxu0 }
 0x2b7   :  { %v1272_v33 = vadd.f32 %v1271_v12, %v3077_v17  ;;  %v1721_v39 = vadd.f32 %v1720_v30, %v3081_v2 }
 0x2b8   :  { %2103 = vst [vmem:[#allocation8 + $0xaf0] sm:$0xff] %v1270_v32  ;;  %2105 = vst [vmem:[#allocation8 + $0xb00] sm:$0xff] %v1719_v10 }
 0x2b9   :  { %2104 = vst [vmem:[#allocation8 + $0xaf8] sm:$0xff] %v1272_v33  ;;  %2106 = vst [vmem:[#allocation8 + $0xb08] sm:$0xff] %v1721_v39  ;;  %v1275_v13 = vpop.f32.mrb[182].mxu1  ;;  %v1724_v44 = vpop.f32.mrb[182].mxu0 }
 0x2ba   :  { %v1276_v27 = vadd.f32 %v1275_v13, %v3070_v6  ;;  %v1725_v47 = vadd.f32 %v1724_v44, %v3073_v22  ;;  %v1277_v54 = vpop.f32.mrb[183].mxu1  ;;  %v1726_v56 = vpop.f32.mrb[183].mxu0 }
 0x2bb   :  { %v1278_v58 = vadd.f32 %v1277_v54, %v3077_v17  ;;  %v1727_v63 = vadd.f32 %v1726_v56, %v3081_v2 }
 0x2bc   :  { %2109 = vst [vmem:[#allocation8 + $0xb20] sm:$0xff] %v1276_v27  ;;  %2111 = vst [vmem:[#allocation8 + $0xb30] sm:$0xff] %v1725_v47 }
 0x2bd   :  { %2110 = vst [vmem:[#allocation8 + $0xb28] sm:$0xff] %v1278_v58  ;;  %2112 = vst [vmem:[#allocation8 + $0xb38] sm:$0xff] %v1727_v63  ;;  %v1281_v37 = vpop.f32.mrb[184].mxu1  ;;  %v1730_v5 = vpop.f32.mrb[184].mxu0 }
 0x2be   :  { %v1282_v45 = vadd.f32 %v1281_v37, %v3070_v6  ;;  %v1731_v8 = vadd.f32 %v1730_v5, %v3073_v22  ;;  %v1283_v11 = vpop.f32.mrb[185].mxu1  ;;  %v1732_v14 = vpop.f32.mrb[185].mxu0 }
 0x2bf   :  { %v1284_v19 = vadd.f32 %v1283_v11, %v3077_v17  ;;  %v1733_v25 = vadd.f32 %v1732_v14, %v3081_v2 }
 0x2c0   :  { %2115 = vst [vmem:[#allocation8 + $0xb50] sm:$0xff] %v1282_v45  ;;  %2117 = vst [vmem:[#allocation8 + $0xb60] sm:$0xff] %v1731_v8 }
 0x2c1   :  { %2116 = vst [vmem:[#allocation8 + $0xb58] sm:$0xff] %v1284_v19  ;;  %2118 = vst [vmem:[#allocation8 + $0xb68] sm:$0xff] %v1733_v25  ;;  %v1287_v28 = vpop.f32.mrb[186].mxu1  ;;  %v1736_v31 = vpop.f32.mrb[186].mxu0 }
 0x2c2   :  { %v1288_v7 = vadd.f32 %v1287_v28, %v3070_v6  ;;  %v1737_v36 = vadd.f32 %v1736_v31, %v3073_v22  ;;  %v1289_v43 = vpop.f32.mrb[187].mxu1  ;;  %v1738_v53 = vpop.f32.mrb[187].mxu0 }
 0x2c3   :  { %v1290_v35 = vadd.f32 %v1289_v43, %v3077_v17  ;;  %v1739_v59 = vadd.f32 %v1738_v53, %v3081_v2 }
 0x2c4   :  { %2121 = vst [vmem:[#allocation8 + $0xb80] sm:$0xff] %v1288_v7  ;;  %2123 = vst [vmem:[#allocation8 + $0xb90] sm:$0xff] %v1737_v36 }
 0x2c5   :  { %2122 = vst [vmem:[#allocation8 + $0xb88] sm:$0xff] %v1290_v35  ;;  %2124 = vst [vmem:[#allocation8 + $0xb98] sm:$0xff] %v1739_v59  ;;  %v1293_v57 = vpop.f32.mrb[188].mxu1  ;;  %v1742_v29 = vpop.f32.mrb[188].mxu0 }
 0x2c6   :  { %v1294_v3 = vadd.f32 %v1293_v57, %v3070_v6  ;;  %v1743_v55 = vadd.f32 %v1742_v29, %v3073_v22  ;;  %v1295_v21 = vpop.f32.mrb[189].mxu1  ;;  %v1744_v48 = vpop.f32.mrb[189].mxu0 }
 0x2c7   :  { %v1296_v0 = vadd.f32 %v1295_v21, %v3077_v17  ;;  %v1745_v16 = vadd.f32 %v1744_v48, %v3081_v2 }
 0x2c8   :  { %2127 = vst [vmem:[#allocation8 + $0xbb0] sm:$0xff] %v1294_v3  ;;  %2129 = vst [vmem:[#allocation8 + $0xbc0] sm:$0xff] %v1743_v55 }
 0x2c9   :  { %2128 = vst [vmem:[#allocation8 + $0xbb8] sm:$0xff] %v1296_v0  ;;  %2130 = vst [vmem:[#allocation8 + $0xbc8] sm:$0xff] %v1745_v16  ;;  %v1299_v9 = vpop.f32.mrb[190].mxu1  ;;  %v1748_v34 = vpop.f32.mrb[190].mxu0 }
 0x2ca   :  { %v1300_v49 = vadd.f32 %v1299_v9, %v3070_v6  ;;  %v1749_v15 = vadd.f32 %v1748_v34, %v3073_v22  ;;  %v1301_v51 = vpop.f32.mrb[191].mxu1  ;;  %v1750_v4 = vpop.f32.mrb[191].mxu0 }
 0x2cb   :  { %v1302_v24 = vadd.f32 %v1301_v51, %v3077_v17  ;;  %v1751_v40 = vadd.f32 %v1750_v4, %v3081_v2 }
 0x2cc   :  { %2133 = vst [vmem:[#allocation8 + $0xbe0] sm:$0xff] %v1300_v49  ;;  %2135 = vst [vmem:[#allocation8 + $0xbf0] sm:$0xff] %v1749_v15 }
 0x2cd   :  { %2134 = vst [vmem:[#allocation8 + $0xbe8] sm:$0xff] %v1302_v24  ;;  %2136 = vst [vmem:[#allocation8 + $0xbf8] sm:$0xff] %v1751_v40 }
 0x2ce   :  { %2530 = shalt.err (!%p2527_p0)
}
 0x2cf   :  { %s2531_s29 = scalar_lea.hbm %s3357_s3, 49152 }
 0x2d0   :  { %p2532_p1 = scmp.ne.s32.totalorder %s3357_s3, %s2531_s29  ;;  %p2535_p2 = scmp.lt.u32.totalorder %s2531_s29, %s3357_s3 }
 0x2d2   :  { %p2537_p3 = pnand %p2535_p2, %p2532_p1 }
 0x2d4   :  { %2540 = shalt.err (!%p2537_p3)
}
 0x2d5   :  { %2148 = dma.vmem_to_hbm [thread:$0]  %s2143_s25, 49152, %s3357_s3, [#allocation4], %s2548_s22, %s2548_s22, %s2549_s23  }
 0x2d6   :  { %2545 = dma.done.wait [#allocation4], 49152  }
 0x2d7   :  { %2546 = vsyncadd [#allocation4], 4294918144 }
 0x2d8   :  { %2152 = vsyncpa [#allocation3], 1 }
 0x2d9   :  { %2153 = vsyncpa [#allocation6], 1 }
 0x2da   :  { %2154 = vsyncpa [#allocation4], 1 }

</bundles_post_ra>
